<compile_context>
chip_gen: v5e
topology: v5e:2x2
jax: 0.10.0
libtpu: 0.0.40
codegen_flags: <defaults>
</compile_context>

<pallas_src>
import numpy as np
import jax
import jax.numpy as jnp
from jax.experimental import pallas as pl
from jax.experimental.pallas import tpu as pltpu


# ----------------------------------------------------------------------------
# Pallas kernel: full forward pass for one tile of TB samples.
# ----------------------------------------------------------------------------
def convnet_kernel(x_ref, w1_ref, w_ref, wcat_ref, b_ref, out_ref,
                   a1_scr, a2_scr):
    f32 = jnp.float32
    bf16 = jnp.bfloat16
    tb = x_ref.shape[0]
    r = tb * 8                                     # rows in the tall activation

    # ---- conv1 + tanh : (r, 96) @ (96, 384) -> (r, 384); lanes >= 320 are pad
    xcat = x_ref[...].reshape(r, 96)                                    # bf16
    a1 = jnp.tanh(jnp.dot(xcat, w1_ref[...], preferred_element_type=f32)
                  + b_ref[0:1, :])                                      # f32

    # ---- stage a1 so the di=1 operand is a +1-row offset VMEM load ----
    a1_scr[r:r + 8, :] = jnp.zeros((8, 384), bf16)
    a1_scr[0:r, :] = a1.astype(bf16)
    c2in = jnp.concatenate([a1_scr[0:r, :], a1_scr[1:r + 1, :]], axis=-1)  # (r,768)

    # ---- conv2 + tanh : ONE dot with di folded into K ----
    a2 = jnp.tanh(jnp.dot(c2in, w_ref[0:768, :], preferred_element_type=f32)
                  + b_ref[1:2, 0:128])                                  # (r,128)

    a2_scr[r:r + 8, :] = jnp.zeros((8, 128), bf16)
    a2_scr[0:r, :] = a2.astype(bf16)
    c3in = jnp.concatenate([a2_scr[0:r, :], a2_scr[1:r + 1, :]], axis=-1)  # (r,256)

    # ---- conv3 + tanh ----
    a3 = jnp.tanh(jnp.dot(c3in, w_ref[768:1024, 0:24],
                          preferred_element_type=f32)
                  + b_ref[2:3, 0:24])                                   # (r,24)

    # ---- fc1 & fc2 (both heads' first layer) in one dot ----
    # wcat block h (lanes h*128:(h+1)*128) holds the FC columns contributed by
    # per-sample feature row h; reduce the per-sample diagonal blocks.
    p = jnp.dot(a3.astype(bf16), wcat_ref[...],
                preferred_element_type=f32)                             # (r,768)
    p3 = p.reshape(tb, 8, 768)
    rid = jax.lax.broadcasted_iota(jnp.int32, (tb, 8, 128), 1)
    q3 = jnp.zeros((tb, 8, 128), f32)
    for h in range(6):                       # rows 6,7 of each sample are junk
        q3 = q3 + jnp.where(rid == h, p3[:, :, h * 128:(h + 1) * 128], 0.0)
    hvec = jnp.sum(q3, axis=1) + b_ref[3:4, 0:128]                      # (tb,128)
    # lanes [0:54]   = fc1 pre-activation (policy head)
    # lanes [64:118] = fc2 pre-activation (value head)

    pol = jnp.tanh(hvec)                                                # (tb,128)

    # ---- value head: relu -> fc3 (MXU) -> relu -> fc4 (VPU) -> sigmoid ----
    # fc3 weight rows are zero outside hvec lanes [64:118], so the full
    # 128-lane relu(hvec) is fed with no unaligned lane slicing.
    vh = jax.nn.relu(hvec).astype(bf16)
    v1 = jax.nn.relu(jnp.dot(vh, w_ref[1024:1152, 0:16],
                             preferred_element_type=f32)
                     + b_ref[4:5, 0:16])                                # (tb,16)
    w4 = w_ref[1152:1153, 0:16].astype(f32)                             # (1,16)
    v = jax.nn.sigmoid(jnp.sum(v1 * w4, axis=-1, keepdims=True)
                       + b_ref[5:6, 0:1])                               # (tb,1)

    # ---- lane-dense output: policy in lanes [0:54], value in lane 54 ----
    lane = jax.lax.broadcasted_iota(jnp.int32, (tb, 128), 1)
    out_ref[...] = jnp.where(lane == 54, v, pol)


# ----------------------------------------------------------------------------
# Parameter preparation (host-side glue, plain numpy).
# ----------------------------------------------------------------------------
def conv_weight_folded(w_oihw, win):
    """Torch (Cout, Cin, 2, 2) -> (2, Win*Cin, Wout*Cout), dj folded (block-banded)."""
    w = np.asarray(w_oihw, np.float32)
    cout, cin, _, _ = w.shape
    wout = win - 1
    out = np.zeros((2, win * cin, wout * cout), np.float32)
    for di in range(2):
        for dj in range(2):
            blk = w[:, :, di, dj].T                                  # (Cin, Cout)
            for wo in range(wout):
                r0 = (wo + dj) * cin
                c0 = wo * cout
                out[di, r0:r0 + cin, c0:c0 + cout] = blk
    return out


def build_fc_head_weight(fc1_w, fc2_w):
    """fc1/fc2 torch weights (54, 144) -> fused (24, 6*128) per-row-h blocks.

    Torch flatten index = c*18 + h*3 + w ; feature-map lane index = w*8 + c.
    Block h: cols [0:54] = fc1 (policy), cols [64:118] = fc2 (value head).
    """
    f1 = np.asarray(fc1_w, np.float32).reshape(54, 8, 6, 3)          # (o, c, h, w)
    f2 = np.asarray(fc2_w, np.float32).reshape(54, 8, 6, 3)
    wcat = np.zeros((24, 6 * 128), np.float32)
    for h in range(6):
        for w in range(3):
            for c in range(8):
                lidx = w * 8 + c
                wcat[lidx, h * 128 + 0:h * 128 + 54] = f1[:, c, h, w]
                wcat[lidx, h * 128 + 64:h * 128 + 118] = f2[:, c, h, w]
    return wcat


def prepare_kernel_params(p):
    w1 = conv_weight_folded(p["conv1_w"], win=6)                     # (2, 48, 320)
    w2 = conv_weight_folded(p["conv2_w"], win=5)                     # (2, 320, 128)
    w3 = conv_weight_folded(p["conv3_w"], win=4)                     # (2, 128, 24)

    # conv1: di stacked along K, output padded 320 -> 384 lanes.
    w1buf = np.zeros((96, 384), np.float32)
    w1buf[0:48, 0:320] = w1[0]
    w1buf[48:96, 0:320] = w1[1]

    # Main 128-lane packed buffer: conv2 (K padded to 2*384), conv3, fc3, fc4.
    wbuf = np.zeros((1160, 128), np.float32)
    wbuf[0:320, :] = w2[0]
    wbuf[384:704, :] = w2[1]
    wbuf[768:896, 0:24] = w3[0]
    wbuf[896:1024, 0:24] = w3[1]
    # fc3 consumes the full 128-lane hvec; only value-head lanes [64:118] carry
    # weight, so no unaligned lane slicing is needed in the kernel.
    wbuf[1024 + 64:1024 + 118, 0:10] = np.asarray(p["fc3_w"], np.float32).T
    wbuf[1152, 0:10] = np.asarray(p["fc4_w"], np.float32)[0]

    wcat = build_fc_head_weight(p["fc1_w"], p["fc2_w"])              # (24, 768)

    bbuf = np.zeros((8, 384), np.float32)
    bbuf[0, 0:320] = np.tile(np.asarray(p["conv1_b"], np.float32), 5)
    bbuf[1, 0:128] = np.tile(np.asarray(p["conv2_b"], np.float32), 4)
    bbuf[2, 0:24] = np.tile(np.asarray(p["conv3_b"], np.float32), 3)
    bbuf[3, 0:54] = np.asarray(p["fc1_b"], np.float32)
    bbuf[3, 64:118] = np.asarray(p["fc2_b"], np.float32)
    bbuf[4, 0:10] = np.asarray(p["fc3_b"], np.float32)
    bbuf[5, 0] = np.asarray(p["fc4_b"], np.float32)[0]

    return dict(
        w1buf=jnp.asarray(w1buf, jnp.bfloat16),
        wbuf=jnp.asarray(wbuf, jnp.bfloat16),
        wcat=jnp.asarray(wcat, jnp.bfloat16),
        bbuf=jnp.asarray(bbuf, jnp.float32),
    )


# ----------------------------------------------------------------------------
# Wrapper: batch grid, weights VMEM-resident, x/out pipelined.
# ----------------------------------------------------------------------------
def convnet_forward(x_nchw, kp, *, tb=32):
    b = x_nchw.shape[0]
    # NCHW -> per-sample (H, W*C) rows, and fold the conv1 di=0/1 input-row
    # pair into K on the host (single fused XLA op, amortised over the batch).
    x2d = jnp.transpose(x_nchw, (0, 2, 3, 1)).reshape(b, 9, 48)
    xcat = jnp.concatenate([x2d[:, 0:8, :], x2d[:, 1:9, :]],
                           axis=-1).astype(jnp.bfloat16)              # (b, 8, 96)

    bp = ((b + tb - 1) // tb) * tb
    if bp != b:
        xcat = jnp.pad(xcat, ((0, bp - b), (0, 0), (0, 0)))

    out = pl.pallas_call(
        convnet_kernel,
        out_shape=jax.ShapeDtypeStruct((bp, 128), jnp.float32),
        grid=(bp // tb,),
        in_specs=[
            pl.BlockSpec((tb, 8, 96), lambda i: (i, 0, 0)),   # x tile (pipelined)
            pl.BlockSpec((96, 384), lambda i: (0, 0)),        # conv1 weights
            pl.BlockSpec((1160, 128), lambda i: (0, 0)),      # conv2/3, fc3, fc4
            pl.BlockSpec((24, 768), lambda i: (0, 0)),        # fused fc1/fc2
            pl.BlockSpec((8, 384), lambda i: (0, 0)),         # all biases
        ],
        out_specs=pl.BlockSpec((tb, 128), lambda i: (i, 0)),
        scratch_shapes=[
            pltpu.VMEM((tb * 8 + 8, 384), jnp.bfloat16),      # a1 staging
            pltpu.VMEM((tb * 8 + 8, 128), jnp.bfloat16),      # a2 staging
        ],
        compiler_params=pltpu.CompilerParams(
            dimension_semantics=("parallel",)),
    )(xcat, kp["w1buf"], kp["wbuf"], kp["wcat"], kp["bbuf"])

    out = out[:b]
    return out[:, 0:54], out[:, 54:55]


# ----------------------------------------------------------------------------
# Pure-JAX reference (mirrors the PyTorch module per sample, NCHW, f32).
# ----------------------------------------------------------------------------
def convnet_reference(x_nchw, p):
    def conv(x, w, b):
        y = jax.lax.conv_general_dilated(
            x, w, (1, 1), "VALID",
            dimension_numbers=("NCHW", "OIHW", "NCHW"))
        return y + b[None, :, None, None]

    a1 = jnp.tanh(conv(x_nchw, p["conv1_w"], p["conv1_b"]))
    a2 = jnp.tanh(conv(a1, p["conv2_w"], p["conv2_b"]))
    a3 = jnp.tanh(conv(a2, p["conv3_w"], p["conv3_b"]))
    flat = a3.reshape(a3.shape[0], -1)                   # per-sample CHW flatten
    policy = jnp.tanh(flat @ p["fc1_w"].T + p["fc1_b"])
    v = jax.nn.relu(flat @ p["fc2_w"].T + p["fc2_b"])
    v = jax.nn.relu(v @ p["fc3_w"].T + p["fc3_b"])
    v = jax.nn.sigmoid(v @ p["fc4_w"].T + p["fc4_b"])
    return policy, v


# ----------------------------------------------------------------------------
def init_params(key):
    def uni(k, shape, fan_in):
        bound = 1.0 / np.sqrt(fan_in)
        return jax.random.uniform(k, shape, jnp.float32, -bound, bound)

    ks = jax.random.split(key, 16)
    return {
        "conv1_w": uni(ks[0], (64, 8, 2, 2), 8 * 4),   "conv1_b": uni(ks[1], (64,), 8 * 4),
        "conv2_w": uni(ks[2], (32, 64, 2, 2), 64 * 4), "conv2_b": uni(ks[3], (32,), 64 * 4),
        "conv3_w": uni(ks[4], (8, 32, 2, 2), 32 * 4),  "conv3_b": uni(ks[5], (8,), 32 * 4),
        "fc1_w": uni(ks[6], (54, 144), 144),           "fc1_b": uni(ks[7], (54,), 144),
        "fc2_w": uni(ks[8], (54, 144), 144),           "fc2_b": uni(ks[9], (54,), 144),
        "fc3_w": uni(ks[10], (10, 54), 54),            "fc3_b": uni(ks[11], (10,), 54),
        "fc4_w": uni(ks[12], (1, 10), 10),             "fc4_b": uni(ks[13], (1,), 10),
    }


if __name__ == "__main__":
    root = jax.random.PRNGKey(0)
    kx, kparam = jax.random.split(root)

    # After three 2x2 VALID convs the feature map is (8, 6, 3), matching the
    # module's x.view(8*6*3).  Batched over B independent samples.
    B = 128
    x = jax.random.normal(kx, (B, 8, 9, 6), jnp.float32)

    params = init_params(kparam)
    kparams = prepare_kernel_params(params)

    fwd = jax.jit(convnet_forward)
    policy, value = fwd(x, kparams)
    policy = jax.block_until_ready(policy)
    value = jax.block_until_ready(value)

    assert policy.shape == (B, 54) and value.shape == (B, 1)
    assert bool(jnp.all(jnp.isfinite(policy))) and bool(jnp.all(jnp.isfinite(value)))

    # Cross-check against a pure-JAX f32 reference of the PyTorch forward.
    # Max-error tolerance covers bf16 MXU operands through three tanh conv
    # layers over 128 samples; mean-error checks keep the comparison tight.
    ref_policy, ref_value = convnet_reference(x, params)
    np.testing.assert_allclose(np.asarray(policy), np.asarray(ref_policy),
                               rtol=0.0, atol=8e-2)
    np.testing.assert_allclose(np.asarray(value), np.asarray(ref_value),
                               rtol=0.0, atol=5e-2)
    assert float(jnp.mean(jnp.abs(policy - ref_policy))) < 2e-2
    assert float(jnp.mean(jnp.abs(value - ref_value))) < 2e-2

    print("KERNEL_OK")
</pallas_src>

<mosaic_0001>
module attributes {stable_mosaic.version = 11 : i64} {
  func.func @convnet_kernel(%arg0: i32, %arg1: memref<32x8x96xbf16, #tpu.memory_space<vmem>>, %arg2: memref<96x384xbf16, #tpu.memory_space<vmem>>, %arg3: memref<1160x128xbf16, #tpu.memory_space<vmem>>, %arg4: memref<24x768xbf16, #tpu.memory_space<vmem>>, %arg5: memref<8x384xf32, #tpu.memory_space<vmem>>, %arg6: memref<32x128xf32, #tpu.memory_space<vmem>>, %arg7: memref<264x384xbf16, #tpu.memory_space<vmem>>, %arg8: memref<264x128xbf16, #tpu.memory_space<vmem>>) attributes {dimension_semantics = [#tpu.dimension_semantics<parallel>], iteration_bounds = array<i64: 4>, scalar_prefetch = 0 : i64, scratch_operands = 2 : i64, tpu.core_type = #tpu.core_type<tc>, window_params = [{transform_indices = @transform_0, window_bounds = array<i64: 32, 8, 96>}, {pipeline_mode = #tpu.pipeline_mode<synchronous>, transform_indices = @transform_1, window_bounds = array<i64: 96, 384>}, {pipeline_mode = #tpu.pipeline_mode<synchronous>, transform_indices = @transform_2, window_bounds = array<i64: 1160, 128>}, {pipeline_mode = #tpu.pipeline_mode<synchronous>, transform_indices = @transform_3, window_bounds = array<i64: 24, 768>}, {pipeline_mode = #tpu.pipeline_mode<synchronous>, transform_indices = @transform_4, window_bounds = array<i64: 8, 384>}, {transform_indices = @transform_5, window_bounds = array<i64: 32, 128>}]} {
    %c0 = arith.constant 0 : index
    %c0_0 = arith.constant 0 : index
    %c0_1 = arith.constant 0 : index
    %0 = vector.load %arg1[%c0, %c0_0, %c0_1] : memref<32x8x96xbf16, #tpu.memory_space<vmem>>, vector<32x8x96xbf16>
    %1 = vector.shape_cast %0 : vector<32x8x96xbf16> to vector<256x96xbf16>
    %c0_2 = arith.constant 0 : index
    %c0_3 = arith.constant 0 : index
    %2 = vector.load %arg2[%c0_2, %c0_3] : memref<96x384xbf16, #tpu.memory_space<vmem>>, vector<96x384xbf16>
    %cst = arith.constant dense<0.000000e+00> : vector<256x384xf32>
    %3 = tpu.matmul %1, %2, %cst {dimension_numbers = #tpu.dot_dimension_numbers<[1], [0], [0], [1], [0, 0, 1, 1], [], []>} : vector<256x96xbf16>, vector<96x384xbf16>, vector<256x384xf32> -> vector<256x384xf32>
    %c0_4 = arith.constant 0 : index
    %c0_5 = arith.constant 0 : index
    %4 = vector.load %arg5[%c0_4, %c0_5] : memref<8x384xf32, #tpu.memory_space<vmem>>, vector<1x384xf32>
    %5 = vector.broadcast %4 : vector<1x384xf32> to vector<256x384xf32>
    %6 = arith.addf %3, %5 : vector<256x384xf32>
    %7 = math.tanh %6 : vector<256x384xf32>
    %cst_6 = arith.constant 0.000000e+00 : bf16
    %8 = vector.broadcast %cst_6 : bf16 to vector<8x384xbf16>
    %c256 = arith.constant 256 : index
    %c0_7 = arith.constant 0 : index
    %9 = vector.load %arg7[%c256, %c0_7] : memref<264x384xbf16, #tpu.memory_space<vmem>>, vector<8x384xbf16>
    tpu.vector_store %arg7[%c256, %c0_7], %8 {strides = array<i32>} : memref<264x384xbf16, #tpu.memory_space<vmem>>, vector<8x384xbf16>,
    %10 = arith.truncf %7 : vector<256x384xf32> to vector<256x384xbf16>
    %c0_8 = arith.constant 0 : index
    %c0_9 = arith.constant 0 : index
    %11 = vector.load %arg7[%c0_8, %c0_9] : memref<264x384xbf16, #tpu.memory_space<vmem>>, vector<256x384xbf16>
    tpu.vector_store %arg7[%c0_8, %c0_9], %10 {strides = array<i32>} : memref<264x384xbf16, #tpu.memory_space<vmem>>, vector<256x384xbf16>,
    %c0_10 = arith.constant 0 : index
    %c0_11 = arith.constant 0 : index
    %12 = vector.load %arg7[%c0_10, %c0_11] : memref<264x384xbf16, #tpu.memory_space<vmem>>, vector<256x384xbf16>
    %c1 = arith.constant 1 : index
    %c0_12 = arith.constant 0 : index
    %13 = vector.load %arg7[%c1, %c0_12] : memref<264x384xbf16, #tpu.memory_space<vmem>>, vector<256x384xbf16>
    %14 = tpu.concatenate %12, %13 in 1 : vector<256x384xbf16>, vector<256x384xbf16> -> vector<256x768xbf16>
    %c0_13 = arith.constant 0 : index
    %c0_14 = arith.constant 0 : index
    %15 = vector.load %arg3[%c0_13, %c0_14] : memref<1160x128xbf16, #tpu.memory_space<vmem>>, vector<768x128xbf16>
    %cst_15 = arith.constant dense<0.000000e+00> : vector<256x128xf32>
    %16 = tpu.matmul %14, %15, %cst_15 {dimension_numbers = #tpu.dot_dimension_numbers<[1], [0], [0], [1], [0, 0, 1, 1], [], []>} : vector<256x768xbf16>, vector<768x128xbf16>, vector<256x128xf32> -> vector<256x128xf32>
    %c1_16 = arith.constant 1 : index
    %c0_17 = arith.constant 0 : index
    %17 = vector.load %arg5[%c1_16, %c0_17] : memref<8x384xf32, #tpu.memory_space<vmem>>, vector<1x128xf32>
    %18 = vector.broadcast %17 : vector<1x128xf32> to vector<256x128xf32>
    %19 = arith.addf %16, %18 : vector<256x128xf32>
    %20 = math.tanh %19 : vector<256x128xf32>
    %cst_18 = arith.constant 0.000000e+00 : bf16
    %21 = vector.broadcast %cst_18 : bf16 to vector<8x128xbf16>
    %c256_19 = arith.constant 256 : index
    %c0_20 = arith.constant 0 : index
    %22 = vector.load %arg8[%c256_19, %c0_20] : memref<264x128xbf16, #tpu.memory_space<vmem>>, vector<8x128xbf16>
    tpu.vector_store %arg8[%c256_19, %c0_20], %21 {strides = array<i32>} : memref<264x128xbf16, #tpu.memory_space<vmem>>, vector<8x128xbf16>,
    %23 = arith.truncf %20 : vector<256x128xf32> to vector<256x128xbf16>
    %c0_21 = arith.constant 0 : index
    %c0_22 = arith.constant 0 : index
    %24 = vector.load %arg8[%c0_21, %c0_22] : memref<264x128xbf16, #tpu.memory_space<vmem>>, vector<256x128xbf16>
    tpu.vector_store %arg8[%c0_21, %c0_22], %23 {strides = array<i32>} : memref<264x128xbf16, #tpu.memory_space<vmem>>, vector<256x128xbf16>,
    %c0_23 = arith.constant 0 : index
    %c0_24 = arith.constant 0 : index
    %25 = vector.load %arg8[%c0_23, %c0_24] : memref<264x128xbf16, #tpu.memory_space<vmem>>, vector<256x128xbf16>
    %c1_25 = arith.constant 1 : index
    %c0_26 = arith.constant 0 : index
    %26 = vector.load %arg8[%c1_25, %c0_26] : memref<264x128xbf16, #tpu.memory_space<vmem>>, vector<256x128xbf16>
    %27 = tpu.concatenate %25, %26 in 1 : vector<256x128xbf16>, vector<256x128xbf16> -> vector<256x256xbf16>
    %c768 = arith.constant 768 : index
    %c0_27 = arith.constant 0 : index
    %28 = vector.load %arg3[%c768, %c0_27] : memref<1160x128xbf16, #tpu.memory_space<vmem>>, vector<256x24xbf16>
    %cst_28 = arith.constant dense<0.000000e+00> : vector<256x24xf32>
    %29 = tpu.matmul %27, %28, %cst_28 {dimension_numbers = #tpu.dot_dimension_numbers<[1], [0], [0], [1], [0, 0, 1, 1], [], []>} : vector<256x256xbf16>, vector<256x24xbf16>, vector<256x24xf32> -> vector<256x24xf32>
    %c2 = arith.constant 2 : index
    %c0_29 = arith.constant 0 : index
    %30 = vector.load %arg5[%c2, %c0_29] : memref<8x384xf32, #tpu.memory_space<vmem>>, vector<1x24xf32>
    %31 = vector.broadcast %30 : vector<1x24xf32> to vector<256x24xf32>
    %32 = arith.addf %29, %31 : vector<256x24xf32>
    %33 = math.tanh %32 : vector<256x24xf32>
    %34 = arith.truncf %33 : vector<256x24xf32> to vector<256x24xbf16>
    %c0_30 = arith.constant 0 : index
    %c0_31 = arith.constant 0 : index
    %35 = vector.load %arg4[%c0_30, %c0_31] : memref<24x768xbf16, #tpu.memory_space<vmem>>, vector<24x768xbf16>
    %cst_32 = arith.constant dense<0.000000e+00> : vector<256x768xf32>
    %36 = tpu.matmul %34, %35, %cst_32 {dimension_numbers = #tpu.dot_dimension_numbers<[1], [0], [0], [1], [0, 0, 1, 1], [], []>} : vector<256x24xbf16>, vector<24x768xbf16>, vector<256x768xf32> -> vector<256x768xf32>
    %37 = vector.shape_cast %36 : vector<256x768xf32> to vector<32x8x768xf32>
    %38 = tpu.iota {dimensions = array<i32: 1>} : vector<32x8x128xi32>
    %cst_33 = arith.constant 0.000000e+00 : f32
    %39 = vector.broadcast %cst_33 : f32 to vector<32x8x128xf32>
    %c0_i32 = arith.constant 0 : i32
    %40 = vector.broadcast %c0_i32 : i32 to vector<32x8x128xi32>
    %41 = arith.cmpi eq, %38, %40 : vector<32x8x128xi32>
    %42 = vector.extract_strided_slice %37 {offsets = [0, 0, 0], sizes = [32, 8, 128], strides = [1, 1, 1]} : vector<32x8x768xf32> to vector<32x8x128xf32>
    %cst_34 = arith.constant 0.000000e+00 : f32
    %43 = vector.broadcast %cst_34 : f32 to vector<32x8x128xf32>
    %44 = arith.select %41, %42, %43 : vector<32x8x128xi1>, vector<32x8x128xf32>
    %45 = arith.addf %39, %44 : vector<32x8x128xf32>
    %c1_i32 = arith.constant 1 : i32
    %46 = vector.broadcast %c1_i32 : i32 to vector<32x8x128xi32>
    %47 = arith.cmpi eq, %38, %46 : vector<32x8x128xi32>
    %48 = vector.extract_strided_slice %37 {offsets = [0, 0, 128], sizes = [32, 8, 128], strides = [1, 1, 1]} : vector<32x8x768xf32> to vector<32x8x128xf32>
    %cst_35 = arith.constant 0.000000e+00 : f32
    %49 = vector.broadcast %cst_35 : f32 to vector<32x8x128xf32>
    %50 = arith.select %47, %48, %49 : vector<32x8x128xi1>, vector<32x8x128xf32>
    %51 = arith.addf %45, %50 : vector<32x8x128xf32>
    %c2_i32 = arith.constant 2 : i32
    %52 = vector.broadcast %c2_i32 : i32 to vector<32x8x128xi32>
    %53 = arith.cmpi eq, %38, %52 : vector<32x8x128xi32>
    %54 = vector.extract_strided_slice %37 {offsets = [0, 0, 256], sizes = [32, 8, 128], strides = [1, 1, 1]} : vector<32x8x768xf32> to vector<32x8x128xf32>
    %cst_36 = arith.constant 0.000000e+00 : f32
    %55 = vector.broadcast %cst_36 : f32 to vector<32x8x128xf32>
    %56 = arith.select %53, %54, %55 : vector<32x8x128xi1>, vector<32x8x128xf32>
    %57 = arith.addf %51, %56 : vector<32x8x128xf32>
    %c3_i32 = arith.constant 3 : i32
    %58 = vector.broadcast %c3_i32 : i32 to vector<32x8x128xi32>
    %59 = arith.cmpi eq, %38, %58 : vector<32x8x128xi32>
    %60 = vector.extract_strided_slice %37 {offsets = [0, 0, 384], sizes = [32, 8, 128], strides = [1, 1, 1]} : vector<32x8x768xf32> to vector<32x8x128xf32>
    %cst_37 = arith.constant 0.000000e+00 : f32
    %61 = vector.broadcast %cst_37 : f32 to vector<32x8x128xf32>
    %62 = arith.select %59, %60, %61 : vector<32x8x128xi1>, vector<32x8x128xf32>
    %63 = arith.addf %57, %62 : vector<32x8x128xf32>
    %c4_i32 = arith.constant 4 : i32
    %64 = vector.broadcast %c4_i32 : i32 to vector<32x8x128xi32>
    %65 = arith.cmpi eq, %38, %64 : vector<32x8x128xi32>
    %66 = vector.extract_strided_slice %37 {offsets = [0, 0, 512], sizes = [32, 8, 128], strides = [1, 1, 1]} : vector<32x8x768xf32> to vector<32x8x128xf32>
    %cst_38 = arith.constant 0.000000e+00 : f32
    %67 = vector.broadcast %cst_38 : f32 to vector<32x8x128xf32>
    %68 = arith.select %65, %66, %67 : vector<32x8x128xi1>, vector<32x8x128xf32>
    %69 = arith.addf %63, %68 : vector<32x8x128xf32>
    %c5_i32 = arith.constant 5 : i32
    %70 = vector.broadcast %c5_i32 : i32 to vector<32x8x128xi32>
    %71 = arith.cmpi eq, %38, %70 : vector<32x8x128xi32>
    %72 = vector.extract_strided_slice %37 {offsets = [0, 0, 640], sizes = [32, 8, 128], strides = [1, 1, 1]} : vector<32x8x768xf32> to vector<32x8x128xf32>
    %cst_39 = arith.constant 0.000000e+00 : f32
    %73 = vector.broadcast %cst_39 : f32 to vector<32x8x128xf32>
    %74 = arith.select %71, %72, %73 : vector<32x8x128xi1>, vector<32x8x128xf32>
    %75 = arith.addf %69, %74 : vector<32x8x128xf32>
    %cst_40 = arith.constant dense<0.000000e+00> : vector<32x128xf32>
    %76 = vector.multi_reduction <add>, %75, %cst_40 [1] : vector<32x8x128xf32> to vector<32x128xf32>
    %c3 = arith.constant 3 : index
    %c0_41 = arith.constant 0 : index
    %77 = vector.load %arg5[%c3, %c0_41] : memref<8x384xf32, #tpu.memory_space<vmem>>, vector<1x128xf32>
    %78 = vector.broadcast %77 : vector<1x128xf32> to vector<32x128xf32>
    %79 = arith.addf %76, %78 : vector<32x128xf32>
    %80 = math.tanh %79 : vector<32x128xf32>
    %cst_42 = arith.constant 0.000000e+00 : f32
    %81 = vector.broadcast %cst_42 : f32 to vector<32x128xf32>
    %82 = arith.maximumf %79, %81 : vector<32x128xf32>
    %83 = arith.truncf %82 : vector<32x128xf32> to vector<32x128xbf16>
    %c1024 = arith.constant 1024 : index
    %c0_43 = arith.constant 0 : index
    %84 = vector.load %arg3[%c1024, %c0_43] : memref<1160x128xbf16, #tpu.memory_space<vmem>>, vector<128x16xbf16>
    %cst_44 = arith.constant dense<0.000000e+00> : vector<32x16xf32>
    %85 = tpu.matmul %83, %84, %cst_44 {dimension_numbers = #tpu.dot_dimension_numbers<[1], [0], [0], [1], [0, 0, 1, 1], [], []>} : vector<32x128xbf16>, vector<128x16xbf16>, vector<32x16xf32> -> vector<32x16xf32>
    %c4 = arith.constant 4 : index
    %c0_45 = arith.constant 0 : index
    %86 = vector.load %arg5[%c4, %c0_45] : memref<8x384xf32, #tpu.memory_space<vmem>>, vector<1x16xf32>
    %87 = vector.broadcast %86 : vector<1x16xf32> to vector<32x16xf32>
    %88 = arith.addf %85, %87 : vector<32x16xf32>
    %cst_46 = arith.constant 0.000000e+00 : f32
    %89 = vector.broadcast %cst_46 : f32 to vector<32x16xf32>
    %90 = arith.maximumf %88, %89 : vector<32x16xf32>
    %c1152 = arith.constant 1152 : index
    %c0_47 = arith.constant 0 : index
    %91 = vector.load %arg3[%c1152, %c0_47] : memref<1160x128xbf16, #tpu.memory_space<vmem>>, vector<1x16xbf16>
    %92 = arith.extf %91 : vector<1x16xbf16> to vector<1x16xf32>
    %93 = vector.broadcast %92 : vector<1x16xf32> to vector<32x16xf32>
    %94 = arith.mulf %90, %93 : vector<32x16xf32>
    %cst_48 = arith.constant dense<0.000000e+00> : vector<32xf32>
    %95 = vector.multi_reduction <add>, %94, %cst_48 [1] : vector<32x16xf32> to vector<32xf32>
    %96 = vector.shape_cast %95 : vector<32xf32> to vector<32x1xf32>
    %c5 = arith.constant 5 : index
    %c0_49 = arith.constant 0 : index
    %97 = vector.load %arg5[%c5, %c0_49] : memref<8x384xf32, #tpu.memory_space<vmem>>, vector<1x1xf32>
    %98 = vector.broadcast %97 : vector<1x1xf32> to vector<32x1xf32>
    %99 = arith.addf %96, %98 : vector<32x1xf32>
    %100 = arith.negf %99 : vector<32x1xf32>
    %101 = math.exp %100 : vector<32x1xf32>
    %cst_50 = arith.constant 1.000000e+00 : f32
    %102 = vector.broadcast %cst_50 : f32 to vector<32x1xf32>
    %103 = arith.addf %102, %101 : vector<32x1xf32>
    %104 = arith.divf %102, %103 : vector<32x1xf32>
    %105 = tpu.iota {dimensions = array<i32: 1>} : vector<32x128xi32>
    %c54_i32 = arith.constant 54 : i32
    %106 = vector.broadcast %c54_i32 : i32 to vector<32x128xi32>
    %107 = arith.cmpi eq, %105, %106 : vector<32x128xi32>
    %108 = vector.shape_cast %104 : vector<32x1xf32> to vector<32x1xf32>
    %109 = vector.broadcast %108 : vector<32x1xf32> to vector<32x128xf32>
    %110 = arith.select %107, %109, %80 : vector<32x128xi1>, vector<32x128xf32>
    %c0_51 = arith.constant 0 : index
    %c0_52 = arith.constant 0 : index
    %111 = vector.load %arg6[%c0_51, %c0_52] : memref<32x128xf32, #tpu.memory_space<vmem>>, vector<32x128xf32>
    tpu.vector_store %arg6[%c0_51, %c0_52], %110 {strides = array<i32>} : memref<32x128xf32, #tpu.memory_space<vmem>>, vector<32x128xf32>,
    return
  }
  func.func @transform_0(%arg0: i32) -> (i32, i32, i32) {
    %c0_i32 = arith.constant 0 : i32
    %c0_i32_0 = arith.constant 0 : i32
    %c0_i32_1 = arith.constant 0 : i32
    return %arg0, %c0_i32, %c0_i32_0 : i32, i32, i32
  }
  func.func @transform_1(%arg0: i32) -> (i32, i32) {
    %c0_i32 = arith.constant 0 : i32
    %c0_i32_0 = arith.constant 0 : i32
    %c0_i32_1 = arith.constant 0 : i32
    return %c0_i32, %c0_i32_0 : i32, i32
  }
  func.func @transform_2(%arg0: i32) -> (i32, i32) {
    %c0_i32 = arith.constant 0 : i32
    %c0_i32_0 = arith.constant 0 : i32
    %c0_i32_1 = arith.constant 0 : i32
    return %c0_i32, %c0_i32_0 : i32, i32
  }
  func.func @transform_3(%arg0: i32) -> (i32, i32) {
    %c0_i32 = arith.constant 0 : i32
    %c0_i32_0 = arith.constant 0 : i32
    %c0_i32_1 = arith.constant 0 : i32
    return %c0_i32, %c0_i32_0 : i32, i32
  }
  func.func @transform_4(%arg0: i32) -> (i32, i32) {
    %c0_i32 = arith.constant 0 : i32
    %c0_i32_0 = arith.constant 0 : i32
    %c0_i32_1 = arith.constant 0 : i32
    return %c0_i32, %c0_i32_0 : i32, i32
  }
  func.func @transform_5(%arg0: i32) -> (i32, i32) {
    %c0_i32 = arith.constant 0 : i32
    %c0_i32_0 = arith.constant 0 : i32
    return %arg0, %c0_i32 : i32, i32
  }
}

</mosaic_0001>

<bundles_post_ra>
// kernel: convnet_forward.1
= control target key start
LH: loop header
LB: loop body
LE: loop exit
PB: predicated region body
PF: predicated region fallthrough
CT: control target
= control target key end

     0   :  { %s7614_s18 = smov 0   ;;  %s9969_s0 = inlined_call_operand.vmem [shape: bf16[128,8,96], index: 0, kind: input, shape index: {}]   ;;  %s9970_s1 = inlined_call_operand.vmem [shape: bf16[96,384], index: 1, kind: input, shape index: {}]   ;;  %s9971_s2 = inlined_call_operand.vmem [shape: bf16[1160,128], index: 2, kind: input, shape index: {}]   ;;  %s9972_s3 = inlined_call_operand.vmem [shape: bf16[24,768], index: 3, kind: input, shape index: {}]   ;;  %s9973_s4 = inlined_call_operand.vmem [shape: f32[8,384], index: 4, kind: input, shape index: {}]   ;;  %s9974_s5 = inlined_call_operand.vmem [shape: f32[128,128], index: 5, kind: output, shape index: {}]  }
   0x1 LB: > { %s5689_s19 = sadd.s32 4294967295, %s7581_s18   ;;  %p5693_p0 = scmp.ge.s32.totalorder %s7581_s18, 1  ;;  %s7581_s18 = sphi %s7614_s18, %s15_s18  }
   0x2   : > { %p188_p1 = scmp.lt.s32.totalorder %s7581_s18, 5 }
   0x4   : > { %p189_p2 = pnand %p5693_p0, %p188_p1 }
   0x6   : > { %192 = sbr.rel (%p189_p2) target bundleno = 1876 (0x754), region = 40 }
   0xb   : > { %v5824_v0 = vld [vmem:[%s9970_s1 + $0x78] sm:$0xf]  ;;  %v6840_v1 = vld [vmem:[%s9970_s1 + $0x80] sm:$0xf0]  ;;  %v5812_v2 = vld [vmem:[%s9970_s1 + $0x60] sm:$0xf] }
   0xc   : > { %v5825_v3 = vor.u32 %v6840_v1, %v5824_v0  ;;  %v6837_v4 = vld [vmem:[%s9970_s1 + $0x68] sm:$0xf0]  ;;  %v5800_v6 = vld [vmem:[%s9970_s1 + $0x48] sm:$0xf]  ;;  %v6834_v7 = vld [vmem:[%s9970_s1 + $0x50] sm:$0xf0] }
   0xd   : > { %v5813_v5 = vor.u32 %v6837_v4, %v5812_v2  ;;  %s5694_s7 = sshll.u32 %s5689_s19, 5  ;;  %v5801_v8 = vor.u32 %v6834_v7, %v5800_v6  ;;  %v5788_v9 = vld [vmem:[%s9970_s1 + $0x30] sm:$0xf]  ;;  %v6831_v10 = vld [vmem:[%s9970_s1 + $0x38] sm:$0xf0]  ;;  %vm469_vm0 = vcmask 785408  }
   0xe   : > { %7143 = vmatpush.bf16.msra.mxu1 %v5825_v3  ;;  %7144 = vmatpush.bf16.msra.mxu2 %v5825_v3  ;;  %p217_p3 = scmp.lt.s32.totalorder %s5694_s7, 127  ;;  %v5789_v11 = vor.u32 %v6831_v10, %v5788_v9  ;;  %v5776_v12 = vld [vmem:[%s9970_s1 + $0x18] sm:$0xf]  ;;  %v6828_v13 = vld [vmem:[%s9970_s1 + $0x20] sm:$0xf0]  ;;  %v6944_v6 = vld [vmem:[%s9971_s2 + $0x30] sm:$0xff] }
   0xf   : > { %520 = vmatpush.bf16.msra.mxu0 %v5825_v3  ;;  %7145 = vmatpush.bf16.msra.mxu3 %v5825_v3  ;;  %v5777_v14 = vor.u32 %v6828_v13, %v5776_v12  ;;  %v5764_v15 = vld [vmem:[%s9970_s1] sm:$0xf]  ;;  %v6825_v16 = vld [vmem:[%s9970_s1 + $0x8] sm:$0xf0]  ;;  %v6839_v17 = vld [vmem:[%s9970_s1 + $0x7c] sm:$0xf] }
  0x10   : > { %s10000_s7 = smov (!%p217_p3, %s5694_s7), 127  ;;  %v5826_v18 = vld [vmem:[%s9970_s1 + $0x84] sm:$0xf0]  ;;  %v5832_v19 = vld [vmem:[%s9970_s1 + $0x80] sm:$0xf]  ;;  %v5765_v21 = vor.u32 %v6825_v16, %v5764_v15  ;;  %v6945_v2 = vld [vmem:[%s9971_s2 + $0x38] sm:$0xff] }
  0x11   : > { %s5695_s22 = sshll.u32 %s10000_s7, 2  ;;  %v6841_v20 = vld [vmem:[%s9970_s1 + $0x88] sm:$0xf0]  ;;  %v5829_v22 = vor.u32 %v6839_v17, %v5826_v18  ;;  %v6836_v23 = vld [vmem:[%s9970_s1 + $0x64] sm:$0xf]  ;;  %v6953_v4 = vld [vmem:[%s9971_s2 + $0x78] sm:$0xff] }
  0x12   : > { %7146 = vmatpush.bf16.msra.mxu1 %v5813_v5  ;;  %7147 = vmatpush.bf16.msra.mxu2 %v5813_v5  ;;  %s7675_s8 = scalar_lea.vmem %s9969_s0, %s5695_s22  ;;  %v5814_v24 = vld [vmem:[%s9970_s1 + $0x6c] sm:$0xf0]  ;;  %v5833_v25 = vor.u32 %v6841_v20, %v5832_v19  ;;  %v6833_v30 = vld [vmem:[%s9970_s1 + $0x4c] sm:$0xf]  ;;  %v5802_v31 = vld [vmem:[%s9970_s1 + $0x54] sm:$0xf0] }
  0x13   : > { %521 = vmatpush.bf16.msra.mxu0 %v5813_v5  ;;  %7148 = vmatpush.bf16.msra.mxu3 %v5813_v5  ;;  %v7684_v26 = vld [vmem:[%s7675_s8 + $0x28] sm:$0xff]  ;;  %v7687_v27 = vld [vmem:[%s7675_s8 + $0x30] sm:$0xff]  ;;  %v7690_v28 = vld [vmem:[%s7675_s8] sm:$0xff]  ;;  %v5817_v29 = vor.u32 %v6836_v23, %v5814_v24  ;;  %v5805_v32 = vor.u32 %v6833_v30, %v5802_v31  ;;  %vm1613_vm1 = vsmask.f32 7424  ;;  %vm3924_vm2 = vcmask 1043456  }
  0x14   : > { %v6830_v33 = vld [vmem:[%s9970_s1 + $0x34] sm:$0xf]  ;;  %v5790_v34 = vld [vmem:[%s9970_s1 + $0x3c] sm:$0xf0]  ;;  %v5820_v35 = vld [vmem:[%s9970_s1 + $0x68] sm:$0xf] }
  0x15   : > { %v6838_v36 = vld [vmem:[%s9970_s1 + $0x70] sm:$0xf0]  ;;  %v5793_v37 = vor.u32 %v6830_v33, %v5790_v34  ;;  %v6827_v39 = vld [vmem:[%s9970_s1 + $0x1c] sm:$0xf]  ;;  %v5778_v40 = vld [vmem:[%s9970_s1 + $0x24] sm:$0xf0] }
  0x16   : > { %7149 = vmatpush.bf16.msra.mxu1 %v5801_v8  ;;  %7150 = vmatpush.bf16.msra.mxu2 %v5801_v8  ;;  %v5821_v38 = vor.u32 %v6838_v36, %v5820_v35  ;;  %v5781_v41 = vor.u32 %v6827_v39, %v5778_v40  ;;  %v6824_v42 = vld [vmem:[%s9970_s1 + $0x4] sm:$0xf]  ;;  %v5766_v43 = vld [vmem:[%s9970_s1 + $0xc] sm:$0xf0]  ;;  %v7729_v44 = vld [vmem:[%s7675_s8 + $0x38] sm:$0xff]  ;;  %vm3875_vm3 = vcmask 195584  }
  0x17   : > { %522 = vmatpush.bf16.msra.mxu0 %v5801_v8  ;;  %7151 = vmatpush.bf16.msra.mxu3 %v5801_v8  ;;  %v6809_v45 = vld [vmem:[%s7675_s8 + $0x8] sm:$0xff]  ;;  %v5769_v46 = vor.u32 %v6824_v42, %v5766_v43  ;;  %v5808_v47 = vld [vmem:[%s9970_s1 + $0x50] sm:$0xf]  ;;  %v6835_v48 = vld [vmem:[%s9970_s1 + $0x58] sm:$0xf0]  ;;  %vm5272_vm10 = vcmask 1041409  }
  0x18   : > { %v5809_v49 = vor.u32 %v6835_v48, %v5808_v47  ;;  %v7744_v50 = vld [vmem:[%s7675_s8 + $0x40] sm:$0xff]  ;;  %v7747_v51 = vld [vmem:[%s7675_s8 + $0x10] sm:$0xff]  ;;  %v5796_v52 = vld [vmem:[%s9970_s1 + $0x38] sm:$0xf]  ;;  %vm5275_vm11 = vcmask 1042434   ;;  %vm5278_vm12 = vcmask 1043459  }
  0x19   : > { %v6832_v53 = vld [vmem:[%s9970_s1 + $0x40] sm:$0xf0]  ;;  %v5784_v55 = vld [vmem:[%s9970_s1 + $0x20] sm:$0xf]  ;;  %v6829_v56 = vld [vmem:[%s9970_s1 + $0x28] sm:$0xf0] }
  0x1a   : > { %7152 = vmatpush.bf16.msra.mxu1 %v5789_v11  ;;  %7153 = vmatpush.bf16.msra.mxu2 %v5789_v11  ;;  %v5797_v54 = vor.u32 %v6832_v53, %v5796_v52  ;;  %v5785_v57 = vor.u32 %v6829_v56, %v5784_v55  ;;  %v5772_v58 = vld [vmem:[%s9970_s1 + $0x8] sm:$0xf]  ;;  %v6826_v59 = vld [vmem:[%s9970_s1 + $0x10] sm:$0xf0]  ;;  %v6811_v62 = vld [vmem:[%s7675_s8 + $0x18] sm:$0xff]  ;;  %vm5281_vm13 = vcmask 1044484  }
  0x1b   : > { %523 = vmatpush.bf16.msra.mxu0 %v5789_v11  ;;  %7154 = vmatpush.bf16.msra.mxu3 %v5789_v11  ;;  %v5773_v60 = vor.u32 %v6826_v59, %v5772_v58  ;;  %v7773_v61 = vld [vmem:[%s7675_s8 + $0x48] sm:$0xff]  ;;  %v7782_v63 = vld [vmem:[%s7675_s8 + $0x58] sm:$0xff]  ;;  %v7787_v0 = vld [vmem:[%s7675_s8 + $0x50] sm:$0xff]  ;;  %vm5284_vm14 = vcmask 1045509   ;;  %vm5287_vm15 = vcmask 1046534   ;;  %s5696_s14 = sshll.u32 %s5689_s19, 2 }
  0x1c   : > { %v7790_v1 = vld [vmem:[%s7675_s8 + $0x20] sm:$0xff]  ;;  %v6969_v5 = vld [vmem:[%s9971_s2 + $0xf8] sm:$0xff]  ;;  %v6952_v8 = vld [vmem:[%s9971_s2 + $0x70] sm:$0xff]  ;;  %p223_p4 = scmp.lt.s32.totalorder %s5696_s14, 15 }
  0x1d   : > { %v7801_v3 = vld [vmem:[%s7675_s8 + $0x60] sm:$0xff]  ;;  %v6961_v7 = vld [vmem:[%s9971_s2 + $0xb8] sm:$0xff]  ;;  %v6943_v9 = vld [vmem:[%s9971_s2 + $0x28] sm:$0xff] }
  0x1e   : > { %7155 = vmatpush.bf16.msra.mxu1 %v5777_v14  ;;  %7156 = vmatpush.bf16.msra.mxu2 %v5777_v14  ;;  %v7828_v10 = vld [vmem:[%s7675_s8 + $0x68] sm:$0xff]  ;;  %v6942_v12 = vld [vmem:[%s9971_s2 + $0x20] sm:$0xff]  ;;  %v7842_v13 = vld [vmem:[%s7675_s8 + $0x70] sm:$0xff]  ;;  %s10002_s14 = smov (!%p223_p4, %s5696_s14), 15 }
  0x1f   : > { %524 = vmatpush.bf16.msra.mxu0 %v5777_v14  ;;  %7157 = vmatpush.bf16.msra.mxu3 %v5777_v14  ;;  %v6951_v11 = vld [vmem:[%s9971_s2 + $0x68] sm:$0xff]  ;;  %v6950_v14 = vld [vmem:[%s9971_s2 + $0x60] sm:$0xff]  ;;  %v6941_v15 = vld [vmem:[%s9971_s2 + $0x18] sm:$0xff] }
  0x20   : > { %v6968_v16 = vld [vmem:[%s9971_s2 + $0xf0] sm:$0xff]  ;;  %v6949_v18 = vld [vmem:[%s9971_s2 + $0x58] sm:$0xff]  ;;  %v6938_v33 = vld [vmem:[%s9971_s2] sm:$0xff] }
  0x21   : > { %v6960_v17 = vld [vmem:[%s9971_s2 + $0xb0] sm:$0xff]  ;;  %v7866_v19 = vld [vmem:[%s7675_s8 + $0x78] sm:$0xff]  ;;  %v6946_v34 = vld [vmem:[%s9971_s2 + $0x40] sm:$0xff]  ;;  %s5697_s8 = sshll.u32 %s10002_s14, 3 }
  0x22   : > { %7158 = vmatpush.bf16.msra.mxu1 %v5765_v21  ;;  %7159 = vmatpush.bf16.msra.mxu2 %v5765_v21  ;;  %v6948_v24 = vld [vmem:[%s9971_s2 + $0x50] sm:$0xff]  ;;  %v6967_v36 = vld [vmem:[%s9971_s2 + $0xe8] sm:$0xff]  ;;  %v6985_v55 = vld [vmem:[%s9971_s2 + $0x178] sm:$0xff]  ;;  %s9950_s17 = scalar_lea.vmem %s9974_s5, %s5697_s8 }
  0x23   : > { %525 = vmatpush.bf16.msra.mxu0 %v5765_v21  ;;  %7160 = vmatpush.bf16.msra.mxu3 %v5765_v21  ;;  %v6940_v21 = vld [vmem:[%s9971_s2 + $0x10] sm:$0xff]  ;;  %v6959_v43 = vld [vmem:[%s9971_s2 + $0xa8] sm:$0xff] }
  0x24   : > { %v7892_v30 = vld [vmem:[%s9973_s4] ss:$8 sm:$0x7] }
  0x25   : > { %5839 = vmatmul.msk.bf16.vlgmr.msra.gmra.mxu1 %vm469_vm0, %v7684_v26  ;;  %5840 = vmatmul.msk.bf16.vlgmr.msra.gmra.mxu2 %vm469_vm0, %v7687_v27  ;;  %v7905_v35 = vperm.slane %v7892_v30, 0 }
  0x26   : > { %609 = vmatpush.bf16.msrb.mxu1 %v5829_v22  ;;  %698 = vmatpush.bf16.msrb.mxu2 %v5833_v25 }
  0x27   : > { %5834 = vmatmul.msk.bf16.vlgmr.msra.gmra.mxu0 %vm469_vm0, %v7690_v28  ;;  %5845 = vmatmul.msk.bf16.vlgmr.msra.gmra.mxu3 %vm469_vm0, %v7782_v63 }
  0x28   : > { %2443 = vmatpush.bf16.msrb.mxu3 %v6945_v2  ;;  %2532 = vmatpush.bf16.msrb.mxu0 %v6953_v4 }
  0x2a   : > { %610 = vmatpush.bf16.msrb.mxu1 %v5817_v29  ;;  %699 = vmatpush.bf16.msrb.mxu2 %v5821_v38  ;;  %v6947_v29 = vld [vmem:[%s9971_s2 + $0x48] sm:$0xff]  ;;  %v7912_v38 = vperm.slane %v7892_v30, 1 }
  0x2c   : > { %2444 = vmatpush.bf16.msrb.mxu3 %v6944_v6  ;;  %2533 = vmatpush.bf16.msrb.mxu0 %v6952_v8 }
  0x2e   : > { %611 = vmatpush.bf16.msrb.mxu1 %v5805_v32  ;;  %700 = vmatpush.bf16.msrb.mxu2 %v5809_v49 }
  0x30   : > { %2445 = vmatpush.bf16.msrb.mxu3 %v6943_v9  ;;  %2534 = vmatpush.bf16.msrb.mxu0 %v6951_v11 }
  0x32   : > { %612 = vmatpush.bf16.msrb.mxu1 %v5793_v37  ;;  %701 = vmatpush.bf16.msrb.mxu2 %v5797_v54 }
  0x34   : > { %2446 = vmatpush.bf16.msrb.mxu3 %v6942_v12  ;;  %2535 = vmatpush.bf16.msrb.mxu0 %v6950_v14 }
  0x35   : > { %5841 = vmatmul.msk.bf16.gmra.mxu2 %vm469_vm0, %v7729_v44 }
  0x36   : > { %613 = vmatpush.bf16.msrb.mxu1 %v5781_v41  ;;  %702 = vmatpush.bf16.msrb.mxu2 %v5785_v57 }
  0x37   : > { %5835 = vmatmul.msk.bf16.gmra.mxu0 %vm469_vm0, %v6809_v45  ;;  %5846 = vmatmul.msk.bf16.gmra.mxu3 %vm469_vm0, %v7801_v3 }
  0x38   : > { %2447 = vmatpush.bf16.msrb.mxu3 %v6941_v15  ;;  %2536 = vmatpush.bf16.msrb.mxu0 %v6949_v18 }
  0x3a   : > { %614 = vmatpush.bf16.msrb.mxu1 %v5769_v46  ;;  %703 = vmatpush.bf16.msrb.mxu2 %v5773_v60 }
  0x3c   : > { %2448 = vmatpush.bf16.msrb.mxu3 %v6940_v21  ;;  %2537 = vmatpush.bf16.msrb.mxu0 %v6948_v24 }
  0x3d   : > { %5850 = vmatmul.msk.bf16.vlgmr.msrb.gmra.mxu1 %vm469_vm0, %v7690_v28 }
  0x3e   : > { %2710 = vmatpush.bf16.msra.mxu2 %v6969_v5  ;;  %2621 = vmatpush.bf16.msra.mxu1 %v6961_v7 }
  0x40   : > { %2538 = vmatpush.bf16.msrb.mxu0 %v6947_v29 }
  0x42   : > { %2711 = vmatpush.bf16.msra.mxu2 %v6968_v16  ;;  %2622 = vmatpush.bf16.msra.mxu1 %v6960_v17 }
  0x44   : > { %2539 = vmatpush.bf16.msrb.mxu0 %v6946_v34 }
  0x45   : > { %5842 = vmatmul.msk.bf16.gmra.mxu2 %vm469_vm0, %v7744_v50 }
  0x46   : > { %2712 = vmatpush.bf16.msra.mxu2 %v6967_v36  ;;  %2623 = vmatpush.bf16.msra.mxu1 %v6959_v43  ;;  %v6976_v36 = vld [vmem:[%s9971_s2 + $0x130] sm:$0xff] }
  0x47   : > { %5836 = vmatmul.msk.bf16.gmra.mxu0 %vm469_vm0, %v7747_v51  ;;  %5847 = vmatmul.msk.bf16.gmra.mxu3 %vm469_vm0, %v7828_v10 }
  0x48   : > { %2888 = vmatpush.bf16.msra.mxu0 %v6985_v55 }
  0x4d   : > { %5851 = vmatmul.msk.bf16.gmra.mxu1 %vm469_vm0, %v6809_v45 }
  0x55   : > { %5843 = vmatmul.msk.bf16.gmra.mxu2 %vm469_vm0, %v7773_v61 }
  0x57   : > { %5837 = vmatmul.msk.bf16.gmra.mxu0 %vm469_vm0, %v6811_v62  ;;  %5848 = vmatmul.msk.bf16.gmra.mxu3 %vm469_vm0, %v7842_v13 }
  0x5d   : > { %5852 = vmatmul.msk.bf16.gmra.mxu1 %vm469_vm0, %v7747_v51 }
  0x65   : > { %5844 = vmatmul.msk.bf16.gmra.mxu2 %vm469_vm0, %v7787_v0 }
  0x67   : > { %5838 = vmatmul.msk.bf16.gmra.mxu0 %vm469_vm0, %v7790_v1  ;;  %5849 = vmatmul.msk.bf16.gmra.mxu3 %vm469_vm0, %v7866_v19 }
  0x6d   : > { %5853 = vmatmul.msk.bf16.gmra.mxu1 %vm469_vm0, %v6811_v62 }
  0x75   : > { %5866 = vmatmul.msk.bf16.vlgmr.msrb.gmra.mxu2 %vm469_vm0, %v7690_v28  ;;  %v6939_v28 = vld [vmem:[%s9971_s2 + $0x8] sm:$0xff] }
  0x76   : > { %2449 = vmatpush.bf16.msrb.mxu3 %v6939_v28 }
  0x7a   : > { %2450 = vmatpush.bf16.msrb.mxu3 %v6938_v33 }
  0x7d   : > { %5854 = vmatmul.msk.bf16.gmra.mxu1 %vm469_vm0, %v7790_v1 }
  0x85   : > { %5867 = vmatmul.msk.bf16.gmra.mxu2 %vm469_vm0, %v6809_v45  ;;  %v6977_v45 = vld [vmem:[%s9971_s2 + $0x138] sm:$0xff] }
  0x86   : > { %2799 = vmatpush.bf16.msra.mxu3 %v6977_v45 }
  0x8a   : > { %2800 = vmatpush.bf16.msra.mxu3 %v6976_v36 }
  0x8d   : > { %5855 = vmatmul.msk.bf16.gmra.mxu1 %vm469_vm0, %v7684_v26 }
  0x95   : > { %5868 = vmatmul.msk.bf16.gmra.mxu2 %vm469_vm0, %v7747_v51 }
  0x9d   : > { %5856 = vmatmul.msk.bf16.gmra.mxu1 %vm469_vm0, %v7687_v27 }
  0xa2   : > { %v7873_v22 = vpop.f32.mrf.mxu1 }
  0xa4   : > { %v527_v20 = vpop.f32.mrf.mxu0 }
  0xa5   : > { %5869 = vmatmul.msk.bf16.gmra.mxu2 %vm469_vm0, %v6811_v62  ;;  %v528_v37 = vadd.f32 %v527_v20, %v7905_v35  ;;  %v6966_v20 = vld [vmem:[%s9971_s2 + $0xe0] sm:$0xff] }
  0xa6   : > { %2713 = vmatpush.bf16.msra.mxu2 %v6966_v20 }
  0xa7   : > { %7173 = vtanh.f32 %v528_v37 }
  0xa8   : > { %v7876_v23 = vpop.f32.mrf.mxu2 }
  0xaa   : > { %v7894_v31 = vpop.f32.mrf.mxu1 }
  0xac   : > { %v529_v25 = vpop.f32.mrf.mxu0 }
  0xad   : > { %5857 = vmatmul.msk.bf16.gmra.mxu1 %vm469_vm0, %v7729_v44  ;;  %v530_v46 = vadd.f32 %v529_v25, %v7905_v35  ;;  %v7174_v47 = vpop.eup %7173 }
  0xb0   : > { %v7896_v32 = vpop.f32.mrf.mxu2 }
  0xb4   : > { %v532_v39 = vpop.f32.mrf.mxu0 }
  0xb5   : > { %5870 = vmatmul.msk.bf16.gmra.mxu2 %vm469_vm0, %v7790_v1  ;;  %v533_v56 = vadd.f32 %v532_v39, %v7905_v35 }
  0xb8   : > { %v7917_v42 = vpop.f32.mrf.mxu2 }
  0xba   : > { %v616_v40 = vpop.f32.mrf.mxu1 }
  0xbb   : > { %v617_v41 = vadd.f32 %v616_v40, %v7912_v38 }
  0xbc   : > { %v534_v48 = vpop.f32.mrf.mxu0 }
  0xbd   : > { %7175 = vtanh.f32 %v617_v41  ;;  %5858 = vmatmul.msk.bf16.gmra.mxu1 %vm469_vm0, %v7744_v50  ;;  %v535_v4 = vadd.f32 %v534_v48, %v7905_v35 }
  0xbe   : > { %7177 = vtanh.f32 %v530_v46 }
  0xc0   : > { %v7929_v53 = vpop.f32.mrf.mxu2 }
  0xc2   : > { %v618_v49 = vpop.f32.mrf.mxu1 }
  0xc3   : > { %v7176_v51 = vpop.eup %7175  ;;  %v619_v52 = vadd.f32 %v618_v49, %v7912_v38 }
  0xc4   : > { %v883_v54 = vpack.c.bf16 %v7176_v51, %v7174_v47  ;;  %v7178_v57 = vpop.eup %7177  ;;  %v537_v1 = vpop.f32.mrf.mxu0 }
  0xc5   : > { %7179 = vtanh.f32 %v619_v52  ;;  %5871 = vmatmul.msk.bf16.gmra.mxu2 %vm469_vm0, %v7684_v26  ;;  %v538_v21 = vadd.f32 %v537_v1, %v7905_v35 }
  0xc6   : > { %947 = vst [vmem:[#allocation2] sm:$0xff] %v883_v54  ;;  %7181 = vtanh.f32 %v533_v56 }
  0xc8   : > { %v7938_v62 = vpop.f32.mrf.mxu2 }
  0xca   : > { %v621_v58 = vpop.f32.mrf.mxu1 }
  0xcb   : > { %v7180_v59 = vpop.eup %7179  ;;  %v622_v60 = vadd.f32 %v621_v58, %v7912_v38 }
  0xcc   : > { %v885_v2 = vpack.c.bf16 %v7180_v59, %v7178_v57  ;;  %v7182_v5 = vpop.eup %7181  ;;  %v539_v16 = vpop.f32.mrf.mxu0  ;;  %v6984_v57 = vld [vmem:[%s9971_s2 + $0x170] sm:$0xff] }
  0xcd   : > { %7183 = vtanh.f32 %v622_v60  ;;  %5859 = vmatmul.msk.bf16.gmra.mxu1 %vm469_vm0, %v7773_v61  ;;  %v5884_v11 = vld [vmem:[#allocation2] sm:$0xf]  ;;  %v6842_v14 = vld [vmem:[#allocation2 + $0x4] sm:$0xf]  ;;  %v540_v39 = vadd.f32 %v539_v16, %v7905_v35  ;;  %2889 = vmatpush.bf16.msra.mxu0 %v6984_v57 }
  0xce   : > { %949 = vst [vmem:[#allocation2 + $0xc] sm:$0xff] %v885_v2  ;;  %7185 = vtanh.f32 %v535_v4 }
  0xd0   : > { %v7944_v8 = vpop.f32.mrf.mxu2 }
  0xd2   : > { %v623_v26 = vpop.f32.mrf.mxu1 }
  0xd3   : > { %v7184_v6 = vpop.eup %7183  ;;  %v624_v7 = vadd.f32 %v623_v26, %v7912_v38 }
  0xd4   : > { %v887_v9 = vpack.c.bf16 %v7184_v6, %v7182_v5  ;;  %v7186_v24 = vpop.eup %7185  ;;  %v542_v37 = vpop.f32.mrf.mxu0 }
  0xd5   : > { %7187 = vtanh.f32 %v624_v7  ;;  %v6843_v12 = vld [vmem:[#allocation2 + $0x8] sm:$0xf0]  ;;  %v5886_v15 = vld [vmem:[#allocation2 + $0xc] sm:$0xf0]  ;;  %5872 = vmatmul.msk.bf16.gmra.mxu2 %vm469_vm0, %v7687_v27  ;;  %v6958_v27 = vld [vmem:[%s9971_s2 + $0xa0] sm:$0xff]  ;;  %v543_v56 = vadd.f32 %v542_v37, %v7905_v35 }
  0xd6   : > { %951 = vst [vmem:[#allocation2 + $0x18] sm:$0xff] %v887_v9  ;;  %v5885_v17 = vor.u32 %v6843_v12, %v5884_v11  ;;  %v5889_v18 = vor.u32 %v6842_v14, %v5886_v15  ;;  %7189 = vtanh.f32 %v538_v21  ;;  %2624 = vmatpush.bf16.msra.mxu1 %v6958_v27 }
  0xd8   : > { %2451 = vmatmul.bf16.vlgmr.msrb.gmra.mxu3 %v5885_v17  ;;  %2540 = vmatmul.bf16.vlgmr.msrb.gmra.mxu0 %v5889_v18  ;;  %v7953_v33 = vpop.f32.mrf.mxu2 }
  0xda   : > { %v626_v25 = vpop.f32.mrf.mxu1 }
  0xdb   : > { %v7188_v28 = vpop.eup %7187  ;;  %v627_v29 = vadd.f32 %v626_v25, %v7912_v38  ;;  %v6965_v25 = vld [vmem:[%s9971_s2 + $0xd8] sm:$0xff] }
  0xdc   : > { %v889_v34 = vpack.c.bf16 %v7188_v28, %v7186_v24  ;;  %v7190_v40 = vpop.eup %7189  ;;  %v544_v58 = vpop.f32.mrf.mxu0  ;;  %v7989_v28 = vperm.slane %v7892_v30, 2  ;;  %2714 = vmatpush.bf16.msra.mxu2 %v6965_v25  ;;  %v6975_v30 = vld [vmem:[%s9971_s2 + $0x128] sm:$0xff] }
  0xdd   : > { %7191 = vtanh.f32 %v627_v29  ;;  %5860 = vmatmul.msk.bf16.gmra.mxu1 %vm469_vm0, %v7787_v0  ;;  %v5896_v48 = vld [vmem:[#allocation2 + $0x18] sm:$0xf]  ;;  %v6845_v51 = vld [vmem:[#allocation2 + $0x1c] sm:$0xf]  ;;  %v7991_v29 = vpop.f32.mrf.mxu3  ;;  %2801 = vmatpush.bf16.msra.mxu3 %v6975_v30 }
  0xde   : > { %953 = vst [vmem:[#allocation2 + $0x24] sm:$0xff] %v889_v34  ;;  %7193 = vtanh.f32 %v540_v39 }
  0xe0   : > { %v7965_v46 = vpop.f32.mrf.mxu2 }
  0xe2   : > { %v628_v41 = vpop.f32.mrf.mxu1 }
  0xe3   : > { %v7192_v43 = vpop.eup %7191  ;;  %v629_v45 = vadd.f32 %v628_v41, %v7912_v38 }
  0xe4   : > { %v891_v47 = vpack.c.bf16 %v7192_v43, %v7190_v40  ;;  %v7194_v59 = vpop.eup %7193  ;;  %v547_v9 = vpop.f32.mrf.mxu0 }
  0xe5   : > { %7195 = vtanh.f32 %v629_v45  ;;  %v6846_v49 = vld [vmem:[#allocation2 + $0x20] sm:$0xf0]  ;;  %v5898_v52 = vld [vmem:[#allocation2 + $0x24] sm:$0xf0]  ;;  %5873 = vmatmul.msk.bf16.gmra.mxu2 %vm469_vm0, %v7729_v44  ;;  %v545_v44 = vadd.f32 %v544_v58, %v7905_v35  ;;  %v548_v24 = vadd.f32 %v547_v9, %v7905_v35 }
  0xe6   : > { %955 = vst [vmem:[#allocation2 + $0x30] sm:$0xff] %v891_v47  ;;  %v5897_v54 = vor.u32 %v6846_v49, %v5896_v48  ;;  %v5901_v55 = vor.u32 %v6845_v51, %v5898_v52  ;;  %7197 = vtanh.f32 %v543_v56 }
  0xe8   : > { %2456 = vmatmul.bf16.gmra.mxu3 %v5897_v54  ;;  %2545 = vmatmul.bf16.gmra.mxu0 %v5901_v55  ;;  %v7974_v4 = vpop.f32.mrf.mxu2  ;;  %v8005_v54 = vpop.f32.mrf.mxu3 }
  0xea   : > { %v631_v60 = vpop.f32.mrf.mxu1 }
  0xeb   : > { %v7196_v1 = vpop.eup %7195  ;;  %v632_v2 = vadd.f32 %v631_v60, %v7912_v38 }
  0xec   : > { %v893_v5 = vpack.c.bf16 %v7196_v1, %v7194_v59  ;;  %v7198_v26 = vpop.eup %7197  ;;  %v549_v43 = vpop.f32.mrf.mxu0 }
  0xed   : > { %7199 = vtanh.f32 %v632_v2  ;;  %5861 = vmatmul.msk.bf16.gmra.mxu1 %vm469_vm0, %v7782_v63  ;;  %v5908_v15 = vld [vmem:[#allocation2 + $0x30] sm:$0xf]  ;;  %v6848_v17 = vld [vmem:[#allocation2 + $0x34] sm:$0xf]  ;;  %v550_v45 = vadd.f32 %v549_v43, %v7905_v35 }
  0xee   : > { %957 = vst [vmem:[#allocation2 + $0x3c] sm:$0xff] %v893_v5  ;;  %7201 = vtanh.f32 %v545_v44 }
  0xf0   : > { %v7980_v12 = vpop.f32.mrf.mxu2 }
  0xf2   : > { %v633_v6 = vpop.f32.mrf.mxu1 }
  0xf3   : > { %v7200_v7 = vpop.eup %7199  ;;  %v634_v11 = vadd.f32 %v633_v6, %v7912_v38  ;;  %v553_v6 = vadd.f32 %v7873_v22, %v7905_v35  ;;  %v555_v22 = vadd.f32 %v7894_v31, %v7905_v35 }
  0xf4   : > { %v895_v14 = vpack.c.bf16 %v7200_v7, %v7198_v26  ;;  %v7202_v34 = vpop.eup %7201  ;;  %v6983_v26 = vld [vmem:[%s9971_s2 + $0x168] sm:$0xff] }
  0xf5   : > { %7203 = vtanh.f32 %v634_v11  ;;  %v6849_v16 = vld [vmem:[#allocation2 + $0x38] sm:$0xf0]  ;;  %v5910_v18 = vld [vmem:[#allocation2 + $0x3c] sm:$0xf0]  ;;  %5874 = vmatmul.msk.bf16.gmra.mxu2 %vm469_vm0, %v7744_v50  ;;  %2890 = vmatpush.bf16.msra.mxu0 %v6983_v26 }
  0xf6   : > { %959 = vst [vmem:[#allocation2 + $0x48] sm:$0xff] %v895_v14  ;;  %v5909_v20 = vor.u32 %v6849_v16, %v5908_v15  ;;  %v5913_v21 = vor.u32 %v6848_v17, %v5910_v18  ;;  %7205 = vtanh.f32 %v548_v24  ;;  %v6957_v50 = vld [vmem:[%s9971_s2 + $0x98] sm:$0xff] }
  0xf7   : > { %2625 = vmatpush.bf16.msra.mxu1 %v6957_v50 }
  0xf8   : > { %2461 = vmatmul.bf16.gmra.mxu3 %v5909_v20  ;;  %2550 = vmatmul.bf16.gmra.mxu0 %v5913_v21  ;;  %v705_v39 = vpop.f32.mrf.mxu2  ;;  %v6956_v21 = vld [vmem:[%s9971_s2 + $0x90] sm:$0xff] }
  0xf9   : > { %v706_v41 = vadd.f32 %v705_v39, %v7989_v28 }
  0xfa   : > { %v636_v27 = vpop.f32.mrf.mxu1 }
  0xfb   : > { %v7204_v36 = vpop.eup %7203  ;;  %v637_v37 = vadd.f32 %v636_v27, %v7912_v38  ;;  %2626 = vmatpush.bf16.msra.mxu1 %v6956_v21 }
  0xfc   : > { %v897_v40 = vpack.c.bf16 %v7204_v36, %v7202_v34  ;;  %v7206_v47 = vpop.eup %7205 }
  0xfd   : > { %7207 = vtanh.f32 %v637_v37  ;;  %5862 = vmatmul.msk.bf16.gmra.mxu1 %vm469_vm0, %v7801_v3  ;;  %v5920_v58 = vld [vmem:[#allocation2 + $0x48] sm:$0xf]  ;;  %v6851_v1 = vld [vmem:[#allocation2 + $0x4c] sm:$0xf] }
  0xfe   : > { %961 = vst [vmem:[#allocation2 + $0x54] sm:$0xff] %v897_v40  ;;  %7209 = vtanh.f32 %v706_v41 }
  0xff   : > { %7211 = vtanh.f32 %v550_v45  ;;  %v6955_v45 = vld [vmem:[%s9971_s2 + $0x88] sm:$0xff] }
 0x100   : > { %v707_v52 = vpop.f32.mrf.mxu2  ;;  %2627 = vmatpush.bf16.msra.mxu1 %v6955_v45 }
 0x101   : > { %v708_v57 = vadd.f32 %v707_v52, %v7989_v28  ;;  %v558_v52 = vadd.f32 %v7876_v23, %v7905_v35 }
 0x102   : > { %v638_v48 = vpop.f32.mrf.mxu1 }
 0x103   : > { %v7208_v49 = vpop.eup %7207  ;;  %v639_v51 = vadd.f32 %v638_v48, %v7912_v38 }
 0x104   : > { %v7210_v55 = vpop.eup %7209  ;;  %v899_v56 = vpack.c.bf16 %v7208_v49, %v7206_v47 }
 0x105   : > { %v884_v59 = vpack.c.bf16 %v7210_v55, %v7210_v55  ;;  %7213 = vtanh.f32 %v639_v51  ;;  %v6852_v60 = vld [vmem:[#allocation2 + $0x50] sm:$0xf0]  ;;  %v5922_v2 = vld [vmem:[#allocation2 + $0x54] sm:$0xf0]  ;;  %5875 = vmatmul.msk.bf16.gmra.mxu2 %vm469_vm0, %v7773_v61  ;;  %v7212_v7 = vpop.eup %7211  ;;  %v8019_v61 = vpop.f32.mrf.mxu3  ;;  %v6954_v55 = vld [vmem:[%s9971_s2 + $0x80] sm:$0xff] }
 0x106   : > { %963 = vst [vmem:[#allocation2 + $0x60] sm:$0xff] %v899_v56  ;;  %7215 = vtanh.f32 %v708_v57  ;;  %v5921_v5 = vor.u32 %v6852_v60, %v5920_v58  ;;  %v5925_v44 = vor.u32 %v6851_v1, %v5922_v2  ;;  %v6964_v51 = vld [vmem:[%s9971_s2 + $0xd0] sm:$0xff]  ;;  %2628 = vmatpush.bf16.msra.mxu1 %v6954_v55 }
 0x107   : > { %948 = vst [vmem:[#allocation2 + $0x8] sm:$0xf] %v884_v59  ;;  %7217 = vtanh.f32 %v553_v6  ;;  %2715 = vmatpush.bf16.msra.mxu2 %v6964_v51 }
 0x108   : > { %2466 = vmatmul.bf16.gmra.mxu3 %v5921_v5  ;;  %2555 = vmatmul.bf16.gmra.mxu0 %v5925_v44  ;;  %v710_v15 = vpop.f32.mrf.mxu2  ;;  %v6974_v5 = vld [vmem:[%s9971_s2 + $0x120] sm:$0xff]  ;;  %v560_v44 = vadd.f32 %v7896_v32, %v7905_v35 }
 0x109   : > { %v711_v18 = vadd.f32 %v710_v15, %v7989_v28  ;;  %2802 = vmatpush.bf16.msra.mxu3 %v6974_v5  ;;  %v6963_v5 = vld [vmem:[%s9971_s2 + $0xc8] sm:$0xff] }
 0x10a   : > { %v641_v9 = vpop.f32.mrf.mxu1 }
 0x10b   : > { %v7214_v11 = vpop.eup %7213  ;;  %v642_v14 = vadd.f32 %v641_v9, %v7912_v38  ;;  %2716 = vmatpush.bf16.msra.mxu2 %v6963_v5 }
 0x10c   : > { %v7216_v16 = vpop.eup %7215  ;;  %v901_v17 = vpack.c.bf16 %v7214_v11, %v7212_v7 }
 0x10d   : > { %v886_v20 = vpack.c.bf16 %v7216_v16, %v7216_v16  ;;  %7219 = vtanh.f32 %v642_v14  ;;  %5863 = vmatmul.msk.bf16.gmra.mxu1 %vm469_vm0, %v7828_v10  ;;  %v7218_v24 = vpop.eup %7217  ;;  %v5932_v41 = vld [vmem:[#allocation2 + $0x60] sm:$0xf]  ;;  %v6854_v43 = vld [vmem:[#allocation2 + $0x64] sm:$0xf]  ;;  %v8031_v49 = vpop.f32.mrf.mxu3 }
 0x10e   : > { %965 = vst [vmem:[#allocation2 + $0x6c] sm:$0xff] %v901_v17  ;;  %7221 = vtanh.f32 %v711_v18 }
 0x10f   : > { %950 = vst [vmem:[#allocation2 + $0x14] sm:$0xf] %v886_v20  ;;  %7223 = vtanh.f32 %v555_v22 }
 0x110   : > { %v712_v36 = vpop.f32.mrf.mxu2 }
 0x111   : > { %v713_v40 = vadd.f32 %v712_v36, %v7989_v28 }
 0x112   : > { %v643_v25 = vpop.f32.mrf.mxu1 }
 0x113   : > { %v7220_v34 = vpop.eup %7219  ;;  %v644_v27 = vadd.f32 %v643_v25, %v7912_v38 }
 0x114   : > { %v7222_v37 = vpop.eup %7221  ;;  %v903_v39 = vpack.c.bf16 %v7220_v34, %v7218_v24  ;;  %v6982_v34 = vld [vmem:[%s9971_s2 + $0x160] sm:$0xff] }
 0x115   : > { %v888_v50 = vpack.c.bf16 %v7222_v37, %v7222_v37  ;;  %7225 = vtanh.f32 %v644_v27  ;;  %v6855_v31 = vld [vmem:[#allocation2 + $0x68] sm:$0xf0]  ;;  %v5934_v30 = vld [vmem:[#allocation2 + $0x6c] sm:$0xf0]  ;;  %5876 = vmatmul.msk.bf16.gmra.mxu2 %vm469_vm0, %v7787_v0  ;;  %v7224_v56 = vpop.eup %7223  ;;  %v8052_v26 = vpop.f32.mrf.mxu3  ;;  %v563_v27 = vadd.f32 %v7917_v42, %v7905_v35  ;;  %2891 = vmatpush.bf16.msra.mxu0 %v6982_v34 }
 0x116   : > { %967 = vst [vmem:[#allocation2 + $0x78] sm:$0xff] %v903_v39  ;;  %7227 = vtanh.f32 %v713_v40  ;;  %v5933_v47 = vor.u32 %v6855_v31, %v5932_v41  ;;  %v5937_v48 = vor.u32 %v6854_v43, %v5934_v30 }
 0x117   : > { %952 = vst [vmem:[#allocation2 + $0x20] sm:$0xf] %v888_v50  ;;  %7229 = vtanh.f32 %v558_v52 }
 0x118   : > { %2471 = vmatmul.bf16.gmra.mxu3 %v5933_v47  ;;  %2560 = vmatmul.bf16.gmra.mxu0 %v5937_v48  ;;  %v715_v60 = vpop.f32.mrf.mxu2 }
 0x119   : > { %v716_v2 = vadd.f32 %v715_v60, %v7989_v28 }
 0x11a   : > { %v646_v57 = vpop.f32.mrf.mxu1 }
 0x11b   : > { %v7226_v58 = vpop.eup %7225  ;;  %v647_v59 = vadd.f32 %v646_v57, %v7912_v38 }
 0x11c   : > { %v7228_v1 = vpop.eup %7227  ;;  %v905_v23 = vpack.c.bf16 %v7226_v58, %v7224_v56 }
 0x11d   : > { %v890_v0 = vpack.c.bf16 %v7228_v1, %v7228_v1  ;;  %7231 = vtanh.f32 %v647_v59  ;;  %5864 = vmatmul.msk.bf16.gmra.mxu1 %vm469_vm0, %v7842_v13  ;;  %v7230_v6 = vpop.eup %7229  ;;  %v5944_v18 = vld [vmem:[#allocation2 + $0x78] sm:$0xf]  ;;  %v6857_v21 = vld [vmem:[#allocation2 + $0x7c] sm:$0xf]  ;;  %v8064_v41 = vpop.f32.mrf.mxu3 }
 0x11e   : > { %969 = vst [vmem:[#allocation2 + $0x84] sm:$0xff] %v905_v23  ;;  %7233 = vtanh.f32 %v716_v2 }
 0x11f   : > { %954 = vst [vmem:[#allocation2 + $0x2c] sm:$0xf] %v890_v0  ;;  %7235 = vtanh.f32 %v560_v44  ;;  %v568_v44 = vadd.f32 %v7938_v62, %v7905_v35 }
 0x120   : > { %v717_v14 = vpop.f32.mrf.mxu2 }
 0x121   : > { %v718_v17 = vadd.f32 %v717_v14, %v7989_v28 }
 0x122   : > { %v648_v7 = vpop.f32.mrf.mxu1 }
 0x123   : > { %v7232_v9 = vpop.eup %7231  ;;  %v649_v11 = vadd.f32 %v648_v7, %v7912_v38  ;;  %v6844_v7 = vld [vmem:[#allocation2 + $0x10] sm:$0xf0] }
 0x124   : > { %v7234_v15 = vpop.eup %7233  ;;  %v907_v16 = vpack.c.bf16 %v7232_v9, %v7230_v6  ;;  %v5892_v6 = vld [vmem:[#allocation2 + $0x8] sm:$0xf] }
 0x125   : > { %v892_v20 = vpack.c.bf16 %v7234_v15, %v7234_v15  ;;  %7237 = vtanh.f32 %v649_v11  ;;  %v6858_v22 = vld [vmem:[#allocation2 + $0x80] sm:$0xf0]  ;;  %v5946_v32 = vld [vmem:[#allocation2 + $0x84] sm:$0xf0]  ;;  %5877 = vmatmul.msk.bf16.gmra.mxu2 %vm469_vm0, %v7782_v63  ;;  %v7236_v36 = vpop.eup %7235  ;;  %v565_v63 = vadd.f32 %v7929_v53, %v7905_v35  ;;  %v8073_v60 = vpop.f32.mrf.mxu3 }
 0x126   : > { %971 = vst [vmem:[#allocation2 + $0x90] sm:$0xff] %v907_v16  ;;  %7239 = vtanh.f32 %v718_v17  ;;  %v5945_v24 = vor.u32 %v6858_v22, %v5944_v18  ;;  %v5949_v25 = vor.u32 %v6857_v21, %v5946_v32  ;;  %v5893_v17 = vor.u32 %v6844_v7, %v5892_v6  ;;  %v6973_v21 = vld [vmem:[%s9971_s2 + $0x118] sm:$0xff] }
 0x127   : > { %956 = vst [vmem:[#allocation2 + $0x38] sm:$0xf] %v892_v20  ;;  %7241 = vtanh.f32 %v563_v27  ;;  %v570_v32 = vadd.f32 %v7944_v8, %v7905_v35  ;;  %2803 = vmatpush.bf16.msra.mxu3 %v6973_v21 }
 0x128   : > { %2476 = vmatmul.bf16.gmra.mxu3 %v5945_v24  ;;  %2565 = vmatmul.bf16.gmra.mxu0 %v5949_v25  ;;  %v720_v43 = vpop.f32.mrf.mxu2 }
 0x129   : > { %v721_v30 = vadd.f32 %v720_v43, %v7989_v28 }
 0x12a   : > { %v651_v37 = vpop.f32.mrf.mxu1 }
 0x12b   : > { %v7238_v39 = vpop.eup %7237  ;;  %v652_v40 = vadd.f32 %v651_v37, %v7912_v38 }
 0x12c   : > { %v7240_v50 = vpop.eup %7239  ;;  %v909_v31 = vpack.c.bf16 %v7238_v39, %v7236_v36 }
 0x12d   : > { %v894_v42 = vpack.c.bf16 %v7240_v50, %v7240_v50  ;;  %7243 = vtanh.f32 %v652_v40  ;;  %5865 = vmatmul.msk.bf16.gmra.mxu1 %vm469_vm0, %v7866_v19  ;;  %v7242_v45 = vpop.eup %7241  ;;  %v5956_v58 = vld [vmem:[#allocation2 + $0x90] sm:$0xf]  ;;  %v6860_v23 = vld [vmem:[#allocation2 + $0x94] sm:$0xf] }
 0x12e   : > { %973 = vst [vmem:[#allocation2 + $0x9c] sm:$0xff] %v909_v31  ;;  %7245 = vtanh.f32 %v721_v30 }
 0x12f   : > { %958 = vst [vmem:[#allocation2 + $0x44] sm:$0xf] %v894_v42  ;;  %7247 = vtanh.f32 %v565_v63 }
 0x130   : > { %v722_v52 = vpop.f32.mrf.mxu2 }
 0x131   : > { %v723_v57 = vadd.f32 %v722_v52, %v7989_v28 }
 0x132   : > { %v653_v47 = vpop.f32.mrf.mxu1 }
 0x133   : > { %v7244_v48 = vpop.eup %7243  ;;  %v654_v51 = vadd.f32 %v653_v47, %v7912_v38  ;;  %v573_v47 = vadd.f32 %v7953_v33, %v7905_v35 }
 0x134   : > { %v7246_v55 = vpop.eup %7245  ;;  %v911_v56 = vpack.c.bf16 %v7244_v48, %v7242_v45  ;;  %v6981_v45 = vld [vmem:[%s9971_s2 + $0x158] sm:$0xff]  ;;  %v5904_v48 = vld [vmem:[#allocation2 + $0x20] sm:$0xf] }
 0x135   : > { %v896_v59 = vpack.c.bf16 %v7246_v55, %v7246_v55  ;;  %7249 = vtanh.f32 %v654_v51  ;;  %v6861_v1 = vld [vmem:[#allocation2 + $0x98] sm:$0xf0]  ;;  %v5958_v2 = vld [vmem:[#allocation2 + $0x9c] sm:$0xf0]  ;;  %5878 = vmatmul.msk.bf16.gmra.mxu2 %vm469_vm0, %v7801_v3  ;;  %v7248_v9 = vpop.eup %7247  ;;  %v8084_v3 = vpop.f32.mrf.mxu3  ;;  %v6847_v51 = vld [vmem:[#allocation2 + $0x28] sm:$0xf0]  ;;  %2892 = vmatpush.bf16.msra.mxu0 %v6981_v45 }
 0x136   : > { %975 = vst [vmem:[#allocation2 + $0xa8] sm:$0xff] %v911_v56  ;;  %7251 = vtanh.f32 %v723_v57  ;;  %v5957_v53 = vor.u32 %v6861_v1, %v5956_v58  ;;  %v5961_v0 = vor.u32 %v6860_v23, %v5958_v2  ;;  %v5905_v1 = vor.u32 %v6847_v51, %v5904_v48 }
 0x137   : > { %960 = vst [vmem:[#allocation2 + $0x50] sm:$0xf] %v896_v59  ;;  %7253 = vtanh.f32 %v568_v44  ;;  %v580_v48 = vadd.f32 %v7980_v12, %v7905_v35 }
 0x138   : > { %2481 = vmatmul.bf16.gmra.mxu3 %v5957_v53  ;;  %2570 = vmatmul.bf16.gmra.mxu0 %v5961_v0  ;;  %v725_v16 = vpop.f32.mrf.mxu2  ;;  %v575_v53 = vadd.f32 %v7965_v46, %v7905_v35 }
 0x139   : > { %v726_v62 = vadd.f32 %v725_v16, %v7989_v28 }
 0x13a   : > { %v656_v11 = vpop.f32.mrf.mxu1 }
 0x13b   : > { %v7250_v14 = vpop.eup %7249  ;;  %v657_v15 = vadd.f32 %v656_v11, %v7912_v38 }
 0x13c   : > { %v7252_v18 = vpop.eup %7251  ;;  %v913_v20 = vpack.c.bf16 %v7250_v14, %v7248_v9 }
 0x13d   : > { %v898_v22 = vpack.c.bf16 %v7252_v18, %v7252_v18  ;;  %7255 = vtanh.f32 %v657_v15  ;;  %2629 = vmatmul.bf16.vlgmr.msra.gmra.mxu1 %v5893_v17  ;;  %v7254_v24 = vpop.eup %7253  ;;  %v5968_v43 = vld [vmem:[#allocation2 + $0xa8] sm:$0xf]  ;;  %v6863_v30 = vld [vmem:[#allocation2 + $0xac] sm:$0xf]  ;;  %v8100_v52 = vpop.f32.mrf.mxu3  ;;  %v6962_v17 = vld [vmem:[%s9971_s2 + $0xc0] sm:$0xff] }
 0x13e   : > { %977 = vst [vmem:[#allocation2 + $0xb4] sm:$0xff] %v913_v20  ;;  %7257 = vtanh.f32 %v726_v62  ;;  %2717 = vmatpush.bf16.msra.mxu2 %v6962_v17  ;;  %v583_v17 = vadd.f32 %v7991_v29, %v7905_v35 }
 0x13f   : > { %962 = vst [vmem:[#allocation2 + $0x5c] sm:$0xf] %v898_v22  ;;  %7259 = vtanh.f32 %v570_v32 }
 0x140   : > { %v727_v36 = vpop.f32.mrf.mxu2 }
 0x141   : > { %v728_v40 = vadd.f32 %v727_v36, %v7989_v28 }
 0x142   : > { %v658_v25 = vpop.f32.mrf.mxu1 }
 0x143   : > { %v7256_v34 = vpop.eup %7255  ;;  %v659_v27 = vadd.f32 %v658_v25, %v7912_v38  ;;  %v5916_v25 = vld [vmem:[#allocation2 + $0x38] sm:$0xf] }
 0x144   : > { %v7258_v37 = vpop.eup %7257  ;;  %v915_v39 = vpack.c.bf16 %v7256_v34, %v7254_v24  ;;  %v578_v24 = vadd.f32 %v7974_v4, %v7905_v35  ;;  %v6850_v34 = vld [vmem:[#allocation2 + $0x40] sm:$0xf0] }
 0x145   : > { %v900_v50 = vpack.c.bf16 %v7258_v37, %v7258_v37  ;;  %7261 = vtanh.f32 %v659_v27  ;;  %v6864_v31 = vld [vmem:[#allocation2 + $0xb0] sm:$0xf0]  ;;  %v5970_v42 = vld [vmem:[#allocation2 + $0xb4] sm:$0xf0]  ;;  %5879 = vmatmul.msk.bf16.gmra.mxu2 %vm469_vm0, %v7828_v10  ;;  %v7260_v55 = vpop.eup %7259  ;;  %v8106_v6 = vpop.f32.mrf.mxu3  ;;  %v8120_v27 = vld [vmem:[%s9973_s4 + $0x1] ss:$0 sm:$0xff]  ;;  %v5917_v4 = vor.u32 %v6850_v34, %v5916_v25 }
 0x146   : > { %979 = vst [vmem:[#allocation2 + $0xc0] sm:$0xff] %v915_v39  ;;  %7263 = vtanh.f32 %v728_v40  ;;  %v5969_v8 = vor.u32 %v6864_v31, %v5968_v43  ;;  %v5973_v63 = vor.u32 %v6863_v30, %v5970_v42 }
 0x147   : > { %964 = vst [vmem:[#allocation2 + $0x68] sm:$0xf] %v900_v50  ;;  %7265 = vtanh.f32 %v573_v47  ;;  %v6972_v47 = vld [vmem:[%s9971_s2 + $0x110] sm:$0xff] }
 0x148   : > { %2486 = vmatmul.bf16.gmra.mxu3 %v5969_v8  ;;  %2575 = vmatmul.bf16.gmra.mxu0 %v5973_v63  ;;  %v730_v59 = vpop.f32.mrf.mxu2 }
 0x149   : > { %v731_v2 = vadd.f32 %v730_v59, %v7989_v28  ;;  %2804 = vmatpush.bf16.msra.mxu3 %v6972_v47 }
 0x14a   : > { %v661_v56 = vpop.f32.mrf.mxu1 }
 0x14b   : > { %v7262_v57 = vpop.eup %7261  ;;  %v662_v58 = vadd.f32 %v661_v56, %v7912_v38 }
 0x14c   : > { %v7264_v23 = vpop.eup %7263  ;;  %v917_v33 = vpack.c.bf16 %v7262_v57, %v7260_v55 }
 0x14d   : > { %v902_v10 = vpack.c.bf16 %v7264_v23, %v7264_v23  ;;  %7267 = vtanh.f32 %v662_v58  ;;  %2634 = vmatmul.bf16.gmra.mxu1 %v5905_v1  ;;  %v7266_v0 = vpop.eup %7265  ;;  %v5980_v16 = vld [vmem:[#allocation2 + $0xc0] sm:$0xf]  ;;  %v6866_v20 = vld [vmem:[#allocation2 + $0xc4] sm:$0xf] }
 0x14e   : > { %981 = vst [vmem:[#allocation2 + $0xcc] sm:$0xff] %v917_v33  ;;  %7269 = vtanh.f32 %v731_v2 }
 0x14f   : > { %966 = vst [vmem:[#allocation2 + $0x74] sm:$0xf] %v902_v10  ;;  %7271 = vtanh.f32 %v575_v53 }
 0x150   : > { %v732_v9 = vpop.f32.mrf.mxu2 }
 0x151   : > { %v733_v15 = vadd.f32 %v732_v9, %v7989_v28 }
 0x152   : > { %v663_v5 = vpop.f32.mrf.mxu1 }
 0x153   : > { %v7268_v44 = vpop.eup %7267  ;;  %v664_v7 = vadd.f32 %v663_v5, %v7912_v38 }
 0x154   : > { %v7270_v11 = vpop.eup %7269  ;;  %v919_v14 = vpack.c.bf16 %v7268_v44, %v7266_v0 }
 0x155   : > { %v904_v18 = vpack.c.bf16 %v7270_v11, %v7270_v11  ;;  %7273 = vtanh.f32 %v664_v7  ;;  %v6867_v46 = vld [vmem:[#allocation2 + $0xc8] sm:$0xf0]  ;;  %v5982_v62 = vld [vmem:[#allocation2 + $0xcc] sm:$0xf0]  ;;  %v2541_v22 = vpop.f32.mrf.mxu0  ;;  %5880 = vmatmul.msk.bf16.gmra.mxu2 %vm469_vm0, %v7842_v13  ;;  %v7272_v36 = vpop.eup %7271 }
 0x156   : > { %983 = vst [vmem:[#allocation2 + $0xd8] sm:$0xff] %v919_v14  ;;  %7275 = vtanh.f32 %v733_v15  ;;  %v5981_v21 = vor.u32 %v6867_v46, %v5980_v16  ;;  %v5985_v32 = vor.u32 %v6866_v20, %v5982_v62  ;;  %v6891_v11 = vld [vmem:[#allocation2 + $0x8] sm:$0xf0]  ;;  %v6076_v15 = vld [vmem:[#allocation2] sm:$0xf]  ;;  %v6980_v16 = vld [vmem:[%s9971_s2 + $0x150] sm:$0xff] }
 0x157   : > { %968 = vst [vmem:[#allocation2 + $0x80] sm:$0xf] %v904_v18  ;;  %7277 = vtanh.f32 %v578_v24  ;;  %v5928_v18 = vld [vmem:[#allocation2 + $0x50] sm:$0xf]  ;;  %v6853_v46 = vld [vmem:[#allocation2 + $0x58] sm:$0xf0]  ;;  %v6077_v62 = vor.u32 %v6891_v11, %v6076_v15  ;;  %2893 = vmatpush.bf16.msra.mxu0 %v6980_v16  ;;  %v588_v16 = vadd.f32 %v8019_v61, %v7905_v35 }
 0x158   : > { %2491 = vmatmul.bf16.gmra.mxu3 %v5981_v21  ;;  %2580 = vmatmul.bf16.gmra.mxu0 %v5985_v32  ;;  %v735_v43 = vpop.f32.mrf.mxu2  ;;  %v6894_v20 = vld [vmem:[#allocation2 + $0x20] sm:$0xf0]  ;;  %v6088_v32 = vld [vmem:[#allocation2 + $0x18] sm:$0xf] }
 0x159   : > { %v736_v30 = vadd.f32 %v735_v43, %v7989_v28  ;;  %v8145_v29 = vor.u32 %v6894_v20, %v6088_v32  ;;  %v7033_v15 = vld [vmem:[%s9971_s2 + $0x1f8] sm:$0xff] }
 0x15a   : > { %v666_v37 = vpop.f32.mrf.mxu1  ;;  %3684 = vmatpush.bf16.msrb.mxu2 %v7033_v15  ;;  %v593_v15 = vadd.f32 %v8052_v26, %v7905_v35 }
 0x15b   : > { %v7274_v39 = vpop.eup %7273  ;;  %v667_v40 = vadd.f32 %v666_v37, %v7912_v38  ;;  %v2452_v50 = vpop.f32.mrf.mxu3  ;;  %v5929_v37 = vor.u32 %v6853_v46, %v5928_v18  ;;  %v6856_v18 = vld [vmem:[#allocation2 + $0x70] sm:$0xf0]  ;;  %v6897_v46 = vld [vmem:[#allocation2 + $0x38] sm:$0xf0] }
 0x15c   : > { %v7276_v31 = vpop.eup %7275  ;;  %v921_v13 = vpack.c.bf16 %v7274_v39, %v7272_v36  ;;  %v2453_v42 = vadd.f32 %v2452_v50, %v8120_v27 }
 0x15d   : > { %v906_v8 = vpack.c.bf16 %v7276_v31, %v7276_v31  ;;  %7279 = vtanh.f32 %v667_v40  ;;  %2639 = vmatmul.bf16.gmra.mxu1 %v5917_v4  ;;  %v2543_v63 = vpop.f32.mrf.mxu0  ;;  %v7278_v51 = vpop.eup %7277  ;;  %v5992_v10 = vld [vmem:[#allocation2 + $0xd8] sm:$0xf]  ;;  %v6869_v12 = vld [vmem:[#allocation2 + $0xdc] sm:$0xf]  ;;  %v1617_v4 = vshll.u32 %v6077_v62, 16 }
 0x15e   : > { %985 = vst [vmem:[#allocation2 + $0xe4] sm:$0xff] %v921_v13  ;;  %7281 = vtanh.f32 %v736_v30  ;;  %v8125_v45 = vadd.f32 %v2541_v22, %v2453_v42  ;;  %v1622_v30 = vshll.u32 %v8145_v29, 16  ;;  %v585_v42 = vadd.f32 %v8005_v54, %v7905_v35 }
 0x15f   : > { %970 = vst [vmem:[#allocation2 + $0x8c] sm:$0xf] %v906_v8  ;;  %7283 = vtanh.f32 %v580_v48  ;;  %v1619_v8 = vrot.slane %v1617_v4, 1 }
 0x160   : > { %v737_v58 = vpop.f32.mrf.mxu2 }
 0x161   : > { %v738_v33 = vadd.f32 %v737_v58, %v7989_v28  ;;  %v8155_v58 = vrot.slane %v1622_v30, 1  ;;  %v6971_v30 = vld [vmem:[%s9971_s2 + $0x108] sm:$0xff] }
 0x162   : > { %v668_v55 = vpop.f32.mrf.mxu1  ;;  %2805 = vmatpush.bf16.msra.mxu3 %v6971_v30 }
 0x163   : > { %v7280_v56 = vpop.eup %7279  ;;  %v669_v57 = vadd.f32 %v668_v55, %v7912_v38  ;;  %v2454_v59 = vpop.f32.mrf.mxu3 }
 0x164   : > { %v7282_v1 = vpop.eup %7281  ;;  %v923_v23 = vpack.c.bf16 %v7280_v56, %v7278_v51  ;;  %v2455_v2 = vadd.f32 %v2454_v59, %v8120_v27 }
 0x165   : > { %v908_v53 = vpack.c.bf16 %v7282_v1, %v7282_v1  ;;  %7285 = vtanh.f32 %v669_v57  ;;  %v6870_v0 = vld [vmem:[#allocation2 + $0xe0] sm:$0xf0]  ;;  %v5994_v5 = vld [vmem:[#allocation2 + $0xe4] sm:$0xf0]  ;;  %v2546_v44 = vpop.f32.mrf.mxu0  ;;  %5881 = vmatmul.msk.bf16.gmra.mxu2 %vm469_vm0, %v7866_v19  ;;  %v7284_v22 = vpop.eup %7283  ;;  %v1615_v57 = vshrl.u32 %v6077_v62, 16  ;;  %vm5290_vm0 = vcmask 1047559  }
 0x166   : > { %987 = vst [vmem:[#allocation2 + $0xf0] sm:$0xff] %v923_v23  ;;  %7287 = vtanh.f32 %v738_v33  ;;  %v5993_v7 = vor.u32 %v6870_v0, %v5992_v10  ;;  %v5997_v9 = vor.u32 %v6869_v12, %v5994_v5  ;;  %v8135_v14 = vadd.f32 %v2543_v63, %v2455_v2 }
 0x167   : > { %972 = vst [vmem:[#allocation2 + $0x98] sm:$0xf] %v908_v53  ;;  %7289 = vtanh.f32 %v583_v17  ;;  %v1620_v12 = vor.u32 %v1619_v8, %v1615_v57  ;;  %v5940_v17 = vld [vmem:[#allocation2 + $0x68] sm:$0xf] }
 0x168   : > { %2496 = vmatmul.bf16.gmra.mxu3 %v5993_v7  ;;  %2585 = vmatmul.bf16.gmra.mxu0 %v5997_v9  ;;  %v740_v34 = vpop.f32.mrf.mxu2 }
 0x169   : > { %v741_v40 = vadd.f32 %v740_v34, %v7989_v28  ;;  %v1625_v11 = vsel %vm1613_vm1, %v1620_v12, %v8155_v58  ;;  %v5941_v34 = vor.u32 %v6856_v18, %v5940_v17  ;;  %v6900_v17 = vld [vmem:[#allocation2 + $0x50] sm:$0xf0] }
 0x16a   : > { %v671_v21 = vpop.f32.mrf.mxu1 }
 0x16b   : > { %v7286_v24 = vpop.eup %7285  ;;  %v672_v25 = vadd.f32 %v671_v21, %v7912_v38  ;;  %v2457_v36 = vpop.f32.mrf.mxu3 }
 0x16c   : > { %v7288_v39 = vpop.eup %7287  ;;  %v925_v19 = vpack.c.bf16 %v7286_v24, %v7284_v22  ;;  %v2458_v43 = vadd.f32 %v2457_v36, %v8120_v27  ;;  %v6100_v22 = vld [vmem:[#allocation2 + $0x30] sm:$0xf] }
 0x16d   : > { %v910_v50 = vpack.c.bf16 %v7288_v39, %v7288_v39  ;;  %7291 = vtanh.f32 %v672_v25  ;;  %2644 = vmatmul.bf16.gmra.mxu1 %v5929_v37  ;;  %v2548_v31 = vpop.f32.mrf.mxu0  ;;  %v7290_v63 = vpop.eup %7289  ;;  %v6004_v54 = vld [vmem:[#allocation2 + $0xf0] sm:$0xf]  ;;  %v6872_v53 = vld [vmem:[#allocation2 + $0xf4] sm:$0xf]  ;;  %v8169_v36 = vor.u32 %v6897_v46, %v6100_v22 }
 0x16e   : > { %989 = vst [vmem:[#allocation2 + $0xfc] sm:$0xff] %v925_v19  ;;  %7293 = vtanh.f32 %v741_v40  ;;  %v8149_v13 = vadd.f32 %v2546_v44, %v2458_v43 }
 0x16f   : > { %974 = vst [vmem:[#allocation2 + $0xa4] sm:$0xf] %v910_v50  ;;  %7295 = vtanh.f32 %v585_v42  ;;  %v1654_v4 = vshll.u32 %v8169_v36, 16  ;;  %v590_v42 = vadd.f32 %v8031_v49, %v7905_v35 }
 0x170   : > { %v742_v55 = vpop.f32.mrf.mxu2 }
 0x171   : > { %v743_v23 = vadd.f32 %v742_v55, %v7989_v28  ;;  %v8186_v57 = vrot.slane %v1654_v4, 1  ;;  %v595_v4 = vadd.f32 %v8064_v41, %v7905_v35 }
 0x172   : > { %v673_v47 = vpop.f32.mrf.mxu1 }
 0x173   : > { %v7292_v48 = vpop.eup %7291  ;;  %v674_v51 = vadd.f32 %v673_v47, %v7912_v38  ;;  %v2459_v56 = vpop.f32.mrf.mxu3 }
 0x174   : > { %v7294_v59 = vpop.eup %7293  ;;  %v927_v1 = vpack.c.bf16 %v7292_v48, %v7290_v63  ;;  %v2460_v33 = vadd.f32 %v2459_v56, %v8120_v27  ;;  %v1650_v56 = vshrl.u32 %v8145_v29, 16 }
 0x175   : > { %v912_v2 = vpack.c.bf16 %v7294_v59, %v7294_v59  ;;  %7297 = vtanh.f32 %v674_v51  ;;  %v6873_v10 = vld [vmem:[#allocation2 + $0xf8] sm:$0xf0]  ;;  %v6006_v0 = vld [vmem:[#allocation2 + $0xfc] sm:$0xf0]  ;;  %v2551_v5 = vpop.f32.mrf.mxu0  ;;  %2718 = vmatmul.bf16.vlgmr.msra.gmra.mxu2 %v1625_v11  ;;  %v7296_v20 = vpop.eup %7295  ;;  %v6979_v11 = vld [vmem:[%s9971_s2 + $0x148] sm:$0xff] }
 0x176   : > { %991 = vst [vmem:[#allocation2 + $0x108] sm:$0xff] %v927_v1  ;;  %7299 = vtanh.f32 %v743_v23  ;;  %v6005_v44 = vor.u32 %v6873_v10, %v6004_v54  ;;  %v6009_v7 = vor.u32 %v6872_v53, %v6006_v0  ;;  %v8159_v9 = vadd.f32 %v2548_v31, %v2460_v33  ;;  %v7025_v31 = vld [vmem:[%s9971_s2 + $0x1b8] sm:$0xff]  ;;  %2894 = vmatpush.bf16.msra.mxu0 %v6979_v11  ;;  %v6903_v11 = vld [vmem:[#allocation2 + $0x68] sm:$0xf0] }
 0x177   : > { %976 = vst [vmem:[#allocation2 + $0xb0] sm:$0xf] %v912_v2  ;;  %7301 = vtanh.f32 %v588_v16  ;;  %3595 = vmatpush.bf16.msrb.mxu1 %v7025_v31  ;;  %v1652_v0 = vor.u32 %v1650_v56, %v8155_v58  ;;  %v5952_v58 = vld [vmem:[#allocation2 + $0x80] sm:$0xf]  ;;  %v6859_v16 = vld [vmem:[#allocation2 + $0x88] sm:$0xf0] }
 0x178   : > { %2501 = vmatmul.bf16.gmra.mxu3 %v6005_v44  ;;  %2590 = vmatmul.bf16.gmra.mxu0 %v6009_v7  ;;  %v745_v24 = vpop.f32.mrf.mxu2 }
 0x179   : > { %v746_v39 = vadd.f32 %v745_v24, %v7989_v28  ;;  %v1657_v7 = vsel %vm1613_vm1, %v1652_v0, %v8186_v57  ;;  %v5953_v24 = vor.u32 %v6859_v16, %v5952_v58  ;;  %v6124_v16 = vld [vmem:[#allocation2 + $0x60] sm:$0xf] }
 0x17a   : > { %v676_v62 = vpop.f32.mrf.mxu1 }
 0x17b   : > { %v7298_v21 = vpop.eup %7297  ;;  %v677_v32 = vadd.f32 %v676_v62, %v7912_v38  ;;  %v2462_v25 = vpop.f32.mrf.mxu3 }
 0x17c   : > { %v7300_v37 = vpop.eup %7299  ;;  %v929_v61 = vpack.c.bf16 %v7298_v21, %v7296_v20  ;;  %v2463_v19 = vadd.f32 %v2462_v25, %v8120_v27  ;;  %v6112_v20 = vld [vmem:[#allocation2 + $0x48] sm:$0xf] }
 0x17d   : > { %v914_v40 = vpack.c.bf16 %v7300_v37, %v7300_v37  ;;  %7303 = vtanh.f32 %v677_v32  ;;  %2649 = vmatmul.bf16.gmra.mxu1 %v5941_v34  ;;  %v2553_v43 = vpop.f32.mrf.mxu0  ;;  %v7302_v8 = vpop.eup %7301  ;;  %v6016_v33 = vld [vmem:[#allocation2 + $0x108] sm:$0xf]  ;;  %v6875_v10 = vld [vmem:[#allocation2 + $0x10c] sm:$0xf]  ;;  %v8201_v25 = vor.u32 %v6900_v17, %v6112_v20 }
 0x17e   : > { %993 = vst [vmem:[#allocation2 + $0x114] sm:$0xff] %v929_v61  ;;  %7305 = vtanh.f32 %v746_v39  ;;  %v8173_v50 = vadd.f32 %v2551_v5, %v2463_v19 }
 0x17f   : > { %978 = vst [vmem:[#allocation2 + $0xbc] sm:$0xf] %v914_v40  ;;  %7307 = vtanh.f32 %v590_v42 }
 0x180   : > { %v747_v51 = vpop.f32.mrf.mxu2 }
 0x181   : > { %v748_v23 = vadd.f32 %v747_v51, %v7989_v28 }
 0x182   : > { %v678_v63 = vpop.f32.mrf.mxu1 }
 0x183   : > { %v7304_v47 = vpop.eup %7303  ;;  %v679_v48 = vadd.f32 %v678_v63, %v7912_v38  ;;  %v2464_v55 = vpop.f32.mrf.mxu3 }
 0x184   : > { %v7306_v59 = vpop.eup %7305  ;;  %v931_v1 = vpack.c.bf16 %v7304_v47, %v7302_v8  ;;  %v2465_v49 = vadd.f32 %v2464_v55, %v8120_v27 }
 0x185   : > { %v916_v54 = vpack.c.bf16 %v7306_v59, %v7306_v59  ;;  %7309 = vtanh.f32 %v679_v48  ;;  %v6876_v2 = vld [vmem:[#allocation2 + $0x110] sm:$0xf0]  ;;  %v6018_v53 = vld [vmem:[#allocation2 + $0x114] sm:$0xf0]  ;;  %v2556_v29 = vpop.f32.mrf.mxu0  ;;  %2723 = vmatmul.bf16.gmra.mxu2 %v1657_v7  ;;  %v7308_v18 = vpop.eup %7307  ;;  %v1674_v48 = vshrl.u32 %v8169_v36, 16 }
 0x186   : > { %995 = vst [vmem:[#allocation2 + $0x120] sm:$0xff] %v931_v1  ;;  %7311 = vtanh.f32 %v748_v23  ;;  %v6017_v12 = vor.u32 %v6876_v2, %v6016_v33  ;;  %v6021_v5 = vor.u32 %v6875_v10, %v6018_v53  ;;  %v8191_v44 = vadd.f32 %v2553_v43, %v2465_v49  ;;  %v6862_v7 = vld [vmem:[#allocation2 + $0xa0] sm:$0xf0] }
 0x187   : > { %980 = vst [vmem:[#allocation2 + $0xc8] sm:$0xf] %v916_v54  ;;  %7313 = vtanh.f32 %v593_v15  ;;  %v1678_v43 = vshll.u32 %v8201_v25, 16  ;;  %v1676_v2 = vor.u32 %v1674_v48, %v8186_v57  ;;  %v5964_v57 = vld [vmem:[#allocation2 + $0x98] sm:$0xf] }
 0x188   : > { %2506 = vmatmul.bf16.gmra.mxu3 %v6017_v12  ;;  %2595 = vmatmul.bf16.gmra.mxu0 %v6021_v5  ;;  %v750_v21 = vpop.f32.mrf.mxu2  ;;  %v7032_v12 = vld [vmem:[%s9971_s2 + $0x1f0] sm:$0xff]  ;;  %v598_v5 = vadd.f32 %v8073_v60, %v7905_v35 }
 0x189   : > { %v751_v37 = vadd.f32 %v750_v21, %v7989_v28  ;;  %v8212_v51 = vrot.slane %v1678_v43, 1  ;;  %3685 = vmatpush.bf16.msrb.mxu2 %v7032_v12  ;;  %v600_v43 = vadd.f32 %v8084_v3, %v7905_v35  ;;  %v6906_v12 = vld [vmem:[#allocation2 + $0x80] sm:$0xf0] }
 0x18a   : > { %v681_v46 = vpop.f32.mrf.mxu1 }
 0x18b   : > { %v7310_v62 = vpop.eup %7309  ;;  %v682_v22 = vadd.f32 %v681_v46, %v7912_v38  ;;  %v2467_v32 = vpop.f32.mrf.mxu3 }
 0x18c   : > { %v7312_v34 = vpop.eup %7311  ;;  %v933_v26 = vpack.c.bf16 %v7310_v62, %v7308_v18  ;;  %v2468_v61 = vadd.f32 %v2467_v32, %v8120_v27  ;;  %v5965_v62 = vor.u32 %v6862_v7, %v5964_v57  ;;  %v603_v57 = vadd.f32 %v8100_v52, %v7905_v35  ;;  %v6865_v7 = vld [vmem:[#allocation2 + $0xb8] sm:$0xf0] }
 0x18d   : > { %v918_v39 = vpack.c.bf16 %v7312_v34, %v7312_v34  ;;  %7315 = vtanh.f32 %v682_v22  ;;  %2654 = vmatmul.bf16.gmra.mxu1 %v5953_v24  ;;  %v2558_v19 = vpop.f32.mrf.mxu0  ;;  %v7314_v31 = vpop.eup %7313  ;;  %v6028_v23 = vld [vmem:[#allocation2 + $0x120] sm:$0xf]  ;;  %v6878_v33 = vld [vmem:[#allocation2 + $0x124] sm:$0xf]  ;;  %v8227_v22 = vor.u32 %v6903_v11, %v6124_v16 }
 0x18e   : > { %997 = vst [vmem:[#allocation2 + $0x12c] sm:$0xff] %v933_v26  ;;  %7317 = vtanh.f32 %v751_v37  ;;  %v8205_v40 = vadd.f32 %v2556_v29, %v2468_v61  ;;  %v1681_v29 = vsel %vm1613_vm1, %v1676_v2, %v8212_v51 }
 0x18f   : > { %982 = vst [vmem:[#allocation2 + $0xd4] sm:$0xf] %v918_v39  ;;  %7319 = vtanh.f32 %v595_v4  ;;  %v1702_v61 = vshll.u32 %v8227_v22, 16  ;;  %v7024_v39 = vld [vmem:[%s9971_s2 + $0x1b0] sm:$0xff] }
 0x190   : > { %v752_v63 = vpop.f32.mrf.mxu2  ;;  %3596 = vmatpush.bf16.msrb.mxu1 %v7024_v39  ;;  %v605_v39 = vadd.f32 %v8106_v6, %v7905_v35 }
 0x191   : > { %v753_v59 = vadd.f32 %v752_v63, %v7989_v28  ;;  %v8244_v48 = vrot.slane %v1702_v61, 1 }
 0x192   : > { %v683_v30 = vpop.f32.mrf.mxu1 }
 0x193   : > { %v7316_v42 = vpop.eup %7315  ;;  %v684_v8 = vadd.f32 %v683_v30, %v7912_v38  ;;  %v2469_v47 = vpop.f32.mrf.mxu3 }
 0x194   : > { %v7318_v55 = vpop.eup %7317  ;;  %v935_v56 = vpack.c.bf16 %v7316_v42, %v7314_v31  ;;  %v2470_v1 = vadd.f32 %v2469_v47, %v8120_v27  ;;  %v1698_v47 = vshrl.u32 %v8201_v25, 16 }
 0x195   : > { %v920_v41 = vpack.c.bf16 %v7318_v55, %v7318_v55  ;;  %7321 = vtanh.f32 %v684_v8  ;;  %v6879_v49 = vld [vmem:[#allocation2 + $0x128] sm:$0xf0]  ;;  %v6030_v54 = vld [vmem:[#allocation2 + $0x12c] sm:$0xf0]  ;;  %v2561_v36 = vpop.f32.mrf.mxu0  ;;  %2728 = vmatmul.bf16.gmra.mxu2 %v1681_v29  ;;  %v7320_v15 = vpop.eup %7319  ;;  %v7583_v55 = vmov 0  }
 0x196   : > { %999 = vst [vmem:[#allocation2 + $0x138] sm:$0xff] %v935_v56  ;;  %7323 = vtanh.f32 %v753_v59  ;;  %v6029_v10 = vor.u32 %v6879_v49, %v6028_v23  ;;  %v6033_v53 = vor.u32 %v6878_v33, %v6030_v54  ;;  %v8217_v0 = vadd.f32 %v2558_v19, %v2470_v1  ;;  %v6970_v19 = vld [vmem:[%s9971_s2 + $0x100] sm:$0xff]  ;;  %7170 = vset.pattern.permute.xlu2 %v7583_v55 }
 0x197   : > { %984 = vst [vmem:[#allocation2 + $0xe0] sm:$0xf] %v920_v41  ;;  %7325 = vtanh.f32 %v598_v5  ;;  %2806 = vmatpush.bf16.msra.mxu3 %v6970_v19  ;;  %7171 = vset.pattern.permute.xlu0 %v7583_v55  ;;  %v1700_v54 = vor.u32 %v1698_v47, %v8212_v51  ;;  %v6978_v5 = vld [vmem:[%s9971_s2 + $0x140] sm:$0xff]  ;;  %v5976_v51 = vld [vmem:[#allocation2 + $0xb0] sm:$0xf] }
 0x198   : > { %2511 = vmatmul.bf16.gmra.mxu3 %v6029_v10  ;;  %2600 = vmatmul.bf16.gmra.mxu0 %v6033_v53  ;;  %v755_v46 = vpop.f32.mrf.mxu2  ;;  %881 = vst [vmem:[#allocation2 + $0x180] sm:$0xff] %v7583_v55 }
 0x199   : > { %v756_v32 = vadd.f32 %v755_v46, %v7989_v28  ;;  %882 = vst [vmem:[#allocation2 + $0x188] sm:$0xf] %v7583_v55  ;;  %7172 = vset.pattern.permute.xlu1 %v7583_v55  ;;  %v1705_v29 = vsel %vm1613_vm1, %v1700_v54, %v8244_v48  ;;  %2895 = vmatpush.bf16.msra.mxu0 %v6978_v5  ;;  %v7031_v54 = vld [vmem:[%s9971_s2 + $0x1e8] sm:$0xff] }
 0x19a   : > { %v686_v58 = vpop.f32.mrf.mxu1  ;;  %3009 = vst [vmem:[#allocation3 + $0x80] sm:$0xf] %v7583_v55  ;;  %3686 = vmatpush.bf16.msrb.mxu2 %v7031_v54  ;;  %v6096_v54 = vld [vmem:[#allocation2 + $0x20] sm:$0xf] }
 0x19b   : > { %v7322_v17 = vpop.eup %7321  ;;  %v687_v18 = vadd.f32 %v686_v58, %v7912_v38  ;;  %v2472_v20 = vpop.f32.mrf.mxu3  ;;  %v6136_v58 = vld [vmem:[#allocation2 + $0x78] sm:$0xf] }
 0x19c   : > { %v7324_v21 = vpop.eup %7323  ;;  %v937_v60 = vpack.c.bf16 %v7322_v17, %v7320_v15  ;;  %v2473_v24 = vadd.f32 %v2472_v20, %v8120_v27  ;;  %v5977_v20 = vor.u32 %v6865_v7, %v5976_v51 }
 0x19d   : > { %v922_v34 = vpack.c.bf16 %v7324_v21, %v7324_v21  ;;  %7327 = vtanh.f32 %v687_v18  ;;  %2659 = vmatmul.bf16.gmra.mxu1 %v5965_v62  ;;  %v2563_v26 = vpop.f32.mrf.mxu0  ;;  %v7326_v4 = vpop.eup %7325  ;;  %v6040_v23 = vld [vmem:[#allocation2 + $0x138] sm:$0xf]  ;;  %v6881_v25 = vld [vmem:[#allocation2 + $0x13c] sm:$0xf]  ;;  %v8259_v62 = vor.u32 %v6906_v12, %v6136_v58  ;;  %v6148_v12 = vld [vmem:[#allocation2 + $0x90] sm:$0xf] }
 0x19e   : > { %1001 = vst [vmem:[#allocation2 + $0x144] sm:$0xff] %v937_v60  ;;  %7329 = vtanh.f32 %v756_v32  ;;  %v8231_v37 = vadd.f32 %v2561_v36, %v2473_v24 }
 0x19f   : > { %986 = vst [vmem:[#allocation2 + $0xec] sm:$0xf] %v922_v34  ;;  %7331 = vtanh.f32 %v600_v43  ;;  %v1726_v61 = vshll.u32 %v8259_v62, 16 }
 0x1a0   : > { %v757_v8 = vpop.f32.mrf.mxu2 }
 0x1a1   : > { %v758_v59 = vadd.f32 %v757_v8, %v7989_v28  ;;  %v1722_v8 = vshrl.u32 %v8227_v22, 16 }
 0x1a2   : > { %v688_v31 = vpop.f32.mrf.mxu1 }
 0x1a3   : > { %v7328_v30 = vpop.eup %7327  ;;  %v689_v42 = vadd.f32 %v688_v31, %v7912_v38  ;;  %v2474_v63 = vpop.f32.mrf.mxu3 }
 0x1a4   : > { %v7330_v56 = vpop.eup %7329  ;;  %v939_v3 = vpack.c.bf16 %v7328_v30, %v7326_v4  ;;  %v2475_v1 = vadd.f32 %v2474_v63, %v8120_v27  ;;  %v8270_v63 = vrot.slane %v1726_v61, 1  ;;  %v1746_v61 = vshrl.u32 %v8259_v62, 16 }
 0x1a5   : > { %v924_v41 = vpack.c.bf16 %v7330_v56, %v7330_v56  ;;  %7333 = vtanh.f32 %v689_v42  ;;  %v6882_v49 = vld [vmem:[#allocation2 + $0x140] sm:$0xf0]  ;;  %v6042_v33 = vld [vmem:[#allocation2 + $0x144] sm:$0xf0]  ;;  %v2566_v2 = vpop.f32.mrf.mxu0  ;;  %2733 = vmatmul.bf16.gmra.mxu2 %v1705_v29  ;;  %v7332_v11 = vpop.eup %7331 }
 0x1a6   : > { %1003 = vst [vmem:[#allocation2 + $0x150] sm:$0xff] %v939_v3  ;;  %7335 = vtanh.f32 %v758_v59  ;;  %v6041_v36 = vor.u32 %v6882_v49, %v6040_v23  ;;  %v6045_v10 = vor.u32 %v6881_v25, %v6042_v33  ;;  %v8249_v53 = vadd.f32 %v2563_v26, %v2475_v1 }
 0x1a7   : > { %988 = vst [vmem:[#allocation2 + $0xf8] sm:$0xf] %v924_v41  ;;  %7337 = vtanh.f32 %v603_v57 }
 0x1a8   : > { %2516 = vmatmul.bf16.gmra.mxu3 %v6041_v36  ;;  %2605 = vmatmul.bf16.gmra.mxu0 %v6045_v10  ;;  %v760_v18 = vpop.f32.mrf.mxu2  ;;  %v6868_v36 = vld [vmem:[#allocation2 + $0xd0] sm:$0xf0] }
 0x1a9   : > { %v761_v60 = vadd.f32 %v760_v18, %v7989_v28 }
 0x1aa   : > { %v691_v15 = vpop.f32.mrf.mxu1 }
 0x1ab   : > { %v7334_v16 = vpop.eup %7333  ;;  %v692_v17 = vadd.f32 %v691_v15, %v7912_v38  ;;  %v2477_v46 = vpop.f32.mrf.mxu3 }
 0x1ac   : > { %v7336_v21 = vpop.eup %7335  ;;  %v941_v52 = vpack.c.bf16 %v7334_v16, %v7332_v11  ;;  %v2478_v32 = vadd.f32 %v2477_v46, %v8120_v27 }
 0x1ad   : > { %v926_v24 = vpack.c.bf16 %v7336_v21, %v7336_v21  ;;  %7339 = vtanh.f32 %v692_v17  ;;  %2664 = vmatmul.bf16.gmra.mxu1 %v5977_v20  ;;  %v2568_v34 = vpop.f32.mrf.mxu0  ;;  %v7338_v19 = vpop.eup %7337  ;;  %v6052_v59 = vld [vmem:[#allocation2 + $0x150] sm:$0xf]  ;;  %v6884_v1 = vld [vmem:[#allocation2 + $0x154] sm:$0xf] }
 0x1ae   : > { %1005 = vst [vmem:[#allocation2 + $0x15c] sm:$0xff] %v941_v52  ;;  %7341 = vtanh.f32 %v761_v60  ;;  %v8263_v26 = vadd.f32 %v2566_v2, %v2478_v32  ;;  %v5988_v2 = vld [vmem:[#allocation2 + $0xc8] sm:$0xf] }
 0x1af   : > { %990 = vst [vmem:[#allocation2 + $0x104] sm:$0xf] %v926_v24  ;;  %7343 = vtanh.f32 %v605_v39  ;;  %v5989_v11 = vor.u32 %v6868_v36, %v5988_v2  ;;  %v7023_v52 = vld [vmem:[%s9971_s2 + $0x1a8] sm:$0xff] }
 0x1b0   : > { %v762_v30 = vpop.f32.mrf.mxu2  ;;  %3597 = vmatpush.bf16.msrb.mxu1 %v7023_v52  ;;  %v6895_v2 = vld [vmem:[#allocation2 + $0x28] sm:$0xf0] }
 0x1b1   : > { %v763_v56 = vadd.f32 %v762_v30, %v7989_v28  ;;  %v6084_v30 = vld [vmem:[#allocation2 + $0x8] sm:$0xf] }
 0x1b2   : > { %v693_v43 = vpop.f32.mrf.mxu1 }
 0x1b3   : > { %v7340_v4 = vpop.eup %7339  ;;  %v694_v31 = vadd.f32 %v693_v43, %v7912_v38  ;;  %v2479_v42 = vpop.f32.mrf.mxu3  ;;  %v1724_v38 = vor.u32 %v1722_v8, %v8244_v48  ;;  %v6909_v48 = vld [vmem:[#allocation2 + $0x98] sm:$0xf0] }
 0x1b4   : > { %v7342_v47 = vpop.eup %7341  ;;  %v943_v55 = vpack.c.bf16 %v7340_v4, %v7338_v19  ;;  %v2480_v3 = vadd.f32 %v2479_v42, %v8120_v27  ;;  %v8285_v15 = vor.u32 %v6909_v48, %v6148_v12  ;;  %v6892_v42 = vld [vmem:[#allocation2 + $0x10] sm:$0xf0]  ;;  %v6160_v48 = vld [vmem:[#allocation2 + $0xa8] sm:$0xf] }
 0x1b5   : > { %v928_v35 = vpack.c.bf16 %v7342_v47, %v7342_v47  ;;  %7345 = vtanh.f32 %v694_v31  ;;  %v6885_v6 = vld [vmem:[#allocation2 + $0x158] sm:$0xf0]  ;;  %v6054_v23 = vld [vmem:[#allocation2 + $0x15c] sm:$0xf0]  ;;  %v2571_v22 = vpop.f32.mrf.mxu0  ;;  %v1729_v33 = vsel %vm1613_vm1, %v1724_v38, %v8270_v63  ;;  %v7344_v10 = vpop.eup %7343  ;;  %v6090_v38 = vld [vmem:[#allocation2 + $0x24] sm:$0xf0] }
 0x1b6   : > { %1007 = vst [vmem:[#allocation2 + $0x168] sm:$0xff] %v943_v55  ;;  %7347 = vtanh.f32 %v763_v56  ;;  %v6053_v41 = vor.u32 %v6885_v6, %v6052_v59  ;;  %v6057_v49 = vor.u32 %v6884_v1, %v6054_v23  ;;  %v8275_v25 = vadd.f32 %v2568_v34, %v2480_v3  ;;  %2738 = vmatmul.bf16.gmra.mxu2 %v1729_v33  ;;  %v6890_v23 = vld [vmem:[#allocation2 + $0x4] sm:$0xf] }
 0x1b7   : > { %992 = vst [vmem:[#allocation2 + $0x110] sm:$0xf] %v928_v35  ;;  %v6078_v35 = vld [vmem:[#allocation2 + $0xc] sm:$0xf0]  ;;  %v6085_v33 = vor.u32 %v6892_v42, %v6084_v30 }
 0x1b8   : > { %2521 = vmatmul.bf16.gmra.mxu3 %v6053_v41  ;;  %2610 = vmatmul.bf16.gmra.mxu0 %v6057_v49  ;;  %v765_v51 = vpop.f32.mrf.mxu2  ;;  %v6871_v41 = vld [vmem:[#allocation2 + $0xe8] sm:$0xf0]  ;;  %v6912_v49 = vld [vmem:[#allocation2 + $0xb0] sm:$0xf0] }
 0x1b9   : > { %v766_v17 = vadd.f32 %v765_v51, %v7989_v28 }
 0x1ba   : > { %v2630_v29 = vpop.f32.mrf.mxu1 }
 0x1bb   : > { %v7346_v5 = vpop.eup %7345  ;;  %v8283_v57 = vadd.f32 %v2630_v29, %v8125_v45  ;;  %v2482_v7 = vpop.f32.mrf.mxu3  ;;  %7349 = vtanh.f32 %v766_v17  ;;  %v1750_v45 = vshll.u32 %v8285_v15, 16 }
 0x1bc   : > { %v7348_v58 = vpop.eup %7347  ;;  %v945_v16 = vpack.c.bf16 %v7346_v5, %v7344_v10  ;;  %v2483_v18 = vadd.f32 %v2482_v7, %v8120_v27  ;;  %v6893_v10 = vld [vmem:[#allocation2 + $0x1c] sm:$0xf]  ;;  %v8311_v7 = vor.u32 %v6912_v49, %v6160_v48  ;;  %v6102_v49 = vld [vmem:[#allocation2 + $0x3c] sm:$0xf0] }
 0x1bd   : > { %v930_v46 = vpack.c.bf16 %v7348_v58, %v7348_v58  ;;  %2669 = vmatmul.bf16.gmra.mxu1 %v5989_v11  ;;  %v2573_v20 = vpop.f32.mrf.mxu0  ;;  %v8299_v39 = vrot.slane %v1750_v45, 1  ;;  %v6064_v31 = vld [vmem:[#allocation2 + $0x168] sm:$0xf]  ;;  %v6887_v55 = vld [vmem:[#allocation2 + $0x16c] sm:$0xf]  ;;  %v8313_v11 = vor.u32 %v6893_v10, %v6090_v38 }
 0x1be   : > { %1009 = vst [vmem:[#allocation2 + $0x174] sm:$0xff] %v945_v16  ;;  %v8289_v21 = vadd.f32 %v2571_v22, %v2483_v18  ;;  %v6000_v22 = vld [vmem:[#allocation2 + $0xe0] sm:$0xf]  ;;  %v8317_v18 = vor.u32 %v6895_v2, %v6096_v54  ;;  %v6915_v54 = vld [vmem:[#allocation2 + $0xc8] sm:$0xf0] }
 0x1bf   : > { %994 = vst [vmem:[#allocation2 + $0x11c] sm:$0xf] %v930_v46  ;;  %v6001_v51 = vor.u32 %v6871_v41, %v6000_v22  ;;  %v1641_v46 = vshll.u32 %v6085_v33, 16  ;;  %v6108_v2 = vld [vmem:[#allocation2 + $0x38] sm:$0xf] }
 0x1c0   : > { %v767_v24 = vpop.f32.mrf.mxu2  ;;  %v6172_v10 = vld [vmem:[#allocation2 + $0xc0] sm:$0xf] }
 0x1c1   : > { %v7350_v19 = vpop.eup %7349  ;;  %v768_v43 = vadd.f32 %v767_v24, %v7989_v28  ;;  %v1634_v24 = vshll.u32 %v8313_v11, 16 }
 0x1c2   : > { %v2632_v60 = vpop.f32.mrf.mxu1  ;;  %v932_v8 = vpack.c.bf16 %v7350_v19, %v7350_v19  ;;  %v1646_v19 = vshll.u32 %v8317_v18, 16 }
 0x1c3   : > { %v8296_v32 = vadd.f32 %v2632_v60, %v8135_v14  ;;  %v2484_v34 = vpop.f32.mrf.mxu3  ;;  %v1748_v14 = vor.u32 %v1746_v61, %v8270_v63  ;;  %7351 = vtanh.f32 %v768_v43  ;;  %v6081_v63 = vor.u32 %v6890_v23, %v6078_v35 }
 0x1c4   : > { %v2485_v4 = vadd.f32 %v2484_v34, %v8120_v27  ;;  %996 = vst [vmem:[#allocation2 + $0x128] sm:$0xf] %v932_v8  ;;  %v1774_v60 = vshll.u32 %v8311_v7, 16  ;;  %v1639_v34 = vshrl.u32 %v6085_v33, 16  ;;  %v1643_v61 = vrot.slane %v1641_v46, 1 }
 0x1c5   : > { %v6888_v47 = vld [vmem:[#allocation2 + $0x170] sm:$0xf0]  ;;  %v6066_v56 = vld [vmem:[#allocation2 + $0x174] sm:$0xf0]  ;;  %v2576_v3 = vpop.f32.mrf.mxu0  ;;  %v1753_v1 = vsel %vm1613_vm1, %v1748_v14, %v8299_v39  ;;  %v1629_v45 = vshll.u32 %v6081_v63, 16  ;;  %v1648_v35 = vrot.slane %v1646_v19, 1 }
 0x1c6   : > { %v6065_v59 = vor.u32 %v6888_v47, %v6064_v31  ;;  %v6069_v62 = vor.u32 %v6887_v55, %v6066_v56  ;;  %v8304_v6 = vadd.f32 %v2573_v20, %v2485_v4  ;;  %2743 = vmatmul.bf16.gmra.mxu2 %v1753_v1  ;;  %v1627_v31 = vshrl.u32 %v6081_v63, 16  ;;  %v6012_v33 = vld [vmem:[#allocation2 + $0xf8] sm:$0xf]  ;;  %v6874_v63 = vld [vmem:[#allocation2 + $0x100] sm:$0xf0] }
 0x1c7   : > { %v1631_v43 = vrot.slane %v1629_v45, 1  ;;  %v1770_v47 = vshrl.u32 %v8285_v15, 16  ;;  %v8328_v55 = vrot.slane %v1774_v60, 1  ;;  %v8330_v56 = vrot.slane %v1634_v24, 1 }
 0x1c8   : > { %2526 = vmatmul.bf16.gmra.mxu3 %v6065_v59  ;;  %2615 = vmatmul.bf16.gmra.mxu0 %v6069_v62  ;;  %v770_v12 = vpop.f32.mrf.mxu2  ;;  %v1644_v62 = vor.u32 %v1643_v61, %v1639_v34 }
 0x1c9   : > { %v7352_v58 = vpop.eup %7351  ;;  %v771_v16 = vadd.f32 %v770_v12, %v7989_v28  ;;  %v1772_v23 = vor.u32 %v1770_v47, %v8299_v39  ;;  %v6896_v12 = vld [vmem:[#allocation2 + $0x34] sm:$0xf]  ;;  %v1658_v47 = vshrl.u32 %v8313_v11, 16 }
 0x1ca   : > { %v2635_v36 = vpop.f32.mrf.mxu1  ;;  %v934_v20 = vpack.c.bf16 %v7352_v58, %v7352_v58  ;;  %v1649_v39 = vsel %vm1613_vm1, %v1644_v62, %v1648_v35  ;;  %v8350_v46 = vor.u32 %v6896_v12, %v6102_v49  ;;  %v1794_v62 = vshrl.u32 %v8311_v7, 16  ;;  %v6899_v12 = vld [vmem:[#allocation2 + $0x4c] sm:$0xf] }
 0x1cb   : > { %v8309_v29 = vadd.f32 %v2635_v36, %v8149_v13  ;;  %v2487_v5 = vpop.f32.mrf.mxu3  ;;  %7353 = vtanh.f32 %v771_v16  ;;  %v1777_v15 = vsel %vm1613_vm1, %v1772_v23, %v8328_v55  ;;  %v6898_v36 = vld [vmem:[#allocation2 + $0x40] sm:$0xf0]  ;;  %v6013_v16 = vor.u32 %v6874_v63, %v6012_v33  ;;  %v6114_v63 = vld [vmem:[#allocation2 + $0x54] sm:$0xf0] }
 0x1cc   : > { %v2488_v17 = vadd.f32 %v2487_v5, %v8120_v27  ;;  %998 = vst [vmem:[#allocation2 + $0x134] sm:$0xf] %v934_v20  ;;  %v8359_v24 = vor.u32 %v6898_v36, %v6108_v2  ;;  %v1796_v11 = vor.u32 %v1794_v62, %v8328_v55  ;;  %v6877_v55 = vld [vmem:[#allocation2 + $0x118] sm:$0xf0]  ;;  %v6918_v2 = vld [vmem:[#allocation2 + $0xe0] sm:$0xf0] }
 0x1cd   : > { %2674 = vmatmul.bf16.gmra.mxu1 %v6001_v51  ;;  %v2578_v13 = vpop.f32.mrf.mxu0  ;;  %v6901_v36 = vld [vmem:[#allocation2 + $0x58] sm:$0xf0] }
 0x1ce   : > { %v8319_v52 = vadd.f32 %v2576_v3, %v2488_v17  ;;  %v8348_v17 = vor.u32 %v6915_v54, %v6172_v10  ;;  %v6024_v54 = vld [vmem:[#allocation2 + $0x110] sm:$0xf]  ;;  %v6184_v10 = vld [vmem:[#allocation2 + $0xd8] sm:$0xf] }
 0x1d0   : > { %v772_v42 = vpop.f32.mrf.mxu2  ;;  %v1798_v19 = vshll.u32 %v8348_v17, 16 }
 0x1d1   : > { %v7354_v14 = vpop.eup %7353  ;;  %v773_v3 = vadd.f32 %v772_v42, %v7989_v28  ;;  %v1670_v42 = vshll.u32 %v8359_v24, 16 }
 0x1d2   : > { %v2637_v4 = vpop.f32.mrf.mxu1  ;;  %v936_v1 = vpack.c.bf16 %v7354_v14, %v7354_v14 }
 0x1d3   : > { %v8325_v30 = vadd.f32 %v2637_v4, %v8159_v9  ;;  %v2489_v8 = vpop.f32.mrf.mxu3  ;;  %v1632_v9 = vor.u32 %v1631_v43, %v1627_v31  ;;  %7355 = vtanh.f32 %v773_v3  ;;  %v1662_v43 = vshll.u32 %v8350_v46, 16  ;;  %v7022_v4 = vld [vmem:[%s9971_s2 + $0x1a0] sm:$0xff] }
 0x1d4   : > { %v2490_v59 = vadd.f32 %v2489_v8, %v8120_v27  ;;  %1000 = vst [vmem:[#allocation2 + $0x140] sm:$0xf] %v936_v1  ;;  %v7030_v27 = vld [vmem:[%s9971_s2 + $0x1e0] sm:$0xff]  ;;  %v1666_v31 = vshrl.u32 %v8317_v18, 16  ;;  %3598 = vmatpush.bf16.msrb.mxu1 %v7022_v4  ;;  %v8375_v1 = vrot.slane %v1798_v19, 1 }
 0x1d5   : > { %v2581_v38 = vpop.f32.mrf.mxu0  ;;  %v1637_v41 = vsel %vm1613_vm1, %v1632_v9, %v8330_v56  ;;  %3687 = vmatpush.bf16.msrb.mxu2 %v7030_v27  ;;  %v8377_v23 = vrot.slane %v1662_v43, 1 }
 0x1d6   : > { %v8335_v22 = vadd.f32 %v2578_v13, %v2490_v59  ;;  %2748 = vmatmul.bf16.gmra.mxu2 %v1777_v15  ;;  %v8356_v13 = vld [vmem:[%s9973_s4 + $0x1] ss:$0 sm:$0xff]  ;;  %v1668_v15 = vor.u32 %v1666_v31, %v1648_v35  ;;  %v1801_v7 = vsel %vm1613_vm1, %v1796_v11, %v8375_v1 }
 0x1d8   : > { %2807 = vmatmul.bf16.vlgmr.msra.gmra.mxu3 %v1637_v41  ;;  %2896 = vmatmul.bf16.vlgmr.msra.gmra.mxu0 %v1649_v39  ;;  %v775_v51 = vpop.f32.mrf.mxu2  ;;  %v1672_v41 = vrot.slane %v1670_v42, 1 }
 0x1d9   : > { %v7356_v20 = vpop.eup %7355  ;;  %v776_v45 = vadd.f32 %v775_v51, %v7989_v28 }
 0x1da   : > { %v2640_v48 = vpop.f32.mrf.mxu1  ;;  %v1673_v35 = vsel %vm1613_vm1, %v1668_v15, %v1672_v41 }
 0x1db   : > { %v8346_v5 = vadd.f32 %v2640_v48, %v8173_v50  ;;  %v2492_v58 = vpop.f32.mrf.mxu3  ;;  %v938_v50 = vpack.c.bf16 %v7356_v20, %v7356_v20  ;;  %7357 = vtanh.f32 %v776_v45  ;;  %v6025_v20 = vor.u32 %v6877_v55, %v6024_v54 }
 0x1dc   : > { %v2493_v60 = vadd.f32 %v8356_v13, %v2492_v58  ;;  %v8393_v45 = vor.u32 %v6918_v2, %v6184_v10  ;;  %v6126_v2 = vld [vmem:[#allocation2 + $0x6c] sm:$0xf0]  ;;  %v6904_v10 = vld [vmem:[#allocation2 + $0x70] sm:$0xf0] }
 0x1dd   : > { %2679 = vmatmul.bf16.gmra.mxu1 %v6013_v16  ;;  %v2583_v34 = vpop.f32.mrf.mxu0  ;;  %1002 = vst [vmem:[#allocation2 + $0x14c] sm:$0xf] %v938_v50 }
 0x1de   : > { %v8361_v61 = vadd.f32 %v2581_v38, %v2493_v60  ;;  %v8395_v60 = vor.u32 %v6899_v12, %v6114_v63 }
 0x1e0   : > { %v777_v3 = vpop.f32.mrf.mxu2 }
 0x1e1   : > { %v7358_v9 = vpop.eup %7357  ;;  %v778_v18 = vadd.f32 %v777_v3, %v7989_v28  ;;  %v1690_v3 = vshrl.u32 %v8359_v24, 16 }
 0x1e2   : > { %v2642_v8 = vpop.f32.mrf.mxu1  ;;  %v940_v49 = vpack.c.bf16 %v7358_v9, %v7358_v9  ;;  %v1682_v9 = vshrl.u32 %v8350_v46, 16  ;;  %v7021_v46 = vld [vmem:[%s9971_s2 + $0x198] sm:$0xff] }
 0x1e3   : > { %v8372_v14 = vadd.f32 %v2642_v8, %v8191_v44  ;;  %v2494_v59 = vpop.f32.mrf.mxu3  ;;  %v1660_v44 = vor.u32 %v1658_v47, %v8330_v56  ;;  %7359 = vtanh.f32 %v778_v18  ;;  %v6120_v56 = vld [vmem:[#allocation2 + $0x50] sm:$0xf]  ;;  %v1822_v8 = vshll.u32 %v8393_v45, 16  ;;  %3599 = vmatpush.bf16.msrb.mxu1 %v7021_v46 }
 0x1e4   : > { %v2495_v38 = vadd.f32 %v8356_v13, %v2494_v59  ;;  %1004 = vst [vmem:[#allocation2 + $0x158] sm:$0xf] %v940_v49  ;;  %v8399_v43 = vor.u32 %v6901_v36, %v6120_v56  ;;  %v1686_v47 = vshll.u32 %v8395_v60, 16  ;;  %v1818_v49 = vshrl.u32 %v8348_v17, 16  ;;  %v6036_v36 = vld [vmem:[#allocation2 + $0x128] sm:$0xf] }
 0x1e5   : > { %v2586_v27 = vpop.f32.mrf.mxu0  ;;  %v1665_v33 = vsel %vm1613_vm1, %v1660_v44, %v8377_v23  ;;  %v1824_v11 = vrot.slane %v1822_v8, 1  ;;  %v1684_v54 = vor.u32 %v1682_v9, %v8377_v23  ;;  %v6132_v23 = vld [vmem:[#allocation2 + $0x68] sm:$0xf]  ;;  %v1842_v46 = vshrl.u32 %v8393_v45, 16 }
 0x1e6   : > { %v8383_v39 = vadd.f32 %v2583_v34, %v2495_v38  ;;  %2753 = vmatmul.bf16.gmra.mxu2 %v1801_v7  ;;  %v1694_v59 = vshll.u32 %v8399_v43, 16  ;;  %v1688_v44 = vrot.slane %v1686_v47, 1 }
 0x1e8   : > { %2812 = vmatmul.bf16.gmra.mxu3 %v1665_v33  ;;  %2901 = vmatmul.bf16.gmra.mxu0 %v1673_v35  ;;  %v780_v58 = vpop.f32.mrf.mxu2  ;;  %v1692_v33 = vor.u32 %v1690_v3, %v1672_v41  ;;  %v1696_v63 = vrot.slane %v1694_v59, 1  ;;  %v1689_v41 = vsel %vm1613_vm1, %v1684_v54, %v1688_v44  ;;  %v8438_v3 = vor.u32 %v6904_v10, %v6132_v23  ;;  %v6905_v23 = vld [vmem:[#allocation2 + $0x7c] sm:$0xf]  ;;  %v6144_v10 = vld [vmem:[#allocation2 + $0x80] sm:$0xf] }
 0x1e9   : > { %v7360_v50 = vpop.eup %7359  ;;  %v781_v34 = vadd.f32 %v780_v58, %v7989_v28  ;;  %v6196_v58 = vld [vmem:[#allocation2 + $0xf0] sm:$0xf] }
 0x1ea   : > { %v2645_v48 = vpop.f32.mrf.mxu1  ;;  %v942_v4 = vpack.c.bf16 %v7360_v50, %v7360_v50  ;;  %v1697_v56 = vsel %vm1613_vm1, %v1692_v33, %v1696_v63 }
 0x1eb   : > { %v8391_v51 = vadd.f32 %v2645_v48, %v8205_v40  ;;  %v2497_v16 = vpop.f32.mrf.mxu3  ;;  %7361 = vtanh.f32 %v781_v34  ;;  %v7029_v40 = vld [vmem:[%s9971_s2 + $0x1d8] sm:$0xff]  ;;  %v6880_v48 = vld [vmem:[#allocation2 + $0x130] sm:$0xf0] }
 0x1ec   : > { %v2498_v19 = vadd.f32 %v8356_v13, %v2497_v16  ;;  %1006 = vst [vmem:[#allocation2 + $0x164] sm:$0xf] %v942_v4  ;;  %3688 = vmatpush.bf16.msrb.mxu2 %v7029_v40  ;;  %v6902_v16 = vld [vmem:[#allocation2 + $0x64] sm:$0xf] }
 0x1ed   : > { %2684 = vmatmul.bf16.gmra.mxu1 %v6025_v20  ;;  %v2588_v31 = vpop.f32.mrf.mxu0 }
 0x1ee   : > { %v8404_v42 = vadd.f32 %v2586_v27, %v2498_v19  ;;  %v6037_v19 = vor.u32 %v6880_v48, %v6036_v36  ;;  %v6924_v48 = vld [vmem:[#allocation2 + $0x110] sm:$0xf0] }
 0x1f0   : > { %v782_v38 = vpop.f32.mrf.mxu2 }
 0x1f1   : > { %v7362_v27 = vpop.eup %7361  ;;  %v783_v7 = vadd.f32 %v782_v38, %v7989_v28 }
 0x1f2   : > { %v2647_v62 = vpop.f32.mrf.mxu1  ;;  %v944_v35 = vpack.c.bf16 %v7362_v27, %v7362_v27 }
 0x1f3   : > { %v8412_v18 = vadd.f32 %v2647_v62, %v8217_v0  ;;  %v2499_v15 = vpop.f32.mrf.mxu3  ;;  %v1820_v0 = vor.u32 %v1818_v49, %v8375_v1  ;;  %7363 = vtanh.f32 %v783_v7  ;;  %v6921_v1 = vld [vmem:[#allocation2 + $0xf8] sm:$0xf0]  ;;  %v1718_v49 = vshll.u32 %v8438_v3, 16 }
 0x1f4   : > { %v2500_v24 = vadd.f32 %v8356_v13, %v2499_v15  ;;  %1008 = vst [vmem:[#allocation2 + $0x170] sm:$0xf] %v944_v35  ;;  %v8430_v4 = vor.u32 %v6921_v1, %v6196_v58  ;;  %v1714_v15 = vshrl.u32 %v8399_v43, 16 }
 0x1f5   : > { %v2591_v17 = vpop.f32.mrf.mxu0  ;;  %v1825_v28 = vsel %vm1613_vm1, %v1820_v0, %v1824_v11 }
 0x1f6   : > { %v8422_v55 = vadd.f32 %v2588_v31, %v2500_v24  ;;  %2758 = vmatmul.bf16.gmra.mxu2 %v1825_v28  ;;  %v8432_v31 = vor.u32 %v6902_v16, %v6126_v2  ;;  %v1846_v9 = vshll.u32 %v8430_v4, 16  ;;  %v1720_v28 = vrot.slane %v1718_v49, 1 }
 0x1f8   : > { %2817 = vmatmul.bf16.gmra.mxu3 %v1689_v41  ;;  %2906 = vmatmul.bf16.gmra.mxu0 %v1697_v56  ;;  %v2719_v34 = vpop.f32.mrf.mxu2  ;;  %v1710_v38 = vshll.u32 %v8432_v31, 16  ;;  %v8451_v35 = vrot.slane %v1846_v9, 1  ;;  %v1844_v41 = vor.u32 %v1842_v46, %v1824_v11 }
 0x1f9   : > { %v7364_v40 = vpop.eup %7363  ;;  %v8436_v47 = vadd.f32 %v2719_v34, %v8283_v57  ;;  %v1706_v57 = vshrl.u32 %v8395_v60, 16 }
 0x1fa   : > { %v2650_v12 = vpop.f32.mrf.mxu1  ;;  %v946_v59 = vpack.c.bf16 %v7364_v40, %v7364_v40  ;;  %v8453_v0 = vrot.slane %v1710_v38, 1  ;;  %v1849_v45 = vsel %vm1613_vm1, %v1844_v41, %v8451_v35 }
 0x1fb   : > { %v8428_v20 = vadd.f32 %v2650_v12, %v8231_v37  ;;  %v2502_v50 = vpop.f32.mrf.mxu3  ;;  %v1708_v60 = vor.u32 %v1706_v57, %v1688_v44  ;;  %v6048_v44 = vld [vmem:[#allocation2 + $0x140] sm:$0xf]  ;;  %v6907_v12 = vld [vmem:[#allocation2 + $0x88] sm:$0xf0] }
 0x1fc   : > { %v2503_v8 = vadd.f32 %v8356_v13, %v2502_v50  ;;  %1010 = vst [vmem:[#allocation2 + $0x17c] sm:$0xf] %v946_v59  ;;  %v6208_v50 = vld [vmem:[#allocation2 + $0x108] sm:$0xf]  ;;  %v8481_v49 = vor.u32 %v6907_v12, %v6144_v10 }
 0x1fd   : > { %2689 = vmatmul.bf16.gmra.mxu1 %v6037_v19  ;;  %v2593_v62 = vpop.f32.mrf.mxu0  ;;  %v1713_v36 = vsel %vm1613_vm1, %v1708_v60, %v8453_v0  ;;  %v1730_v60 = vshrl.u32 %v8432_v31, 16  ;;  %v7020_v31 = vld [vmem:[%s9971_s2 + $0x190] sm:$0xff] }
 0x1fe   : > { %v8440_v37 = vadd.f32 %v2591_v17, %v2503_v8  ;;  %v1716_v17 = vor.u32 %v1714_v15, %v1696_v63  ;;  %v6883_v63 = vld [vmem:[#allocation2 + $0x148] sm:$0xf0]  ;;  %3600 = vmatpush.bf16.msrb.mxu1 %v7020_v31 }
 0x1ff   : > { %v6049_v59 = vor.u32 %v6883_v63, %v6048_v44 }
 0x200   : > { %v2721_v33 = vpop.f32.mrf.mxu2  ;;  %v1721_v11 = vsel %vm1613_vm1, %v1716_v17, %v1720_v28 }
 0x201   : > { %v8457_v43 = vadd.f32 %v2721_v33, %v8296_v32  ;;  %v6138_v32 = vld [vmem:[#allocation2 + $0x84] sm:$0xf0] }
 0x202   : > { %v2652_v27 = vpop.f32.mrf.mxu1  ;;  %v8469_v34 = vor.u32 %v6905_v23, %v6138_v32  ;;  %v1732_v23 = vor.u32 %v1730_v60, %v8453_v0 }
 0x203   : > { %v8448_v7 = vadd.f32 %v2652_v27, %v8249_v53  ;;  %v2504_v24 = vpop.f32.mrf.mxu3  ;;  %v3827_v53 = vld [vmem:[%s9972_s3 + $0x30] sm:$0xff] }
 0x204   : > { %v2505_v54 = vadd.f32 %v8356_v13, %v2504_v24  ;;  %v3851_v1 = vunpack.c.l.b16 %v3827_v53  ;;  %v3852_v57 = vunpack.c.h.b16 %v3827_v53  ;;  %v1734_v46 = vshll.u32 %v8469_v34, 16 }
 0x205   : > { %v2596_v2 = vpop.f32.mrf.mxu0 }
 0x206   : > { %v8462_v56 = vadd.f32 %v2593_v62, %v2505_v54  ;;  %2763 = vmatmul.bf16.gmra.mxu2 %v1849_v45  ;;  %v3863_v58 = vpack.c.b16 %v3851_v1, %v3851_v1  ;;  %v8474_v62 = vor.u32 %v6924_v48, %v6208_v50  ;;  %v1738_v54 = vshrl.u32 %v8438_v3, 16  ;;  %v6886_v50 = vld [vmem:[#allocation2 + $0x160] sm:$0xf0] }
 0x207   : > { %v3864_v17 = vpack.c.b16 %v3852_v57, %v3852_v57  ;;  %v1866_v48 = vshrl.u32 %v8430_v4, 16  ;;  %v1736_v1 = vrot.slane %v1734_v46, 1 }
 0x208   : > { %2822 = vmatmul.bf16.gmra.mxu3 %v1713_v36  ;;  %2911 = vmatmul.bf16.gmra.mxu0 %v1721_v11  ;;  %v2724_v8 = vpop.f32.mrf.mxu2  ;;  %v3926_v9 = vsel %vm3924_vm2, %v3863_v58, 0  ;;  %v1870_v33 = vshll.u32 %v8474_v62, 16  ;;  %v1740_v44 = vor.u32 %v1738_v54, %v1720_v28 }
 0x209   : > { %v8479_v15 = vadd.f32 %v2724_v8, %v8309_v29  ;;  %3949 = vmatpush.bf16.msrb.mxu3 %v3926_v9  ;;  %v1742_v29 = vshll.u32 %v8481_v49, 16  ;;  %v3929_v53 = vsel %vm3924_vm2, %v3864_v17, 0  ;;  %v1737_v58 = vsel %vm1613_vm1, %v1732_v23, %v1736_v1  ;;  %v6910_v8 = vld [vmem:[#allocation2 + $0xa0] sm:$0xf0]  ;;  %v6908_v9 = vld [vmem:[#allocation2 + $0x94] sm:$0xf] }
 0x20a   : > { %v2655_v16 = vpop.f32.mrf.mxu1  ;;  %v1872_v32 = vrot.slane %v1870_v33, 1  ;;  %4038 = vmatpush.bf16.msrb.mxu0 %v3929_v53 }
 0x20b   : > { %v8472_v19 = vadd.f32 %v2655_v16, %v8263_v26  ;;  %v2507_v40 = vpop.f32.mrf.mxu3  ;;  %v7028_v26 = vld [vmem:[%s9971_s2 + $0x1d0] sm:$0xff]  ;;  %v1744_v63 = vrot.slane %v1742_v29, 1  ;;  %v6060_v16 = vld [vmem:[#allocation2 + $0x158] sm:$0xf] }
 0x20c   : > { %v2508_v38 = vadd.f32 %v8356_v13, %v2507_v40  ;;  %3689 = vmatpush.bf16.msrb.mxu2 %v7028_v26  ;;  %v6927_v40 = vld [vmem:[#allocation2 + $0x128] sm:$0xf0]  ;;  %v6061_v26 = vor.u32 %v6886_v50, %v6060_v16 }
 0x20d   : > { %2694 = vmatmul.bf16.gmra.mxu1 %v6049_v59  ;;  %v2598_v27 = vpop.f32.mrf.mxu0  ;;  %v1745_v28 = vsel %vm1613_vm1, %v1740_v44, %v1744_v63  ;;  %v6220_v59 = vld [vmem:[#allocation2 + $0x120] sm:$0xf] }
 0x20e   : > { %v8486_v24 = vadd.f32 %v2596_v2, %v2508_v38  ;;  %v8515_v33 = vor.u32 %v6927_v40, %v6220_v59  ;;  %v6913_v59 = vld [vmem:[#allocation2 + $0xb8] sm:$0xf0] }
 0x210   : > { %v2726_v36 = vpop.f32.mrf.mxu2 }
 0x211   : > { %v8500_v11 = vadd.f32 %v2726_v36, %v8325_v30  ;;  %v6150_v30 = vld [vmem:[#allocation2 + $0x9c] sm:$0xf0] }
 0x212   : > { %v2657_v41 = vpop.f32.mrf.mxu1  ;;  %v8517_v46 = vor.u32 %v6908_v9, %v6150_v30  ;;  %v6911_v9 = vld [vmem:[#allocation2 + $0xac] sm:$0xf] }
 0x213   : > { %v8495_v45 = vadd.f32 %v2657_v41, %v8275_v25  ;;  %v2509_v2 = vpop.f32.mrf.mxu3  ;;  %v1868_v25 = vor.u32 %v1866_v48, %v8451_v35  ;;  %v6156_v35 = vld [vmem:[#allocation2 + $0x98] sm:$0xf] }
 0x214   : > { %v2510_v3 = vadd.f32 %v8356_v13, %v2509_v2  ;;  %v8523_v17 = vor.u32 %v6910_v8, %v6156_v35  ;;  %v1758_v53 = vshll.u32 %v8517_v46, 16  ;;  %v1762_v2 = vshrl.u32 %v8481_v49, 16  ;;  %v6162_v35 = vld [vmem:[#allocation2 + $0xb4] sm:$0xf0]  ;;  %v6072_v8 = vld [vmem:[#allocation2 + $0x170] sm:$0xf] }
 0x215   : > { %v2601_v10 = vpop.f32.mrf.mxu0  ;;  %v1873_v12 = vsel %vm1613_vm1, %v1868_v25, %v1872_v32  ;;  %v1890_v25 = vshrl.u32 %v8474_v62, 16 }
 0x216   : > { %v8507_v4 = vadd.f32 %v2598_v27, %v2510_v3  ;;  %2768 = vmatmul.bf16.gmra.mxu2 %v1873_v12  ;;  %v1766_v36 = vshll.u32 %v8523_v17, 16  ;;  %v1754_v3 = vshrl.u32 %v8469_v34, 16  ;;  %v1764_v49 = vor.u32 %v1762_v2, %v1744_v63  ;;  %v6168_v63 = vld [vmem:[#allocation2 + $0xb0] sm:$0xf] }
 0x218   : > { %2827 = vmatmul.bf16.gmra.mxu3 %v1737_v58  ;;  %2916 = vmatmul.bf16.gmra.mxu0 %v1745_v28  ;;  %v2729_v57 = vpop.f32.mrf.mxu2  ;;  %v1768_v30 = vrot.slane %v1766_v36, 1  ;;  %v1892_v28 = vor.u32 %v1890_v25, %v1872_v32  ;;  %v1756_v16 = vor.u32 %v1754_v3, %v1736_v1  ;;  %v6232_v1 = vld [vmem:[#allocation2 + $0x138] sm:$0xf]  ;;  %v8556_v36 = vor.u32 %v6913_v59, %v6168_v63 }
 0x219   : > { %v8521_v29 = vadd.f32 %v2729_v57, %v8346_v5  ;;  %v1786_v25 = vshrl.u32 %v8523_v17, 16 }
 0x21a   : > { %v2660_v0 = vpop.f32.mrf.mxu1  ;;  %v1769_v62 = vsel %vm1613_vm1, %v1764_v49, %v1768_v30  ;;  %v1778_v49 = vshrl.u32 %v8517_v46, 16  ;;  %v7019_v46 = vld [vmem:[%s9971_s2 + $0x188] sm:$0xff] }
 0x21b   : > { %v8513_v38 = vadd.f32 %v2660_v0, %v8289_v21  ;;  %v2512_v27 = vpop.f32.mrf.mxu3  ;;  %v1894_v21 = vshll.u32 %v8515_v33, 16  ;;  %v6889_v0 = vld [vmem:[#allocation2 + $0x178] sm:$0xf0]  ;;  %v1788_v17 = vor.u32 %v1786_v25, %v1768_v30  ;;  %3601 = vmatpush.bf16.msrb.mxu1 %v7019_v46 }
 0x21c   : > { %v2513_v54 = vadd.f32 %v8356_v13, %v2512_v27  ;;  %v6933_v30 = vld [vmem:[#allocation2 + $0x158] sm:$0xf0] }
 0x21d   : > { %2699 = vmatmul.bf16.gmra.mxu1 %v6061_v26  ;;  %v2603_v41 = vpop.f32.mrf.mxu0  ;;  %v1896_v23 = vrot.slane %v1894_v21, 1  ;;  %v8550_v21 = vor.u32 %v6911_v9, %v6162_v35  ;;  %v6180_v9 = vld [vmem:[#allocation2 + $0xc8] sm:$0xf] }
 0x21e   : > { %v8525_v60 = vadd.f32 %v2601_v10, %v2513_v54  ;;  %v1760_v10 = vrot.slane %v1758_v53, 1  ;;  %v6073_v54 = vor.u32 %v6889_v0, %v6072_v8 }
 0x220   : > { %v2731_v31 = vpop.f32.mrf.mxu2  ;;  %v1761_v40 = vsel %vm1613_vm1, %v1756_v16, %v1760_v10 }
 0x221   : > { %v8538_v58 = vadd.f32 %v2731_v31, %v8372_v14  ;;  %v6930_v14 = vld [vmem:[#allocation2 + $0x140] sm:$0xf0]  ;;  %v1782_v31 = vshll.u32 %v8550_v21, 16 }
 0x222   : > { %v2662_v48 = vpop.f32.mrf.mxu1 }
 0x223   : > { %v8533_v5 = vadd.f32 %v2662_v48, %v8304_v6  ;;  %v2514_v44 = vpop.f32.mrf.mxu3  ;;  %v1897_v6 = vsel %vm1613_vm1, %v1892_v28, %v1896_v23  ;;  %v1784_v35 = vrot.slane %v1782_v31, 1 }
 0x224   : > { %v2515_v12 = vadd.f32 %v8356_v13, %v2514_v44 }
 0x225   : > { %v2606_v50 = vpop.f32.mrf.mxu0 }
 0x226   : > { %v8540_v34 = vadd.f32 %v2603_v41, %v2515_v12  ;;  %2773 = vmatmul.bf16.gmra.mxu2 %v1897_v6  ;;  %v8548_v41 = vor.u32 %v6930_v14, %v6232_v1  ;;  %v1790_v12 = vshll.u32 %v8556_v36, 16  ;;  %v6174_v1 = vld [vmem:[#allocation2 + $0xcc] sm:$0xf0] }
 0x228   : > { %2832 = vmatmul.bf16.gmra.mxu3 %v1761_v40  ;;  %2921 = vmatmul.bf16.gmra.mxu0 %v1769_v62  ;;  %v2734_v26 = vpop.f32.mrf.mxu2  ;;  %v1918_v44 = vshll.u32 %v8548_v41, 16  ;;  %v1792_v0 = vrot.slane %v1790_v12, 1 }
 0x229   : > { %v8554_v2 = vadd.f32 %v2734_v26, %v8391_v51 }
 0x22a   : > { %v2665_v32 = vpop.f32.mrf.mxu1  ;;  %v1920_v40 = vrot.slane %v1918_v44, 1 }
 0x22b   : > { %v8546_v27 = vadd.f32 %v2665_v32, %v8319_v52  ;;  %v2517_v57 = vpop.f32.mrf.mxu3  ;;  %v7027_v52 = vld [vmem:[%s9971_s2 + $0x1c8] sm:$0xff] }
 0x22c   : > { %v2518_v53 = vadd.f32 %v8356_v13, %v2517_v57  ;;  %3690 = vmatpush.bf16.msrb.mxu2 %v7027_v52  ;;  %v6916_v57 = vld [vmem:[#allocation2 + $0xd0] sm:$0xf0] }
 0x22d   : > { %2704 = vmatmul.bf16.gmra.mxu1 %v6073_v54  ;;  %v2608_v48 = vpop.f32.mrf.mxu0  ;;  %v8595_v12 = vor.u32 %v6916_v57, %v6180_v9 }
 0x22e   : > { %v8561_v3 = vadd.f32 %v2606_v50, %v2518_v53  ;;  %v1914_v50 = vshrl.u32 %v8515_v33, 16 }
 0x230   : > { %v2736_v6 = vpop.f32.mrf.mxu2  ;;  %v1916_v14 = vor.u32 %v1914_v50, %v1896_v23  ;;  %v6244_v23 = vld [vmem:[#allocation2 + $0x150] sm:$0xf]  ;;  %v1814_v50 = vshll.u32 %v8595_v12, 16 }
 0x231   : > { %v8574_v8 = vadd.f32 %v2736_v6, %v8412_v18  ;;  %v1793_v18 = vsel %vm1613_vm1, %v1788_v17, %v1792_v0  ;;  %v8587_v52 = vor.u32 %v6933_v30, %v6244_v23  ;;  %v1810_v6 = vshrl.u32 %v8556_v36, 16  ;;  %v6936_v23 = vld [vmem:[#allocation2 + $0x170] sm:$0xf0] }
 0x232   : > { %v2667_v51 = vpop.f32.mrf.mxu1  ;;  %v1921_v33 = vsel %vm1613_vm1, %v1916_v14, %v1920_v40  ;;  %v1802_v17 = vshrl.u32 %v8550_v21, 16  ;;  %v1816_v30 = vrot.slane %v1814_v50, 1 }
 0x233   : > { %v8569_v28 = vadd.f32 %v2667_v51, %v8335_v22  ;;  %v2519_v16 = vpop.f32.mrf.mxu3  ;;  %v1780_v22 = vor.u32 %v1778_v49, %v1760_v10  ;;  %v6914_v10 = vld [vmem:[#allocation2 + $0xc4] sm:$0xf]  ;;  %v1812_v36 = vor.u32 %v1810_v6, %v1792_v0 }
 0x234   : > { %v2520_v62 = vadd.f32 %v8356_v13, %v2519_v16  ;;  %v8589_v44 = vor.u32 %v6914_v10, %v6174_v1  ;;  %v1942_v16 = vshll.u32 %v8587_v52, 16  ;;  %v1804_v9 = vor.u32 %v1802_v17, %v1784_v35  ;;  %v6186_v10 = vld [vmem:[#allocation2 + $0xe4] sm:$0xf0] }
 0x235   : > { %v2611_v63 = vpop.f32.mrf.mxu0  ;;  %v1785_v32 = vsel %vm1613_vm1, %v1780_v22, %v1784_v35  ;;  %v1938_v22 = vshrl.u32 %v8548_v41, 16  ;;  %v1817_v41 = vsel %vm1613_vm1, %v1812_v36, %v1816_v30  ;;  %v7026_v36 = vld [vmem:[%s9971_s2 + $0x1c0] sm:$0xff] }
 0x236   : > { %v8579_v59 = vadd.f32 %v2608_v48, %v2520_v62  ;;  %2778 = vmatmul.bf16.gmra.mxu2 %v1921_v33 }
 0x237   : > { %v1940_v1 = vor.u32 %v1938_v22, %v1920_v40  ;;  %v6917_v40 = vld [vmem:[#allocation2 + $0xdc] sm:$0xf]  ;;  %v1834_v22 = vshrl.u32 %v8595_v12, 16  ;;  %3691 = vmatpush.bf16.msrb.mxu2 %v7026_v36 }
 0x238   : > { %2837 = vmatmul.bf16.gmra.mxu3 %v1785_v32  ;;  %2926 = vmatmul.bf16.gmra.mxu0 %v1793_v18 }
 0x239   : > { %v2739_v48 = vpop.f32.mrf.mxu2 }
 0x23a   : > { %v2670_v26 = vpop.f32.mrf.mxu1  ;;  %v8593_v25 = vadd.f32 %v2739_v48, %v8428_v20  ;;  %v6256_v48 = vld [vmem:[#allocation2 + $0x168] sm:$0xf] }
 0x23b   : > { %v8585_v54 = vadd.f32 %v2670_v26, %v8361_v61  ;;  %v2522_v53 = vpop.f32.mrf.mxu3  ;;  %v1806_v61 = vshll.u32 %v8589_v44, 16 }
 0x23c   : > { %v2523_v31 = vadd.f32 %v8356_v13, %v2522_v53  ;;  %v6919_v53 = vld [vmem:[#allocation2 + $0xe8] sm:$0xf0] }
 0x23d   : > { %v2613_v51 = vpop.f32.mrf.mxu0  ;;  %v1808_v33 = vrot.slane %v1806_v61, 1  ;;  %v8622_v61 = vor.u32 %v6917_v40, %v6186_v10 }
 0x23e   : > { %v8597_v49 = vadd.f32 %v2611_v63, %v2523_v31  ;;  %v1944_v63 = vrot.slane %v1942_v16, 1  ;;  %v8620_v16 = vor.u32 %v6936_v23, %v6256_v48 }
 0x23f   : > { %v1809_v26 = vsel %vm1613_vm1, %v1804_v9, %v1808_v33 }
 0x241   : > { %v2741_v14 = vpop.f32.mrf.mxu2 }
 0x242   : > { %v2672_v62 = vpop.f32.mrf.mxu1  ;;  %v8610_v18 = vadd.f32 %v2741_v14, %v8448_v7  ;;  %v6192_v7 = vld [vmem:[#allocation2 + $0xe0] sm:$0xf]  ;;  %v1966_v14 = vshll.u32 %v8620_v16, 16 }
 0x243   : > { %v8605_v46 = vadd.f32 %v2672_v62, %v8383_v39  ;;  %v2524_v20 = vpop.f32.mrf.mxu3  ;;  %v1945_v39 = vsel %vm1613_vm1, %v1940_v1, %v1944_v63  ;;  %v8628_v62 = vor.u32 %v6919_v53, %v6192_v7  ;;  %v1836_v7 = vor.u32 %v1834_v22, %v1816_v30  ;;  %v6204_v30 = vld [vmem:[#allocation2 + $0xf8] sm:$0xf] }
 0x244   : > { %v2525_v32 = vadd.f32 %v8356_v13, %v2524_v20 }
 0x245   : > { %v2616_v57 = vpop.f32.mrf.mxu0 }
 0x246   : > { %v8612_v21 = vadd.f32 %v2613_v51, %v2525_v32  ;;  %2783 = vmatmul.bf16.gmra.mxu2 %v1945_v39  ;;  %v1838_v32 = vshll.u32 %v8628_v62, 16 }
 0x248   : > { %2842 = vmatmul.bf16.gmra.mxu3 %v1809_v26  ;;  %2931 = vmatmul.bf16.gmra.mxu0 %v1817_v41  ;;  %v1962_v26 = vshrl.u32 %v8587_v52, 16  ;;  %v1968_v41 = vrot.slane %v1966_v14, 1  ;;  %v1840_v53 = vrot.slane %v1838_v32, 1  ;;  %v6922_v14 = vld [vmem:[#allocation2 + $0x100] sm:$0xf0] }
 0x249   : > { %v2744_v51 = vpop.f32.mrf.mxu2 }
 0x24a   : > { %v2675_v0 = vpop.f32.mrf.mxu1  ;;  %v8626_v50 = vadd.f32 %v2744_v51, %v8472_v19  ;;  %v1826_v19 = vshrl.u32 %v8589_v44, 16  ;;  %v1964_v44 = vor.u32 %v1962_v26, %v1944_v63 }
 0x24b   : > { %v8618_v35 = vadd.f32 %v2675_v0, %v8404_v42  ;;  %v2527_v31 = vpop.f32.mrf.mxu3  ;;  %v1830_v42 = vshll.u32 %v8622_v61, 16  ;;  %v8648_v0 = vld [vmem:[#allocation2 + $0x180] sm:$0x11] }
 0x24c   : > { %v2528_v6 = vadd.f32 %v8356_v13, %v2527_v31  ;;  %v1828_v48 = vor.u32 %v1826_v19, %v1808_v33  ;;  %v1969_v31 = vsel %vm1613_vm1, %v1964_v44, %v1968_v41  ;;  %v1559_v51 = vunpack.c.l.b16 %v8648_v0 }
 0x24d   : > { %v2618_v17 = vpop.f32.mrf.mxu0  ;;  %v1832_v23 = vrot.slane %v1830_v42, 1  ;;  %v8667_v19 = vor.u32 %v6922_v14, %v6204_v30  ;;  %v1986_v44 = vshrl.u32 %v8620_v16, 16 }
 0x24e   : > { %v8630_v20 = vadd.f32 %v2616_v57, %v2528_v6  ;;  %v6198_v6 = vld [vmem:[#allocation2 + $0xfc] sm:$0xf0]  ;;  %v1610_v36 = vpack.c.b16 %v1559_v51, %v1559_v51 }
 0x24f   : > { %v1833_v52 = vsel %vm1613_vm1, %v1828_v48, %v1832_v23 }
 0x251   : > { %v2746_v39 = vpop.f32.mrf.mxu2 }
 0x252   : > { %v2677_v1 = vpop.f32.mrf.mxu1  ;;  %v8646_v10 = vadd.f32 %v2746_v39, %v8495_v45  ;;  %v6920_v45 = vld [vmem:[#allocation2 + $0xf4] sm:$0xf] }
 0x253   : > { %v8641_v9 = vadd.f32 %v2677_v1, %v8422_v55  ;;  %v2529_v57 = vpop.f32.mrf.mxu3  ;;  %v8656_v33 = vor.u32 %v6920_v45, %v6198_v6  ;;  %v1988_v45 = vor.u32 %v1986_v44, %v1968_v41 }
 0x254   : > { %v2530_v12 = vadd.f32 %v8356_v13, %v2529_v57  ;;  %v1841_v13 = vsel %vm1613_vm1, %v1836_v7, %v1840_v53  ;;  %v1858_v7 = vshrl.u32 %v8628_v62, 16 }
 0x255   : > { %v2897_v55 = vpop.f32.mrf.mxu0  ;;  %v1854_v39 = vshll.u32 %v8656_v33, 16 }
 0x256   : > { %v8650_v40 = vadd.f32 %v2618_v17, %v2530_v12  ;;  %2788 = vmatmul.bf16.gmra.mxu2 %v1969_v31  ;;  %v7018_v17 = vld [vmem:[%s9971_s2 + $0x180] sm:$0xff]  ;;  %v1990_v12 = vshll.u32 %v1610_v36, 16  ;;  %v1850_v31 = vshrl.u32 %v8622_v61, 16  ;;  %v1860_v14 = vor.u32 %v1858_v7, %v1840_v53  ;;  %v6923_v53 = vld [vmem:[#allocation2 + $0x10c] sm:$0xf] }
 0x257   : > { %3602 = vmatpush.bf16.msrb.mxu1 %v7018_v17 }
 0x258   : > { %2847 = vmatmul.bf16.gmra.mxu3 %v1833_v52  ;;  %2936 = vmatmul.bf16.gmra.mxu0 %v1841_v13  ;;  %v1992_v30 = vrot.slane %v1990_v12, 1  ;;  %v1852_v16 = vor.u32 %v1850_v31, %v1832_v23 }
 0x259   : > { %v2749_v22 = vpop.f32.mrf.mxu2 }
 0x25a   : > { %v2680_v63 = vpop.f32.mrf.mxu1  ;;  %v8665_v1 = vadd.f32 %v2749_v22, %v8513_v38  ;;  %v1856_v38 = vrot.slane %v1854_v39, 1  ;;  %v1993_v61 = vsel %vm1613_vm1, %v1988_v45, %v1992_v30 }
 0x25b   : > { %v8662_v42 = vadd.f32 %v2680_v63, %v8440_v37  ;;  %v2808_v32 = vpop.f32.mrf.mxu3  ;;  %v1862_v37 = vshll.u32 %v8667_v19, 16 }
 0x25c   : > { %v2809_v26 = vadd.f32 %v2808_v32, %v8436_v47  ;;  %v6925_v32 = vld [vmem:[#allocation2 + $0x118] sm:$0xf0] }
 0x25d   : > { %v2899_v57 = vpop.f32.mrf.mxu0  ;;  %v1864_v63 = vrot.slane %v1862_v37, 1 }
 0x25e   : > { %v2898_v52 = vadd.f32 %v2897_v55, %v2809_v26  ;;  %v6210_v55 = vld [vmem:[#allocation2 + $0x114] sm:$0xf0] }
 0x25f   : > { %v1865_v41 = vsel %vm1613_vm1, %v1860_v14, %v1864_v63  ;;  %v8688_v39 = vor.u32 %v6923_v53, %v6210_v55  ;;  %v1874_v14 = vshrl.u32 %v8656_v33, 16  ;;  %v6222_v33 = vld [vmem:[#allocation2 + $0x12c] sm:$0xf0] }
 0x260   : > { %7365 = vtanh.f32 %v2898_v52 }
 0x261   : > { %v2751_v6 = vpop.f32.mrf.mxu2  ;;  %v1878_v52 = vshll.u32 %v8688_v39, 16 }
 0x262   : > { %v2682_v48 = vpop.f32.mrf.mxu1  ;;  %v8679_v47 = vadd.f32 %v2751_v6, %v8533_v5  ;;  %v6216_v5 = vld [vmem:[#allocation2 + $0x110] sm:$0xf]  ;;  %v1882_v6 = vshrl.u32 %v8667_v19, 16  ;;  %v1876_v19 = vor.u32 %v1874_v14, %v1856_v38 }
 0x263   : > { %v8676_v51 = vadd.f32 %v2682_v48, %v8462_v56  ;;  %v2810_v13 = vpop.f32.mrf.mxu3  ;;  %v1857_v56 = vsel %vm1613_vm1, %v1852_v16, %v1856_v38  ;;  %v6217_v12 = vor.u32 %v6925_v32, %v6216_v5  ;;  %v1880_v16 = vrot.slane %v1878_v52, 1  ;;  %v6228_v32 = vld [vmem:[#allocation2 + $0x128] sm:$0xf] }
 0x264   : > { %v2811_v62 = vadd.f32 %v2810_v13, %v8457_v43 }
 0x265   : > { %v2902_v22 = vpop.f32.mrf.mxu0 }
 0x266   : > { %v2900_v17 = vadd.f32 %v2899_v57, %v2811_v62  ;;  %2793 = vmatmul.bf16.gmra.mxu2 %v1993_v61  ;;  %v7366_v7 = vpop.eup %7365  ;;  %v1884_v61 = vor.u32 %v1882_v6, %v1864_v63 }
 0x268   : > { %7367 = vtanh.f32 %v2900_v17  ;;  %2852 = vmatmul.bf16.gmra.mxu3 %v1857_v56  ;;  %2941 = vmatmul.bf16.gmra.mxu0 %v1865_v41 }
 0x269   : > { %v2754_v36 = vpop.f32.mrf.mxu2 }
 0x26a   : > { %v2685_v43 = vpop.f32.mrf.mxu1  ;;  %v8691_v26 = vadd.f32 %v2754_v36, %v8546_v27 }
 0x26b   : > { %v8686_v23 = vadd.f32 %v2685_v43, %v8486_v24  ;;  %v2813_v57 = vpop.f32.mrf.mxu3  ;;  %v1886_v24 = vshll.u32 %v6217_v12, 16 }
 0x26c   : > { %v2814_v31 = vadd.f32 %v2813_v57, %v8479_v15 }
 0x26d   : > { %v2904_v44 = vpop.f32.mrf.mxu0  ;;  %v1888_v56 = vrot.slane %v1886_v24, 1  ;;  %v1906_v24 = vshrl.u32 %v6217_v12, 16 }
 0x26e   : > { %v7368_v37 = vpop.eup %7367  ;;  %v2903_v45 = vadd.f32 %v2902_v22, %v2814_v31  ;;  %v1881_v22 = vsel %vm1613_vm1, %v1876_v19, %v1880_v16 }
 0x26f   : > { %v7051_v48 = vpack.c.bf16 %v7368_v37, %v7366_v7  ;;  %v1908_v19 = vor.u32 %v1906_v24, %v1888_v56 }
 0x270   : > { %7369 = vtanh.f32 %v2903_v45 }
 0x271   : > { %7052 = vst [vmem:[#allocation3] sm:$0xff] %v7051_v48   ;;  %v2756_v27 = vpop.f32.mrf.mxu2 }
 0x272   : > { %v2687_v13 = vpop.f32.mrf.mxu1  ;;  %v8701_v17 = vadd.f32 %v2756_v27, %v8569_v28  ;;  %v6928_v28 = vld [vmem:[#allocation2 + $0x130] sm:$0xf0]  ;;  %v1898_v27 = vshrl.u32 %v8688_v39, 16 }
 0x273   : > { %v8697_v30 = vadd.f32 %v2687_v13, %v8507_v4  ;;  %v2815_v62 = vpop.f32.mrf.mxu3  ;;  %v1889_v4 = vsel %vm1613_vm1, %v1884_v61, %v1888_v56  ;;  %v8714_v7 = vor.u32 %v6928_v28, %v6228_v32  ;;  %v6234_v32 = vld [vmem:[#allocation2 + $0x144] sm:$0xf0]  ;;  %v6931_v28 = vld [vmem:[#allocation2 + $0x148] sm:$0xf0] }
 0x274   : > { %v2816_v15 = vadd.f32 %v2815_v62, %v8500_v11  ;;  %v6926_v11 = vld [vmem:[#allocation2 + $0x124] sm:$0xf] }
 0x275   : > { %v2907_v55 = vpop.f32.mrf.mxu0  ;;  %v8709_v36 = vor.u32 %v6926_v11, %v6222_v33 }
 0x276   : > { %v2905_v41 = vadd.f32 %v2904_v44, %v2816_v15  ;;  %v7370_v37 = vpop.eup %7369 }
 0x277   : > { %v1902_v6 = vshll.u32 %v8709_v36, 16 }
 0x278   : > { %7371 = vtanh.f32 %v2905_v41  ;;  %2857 = vmatmul.bf16.gmra.mxu3 %v1881_v22  ;;  %v6986_v5 = vld [vmem:[#allocation3] sm:$0xff]  ;;  %2946 = vmatmul.bf16.gmra.mxu0 %v1889_v4  ;;  %v1900_v4 = vor.u32 %v1898_v27, %v1880_v16 }
 0x279   : > { %3603 = vmatmul.bf16.vlgmr.msrb.gmra.mxu1 %v6986_v5  ;;  %v2759_v38 = vpop.f32.mrf.mxu2  ;;  %v7002_v13 = vld [vmem:[#allocation3] sm:$0xff]  ;;  %v8723_v61 = vrot.slane %v1902_v6, 1 }
 0x27a   : > { %v2690_v43 = vpop.f32.mrf.mxu1  ;;  %v8712_v57 = vadd.f32 %v2759_v38, %v8585_v54  ;;  %v3321_v22 = vshll.u32 %v7002_v13, 16  ;;  %v3319_v16 = vshrl.u32 %v7002_v13, 16  ;;  %v6929_v38 = vld [vmem:[#allocation2 + $0x13c] sm:$0xf] }
 0x27b   : > { %v8707_v63 = vadd.f32 %v2690_v43, %v8525_v60  ;;  %v2818_v53 = vpop.f32.mrf.mxu3  ;;  %v1910_v60 = vshll.u32 %v8714_v7, 16 }
 0x27c   : > { %v2819_v52 = vadd.f32 %v2818_v53, %v8521_v29 }
 0x27d   : > { %v2909_v48 = vpop.f32.mrf.mxu0  ;;  %v1912_v41 = vrot.slane %v1910_v60, 1 }
 0x27e   : > { %v7372_v44 = vpop.eup %7371  ;;  %v2908_v54 = vadd.f32 %v2907_v55, %v2819_v52 }
 0x27f   : > { %v7056_v31 = vpack.c.bf16 %v7372_v44, %v7370_v37  ;;  %v1913_v39 = vsel %vm1613_vm1, %v1908_v19, %v1912_v41  ;;  %v6652_v19 = vld [vmem:[%s9972_s3] sm:$0xf] }
 0x280   : > { %7373 = vtanh.f32 %v2908_v54 }
 0x281   : > { %7128 = vst [vmem:[#allocation3 + $0x8] sm:$0xff] %v7056_v31   ;;  %v2761_v14 = vpop.f32.mrf.mxu2 }
 0x282   : > { %v2692_v45 = vpop.f32.mrf.mxu1  ;;  %v8726_v29 = vadd.f32 %v2761_v14, %v8605_v46  ;;  %v3323_v46 = vrot.slane %v3321_v22, 1 }
 0x283   : > { %v8721_v62 = vadd.f32 %v2692_v45, %v8540_v34  ;;  %v2820_v15 = vpop.f32.mrf.mxu3  ;;  %v1905_v34 = vsel %vm1613_vm1, %v1900_v4, %v8723_v61  ;;  %v1922_v4 = vshrl.u32 %v8709_v36, 16 }
 0x284   : > { %v2821_v12 = vadd.f32 %v2820_v15, %v8538_v58  ;;  %v6240_v58 = vld [vmem:[#allocation2 + $0x140] sm:$0xf]  ;;  %v3324_v52 = vor.u32 %v3323_v46, %v3319_v16  ;;  %v1930_v15 = vshrl.u32 %v8714_v7, 16  ;;  %v6654_v7 = vld [vmem:[%s9972_s3 + $0x18] sm:$0xf0] }
 0x285   : > { %v2912_v33 = vpop.f32.mrf.mxu0  ;;  %v8743_v24 = vor.u32 %v6931_v28, %v6240_v58 }
 0x286   : > { %v2910_v5 = vadd.f32 %v2909_v48, %v2821_v12  ;;  %v8738_v48 = vor.u32 %v6929_v38, %v6234_v32  ;;  %v7374_v60 = vpop.eup %7373  ;;  %v7037_v12 = vld [vmem:[%s9972_s3 + $0x14] sm:$0xf0] }
 0x288   : > { %7375 = vtanh.f32 %v2910_v5  ;;  %2862 = vmatmul.bf16.gmra.mxu3 %v1905_v34  ;;  %v6987_v55 = vld [vmem:[#allocation3 + $0x8] sm:$0xff]  ;;  %2951 = vmatmul.bf16.gmra.mxu0 %v1913_v39  ;;  %v1926_v14 = vshll.u32 %v8738_v48, 16  ;;  %v7034_v5 = vld [vmem:[%s9972_s3 + $0x4] sm:$0xf] }
 0x289   : > { %v8732_v56 = vld [vmem:[#allocation3 + $0x8] sm:$0xff]  ;;  %3608 = vmatmul.bf16.gmra.mxu1 %v6987_v55  ;;  %v2764_v37 = vpop.f32.mrf.mxu2  ;;  %v6657_v58 = vor.u32 %v7034_v5, %v6654_v7 }
 0x28a   : > { %v2695_v43 = vpop.f32.mrf.mxu1  ;;  %v3326_v11 = vshll.u32 %v8732_v56, 16  ;;  %v8741_v31 = vadd.f32 %v2764_v37, %v8618_v35  ;;  %v1934_v35 = vshll.u32 %v8743_v24, 16  ;;  %v1928_v32 = vrot.slane %v1926_v14, 1 }
 0x28b   : > { %v8736_v53 = vadd.f32 %v2695_v43, %v8561_v3  ;;  %v2823_v44 = vpop.f32.mrf.mxu3  ;;  %v1932_v43 = vor.u32 %v1930_v15, %v1912_v41  ;;  %4039 = vmatpush.bf16.msrb.mxu0 %v6657_v58  ;;  %v6934_v41 = vld [vmem:[#allocation2 + $0x160] sm:$0xf0] }
 0x28c   : > { %v3328_v6 = vrot.slane %v3326_v11, 1  ;;  %v2824_v3 = vadd.f32 %v2823_v44, %v8554_v2  ;;  %v6653_v2 = vor.u32 %v7037_v12, %v6652_v19  ;;  %v1936_v16 = vrot.slane %v1934_v35, 1 }
 0x28d   : > { %v2914_v13 = vpop.f32.mrf.mxu0  ;;  %v1924_v11 = vor.u32 %v1922_v4, %v8723_v61  ;;  %v3330_v61 = vshrl.u32 %v8732_v56, 16 }
 0x28e   : > { %v7376_v45 = vpop.eup %7375  ;;  %v3329_v27 = vsel %vm1613_vm1, %v3324_v52, %v3328_v6  ;;  %v2913_v34 = vadd.f32 %v2912_v33, %v2824_v3  ;;  %3950 = vmatpush.bf16.msrb.mxu3 %v6653_v2  ;;  %v1937_v37 = vsel %vm1613_vm1, %v1932_v43, %v1936_v16  ;;  %v6246_v52 = vld [vmem:[#allocation2 + $0x15c] sm:$0xf0]  ;;  %v1946_v43 = vshrl.u32 %v8738_v48, 16 }
 0x28f   : > { %v7061_v54 = vpack.c.bf16 %v7376_v45, %v7374_v60  ;;  %3692 = vmatmul.bf16.vlgmr.msrb.gmra.mxu2 %v3329_v27  ;;  %v3332_v35 = vor.u32 %v3330_v61, %v3328_v6 }
 0x290   : > { %7377 = vtanh.f32 %v2913_v34  ;;  %v1954_v34 = vshrl.u32 %v8743_v24, 16 }
 0x291   : > { %7129 = vst [vmem:[#allocation3 + $0x10] sm:$0xff] %v7061_v54   ;;  %v2766_v55 = vpop.f32.mrf.mxu2 }
 0x292   : > { %v2697_v22 = vpop.f32.mrf.mxu1  ;;  %v8767_v28 = vadd.f32 %v2766_v55, %v8641_v9 }
 0x293   : > { %v8764_v39 = vadd.f32 %v2697_v22, %v8579_v59  ;;  %v2825_v46 = vpop.f32.mrf.mxu3  ;;  %v1929_v59 = vsel %vm1613_vm1, %v1924_v11, %v1928_v32 }
 0x294   : > { %v2826_v36 = vadd.f32 %v2825_v46, %v8574_v8  ;;  %v6252_v8 = vld [vmem:[#allocation2 + $0x158] sm:$0xf] }
 0x295   : > { %v2917_v33 = vpop.f32.mrf.mxu0  ;;  %v8785_v12 = vor.u32 %v6934_v41, %v6252_v8  ;;  %v6258_v41 = vld [vmem:[#allocation2 + $0x174] sm:$0xf0] }
 0x296   : > { %v2915_v38 = vadd.f32 %v2914_v13, %v2826_v36  ;;  %v6932_v13 = vld [vmem:[#allocation2 + $0x154] sm:$0xf]  ;;  %v7378_v22 = vpop.eup %7377 }
 0x297   : > { %v8780_v14 = vor.u32 %v6932_v13, %v6246_v52 }
 0x298   : > { %7379 = vtanh.f32 %v2915_v38  ;;  %2867 = vmatmul.bf16.gmra.mxu3 %v1929_v59  ;;  %v6988_v44 = vld [vmem:[#allocation3 + $0x10] sm:$0xff]  ;;  %2956 = vmatmul.bf16.gmra.mxu0 %v1937_v37  ;;  %v1956_v59 = vor.u32 %v1954_v34, %v1936_v16  ;;  %v1948_v37 = vor.u32 %v1946_v43, %v1928_v32  ;;  %v6935_v16 = vld [vmem:[#allocation2 + $0x16c] sm:$0xf] }
 0x299   : > { %v8773_v9 = vld [vmem:[#allocation3 + $0x10] sm:$0xff]  ;;  %3613 = vmatmul.bf16.gmra.mxu1 %v6988_v44  ;;  %v2769_v54 = vpop.f32.mrf.mxu2  ;;  %v1950_v7 = vshll.u32 %v8780_v14, 16  ;;  %v1970_v43 = vshrl.u32 %v8780_v14, 16 }
 0x29a   : > { %v2700_v60 = vpop.f32.mrf.mxu1  ;;  %v3334_v45 = vshll.u32 %v8773_v9, 16  ;;  %v8783_v15 = vadd.f32 %v2769_v54, %v8662_v42  ;;  %v1958_v42 = vshll.u32 %v8785_v12, 16 }
 0x29b   : > { %v8778_v27 = vadd.f32 %v2700_v60, %v8597_v49  ;;  %v2828_v3 = vpop.f32.mrf.mxu3  ;;  %v1952_v11 = vrot.slane %v1950_v7, 1  ;;  %v6937_v60 = vld [vmem:[#allocation2 + $0x178] sm:$0xf0] }
 0x29c   : > { %v3336_v19 = vrot.slane %v3334_v45, 1  ;;  %v2829_v49 = vadd.f32 %v2828_v3, %v8593_v25  ;;  %v1960_v24 = vrot.slane %v1958_v42, 1  ;;  %v8806_v3 = vor.u32 %v6935_v16, %v6258_v41 }
 0x29d   : > { %v2919_v56 = vpop.f32.mrf.mxu0  ;;  %v1978_v42 = vshrl.u32 %v8785_v12, 16 }
 0x29e   : > { %v7380_v4 = vpop.eup %7379  ;;  %v3337_v2 = vsel %vm1613_vm1, %v3332_v35, %v3336_v19  ;;  %v2918_v55 = vadd.f32 %v2917_v33, %v2829_v49  ;;  %v1953_v33 = vsel %vm1613_vm1, %v1948_v37, %v1952_v11  ;;  %v1974_v34 = vshll.u32 %v8806_v3, 16 }
 0x29f   : > { %v7066_v5 = vpack.c.bf16 %v7380_v4, %v7378_v22  ;;  %3697 = vmatmul.bf16.gmra.mxu2 %v3337_v2  ;;  %v1980_v37 = vor.u32 %v1978_v42, %v1960_v24 }
 0x2a0   : > { %7381 = vtanh.f32 %v2918_v55 }
 0x2a1   : > { %7130 = vst [vmem:[#allocation3 + $0x18] sm:$0xff] %v7066_v5   ;;  %v2771_v58 = vpop.f32.mrf.mxu2 }
 0x2a2   : > { %v2702_v6 = vpop.f32.mrf.mxu1  ;;  %v8797_v25 = vadd.f32 %v2771_v58, %v8676_v51  ;;  %v6264_v51 = vld [vmem:[#allocation2 + $0x170] sm:$0xf] }
 0x2a3   : > { %v8793_v46 = vadd.f32 %v2702_v6, %v8612_v21  ;;  %v2830_v36 = vpop.f32.mrf.mxu3  ;;  %v1961_v21 = vsel %vm1613_vm1, %v1956_v59, %v1960_v24 }
 0x2a4   : > { %v2831_v38 = vadd.f32 %v2830_v36, %v8610_v18  ;;  %v3338_v18 = vshrl.u32 %v8773_v9, 16 }
 0x2a5   : > { %v2922_v52 = vpop.f32.mrf.mxu0 }
 0x2a6   : > { %v2920_v44 = vadd.f32 %v2919_v56, %v2831_v38  ;;  %v3340_v22 = vor.u32 %v3338_v18, %v3336_v19  ;;  %v8811_v56 = vor.u32 %v6937_v60, %v6264_v51  ;;  %v7382_v2 = vpop.eup %7381  ;;  %v1976_v38 = vrot.slane %v1974_v34, 1 }
 0x2a8   : > { %7383 = vtanh.f32 %v2920_v44  ;;  %2872 = vmatmul.bf16.gmra.mxu3 %v1953_v33  ;;  %v6989_v8 = vld [vmem:[#allocation3 + $0x18] sm:$0xff]  ;;  %2961 = vmatmul.bf16.gmra.mxu0 %v1961_v21  ;;  %v1972_v44 = vor.u32 %v1970_v43, %v1952_v11 }
 0x2a9   : > { %v7005_v48 = vld [vmem:[#allocation3 + $0x18] sm:$0xff]  ;;  %3618 = vmatmul.bf16.gmra.mxu1 %v6989_v8  ;;  %v2774_v13 = vpop.f32.mrf.mxu2 }
 0x2aa   : > { %v2705_v61 = vpop.f32.mrf.mxu1  ;;  %v3342_v32 = vshll.u32 %v7005_v48, 16  ;;  %v8809_v35 = vadd.f32 %v2774_v13, %v8686_v23  ;;  %v1982_v23 = vshll.u32 %v8811_v56, 16  ;;  %v1140_v33 = vld [vmem:[#allocation2 + $0x188] sm:$0x1] }
 0x2ab   : > { %v8804_v45 = vadd.f32 %v2705_v61, %v8630_v20  ;;  %v2833_v54 = vpop.f32.mrf.mxu3  ;;  %v1561_v51 = vunpack.c.l.b16 %v1140_v33 }
 0x2ac   : > { %v3344_v4 = vrot.slane %v3342_v32, 1  ;;  %v2834_v20 = vadd.f32 %v2833_v54, %v8626_v50  ;;  %v1984_v12 = vrot.slane %v1982_v23, 1 }
 0x2ad   : > { %v2924_v49 = vpop.f32.mrf.mxu0 }
 0x2ae   : > { %v7384_v5 = vpop.eup %7383  ;;  %v3345_v9 = vsel %vm1613_vm1, %v3340_v22, %v3344_v4  ;;  %v2923_v6 = vadd.f32 %v2922_v52, %v2834_v20  ;;  %v1560_v52 = vunpack.c.h.b16 %v8648_v0  ;;  %v1985_v14 = vsel %vm1613_vm1, %v1980_v37, %v1984_v12 }
 0x2af   : > { %v7071_v7 = vpack.c.bf16 %v7384_v5, %v7382_v2  ;;  %3702 = vmatmul.bf16.gmra.mxu2 %v3345_v9  ;;  %v1612_v0 = vpack.c.b16 %v1561_v51, %v1561_v51  ;;  %v2002_v9 = vshrl.u32 %v8811_v56, 16 }
 0x2b0   : > { %7385 = vtanh.f32 %v2923_v6  ;;  %v1611_v61 = vpack.c.b16 %v1560_v52, %v1560_v52 }
 0x2b1   : > { %7131 = vst [vmem:[#allocation3 + $0x20] sm:$0xff] %v7071_v7   ;;  %v2776_v58 = vpop.f32.mrf.mxu2  ;;  %v2006_v7 = vshll.u32 %v1612_v0, 16 }
 0x2b2   : > { %v2707_v19 = vpop.f32.mrf.mxu1  ;;  %v8823_v50 = vadd.f32 %v2776_v58, %v8697_v30  ;;  %v2004_v58 = vor.u32 %v2002_v9, %v1984_v12 }
 0x2b3   : > { %v8819_v55 = vadd.f32 %v2707_v19, %v8650_v40  ;;  %v2835_v36 = vpop.f32.mrf.mxu3  ;;  %v1977_v40 = vsel %vm1613_vm1, %v1972_v44, %v1976_v38 }
 0x2b4   : > { %v2836_v59 = vadd.f32 %v2835_v36, %v8646_v10  ;;  %v3346_v10 = vshrl.u32 %v7005_v48, 16  ;;  %v1998_v48 = vshll.u32 %v1611_v61, 16 }
 0x2b5   : > { %v2927_v8 = vpop.f32.mrf.mxu0 }
 0x2b6   : > { %v2925_v21 = vadd.f32 %v2924_v49, %v2836_v59  ;;  %v3348_v32 = vor.u32 %v3346_v10, %v3344_v4  ;;  %v7386_v13 = vpop.eup %7385  ;;  %v2000_v23 = vrot.slane %v1998_v48, 1 }
 0x2b8   : > { %7387 = vtanh.f32 %v2925_v21  ;;  %2877 = vmatmul.bf16.gmra.mxu3 %v1977_v40  ;;  %v6990_v41 = vld [vmem:[#allocation3 + $0x20] sm:$0xff]  ;;  %2966 = vmatmul.bf16.gmra.mxu0 %v1985_v14 }
 0x2b9   : > { %v7006_v30 = vld [vmem:[#allocation3 + $0x20] sm:$0xff]  ;;  %3623 = vmatmul.bf16.gmra.mxu1 %v6990_v41  ;;  %v2779_v11 = vpop.f32.mrf.mxu2 }
 0x2ba   : > { %v3350_v24 = vshll.u32 %v7006_v30, 16  ;;  %v8830_v18 = vadd.f32 %v2779_v11, %v8707_v63  ;;  %v1994_v63 = vshrl.u32 %v8806_v3, 16 }
 0x2bb   : > { %v2838_v60 = vpop.f32.mrf.mxu3 }
 0x2bc   : > { %v3352_v16 = vrot.slane %v3350_v24, 1  ;;  %v2839_v49 = vadd.f32 %v2838_v60, %v8665_v1  ;;  %v1996_v42 = vor.u32 %v1994_v63, %v1976_v38  ;;  %v2008_v1 = vrot.slane %v2006_v7, 1 }
 0x2bd   : > { %v2929_v22 = vpop.f32.mrf.mxu0  ;;  %v3354_v38 = vshrl.u32 %v7006_v30, 16 }
 0x2be   : > { %v7388_v54 = vpop.eup %7387  ;;  %v3353_v2 = vsel %vm1613_vm1, %v3348_v32, %v3352_v16  ;;  %v2928_v20 = vadd.f32 %v2927_v8, %v2839_v49  ;;  %v2001_v56 = vsel %vm1613_vm1, %v1996_v42, %v2000_v23  ;;  %v2009_v3 = vsel %vm1613_vm1, %v2004_v58, %v2008_v1 }
 0x2bf   : > { %v7076_v5 = vpack.c.bf16 %v7388_v54, %v7386_v13  ;;  %3707 = vmatmul.bf16.gmra.mxu2 %v3353_v2  ;;  %v3356_v12 = vor.u32 %v3354_v38, %v3352_v16 }
 0x2c0   : > { %7389 = vtanh.f32 %v2928_v20 }
 0x2c1   : > { %7132 = vst [vmem:[#allocation3 + $0x28] sm:$0xff] %v7076_v5   ;;  %v2781_v4 = vpop.f32.mrf.mxu2 }
 0x2c2   : > { %v8837_v19 = vadd.f32 %v2781_v4, %v8721_v62 }
 0x2c3   : > { %v2840_v34 = vpop.f32.mrf.mxu3 }
 0x2c4   : > { %v2841_v6 = vadd.f32 %v2840_v34, %v8679_v47 }
 0x2c5   : > { %v2932_v43 = vpop.f32.mrf.mxu0 }
 0x2c6   : > { %v2930_v36 = vadd.f32 %v2929_v22, %v2841_v6  ;;  %v7390_v8 = vpop.eup %7389 }
 0x2c8   : > { %7391 = vtanh.f32 %v2930_v36  ;;  %2882 = vmatmul.bf16.gmra.mxu3 %v2001_v56  ;;  %v6991_v59 = vld [vmem:[#allocation3 + $0x28] sm:$0xff]  ;;  %2971 = vmatmul.bf16.gmra.mxu0 %v2009_v3 }
 0x2c9   : > { %v7007_v37 = vld [vmem:[#allocation3 + $0x28] sm:$0xff]  ;;  %3628 = vmatmul.bf16.gmra.mxu1 %v6991_v59  ;;  %v2784_v44 = vpop.f32.mrf.mxu2 }
 0x2ca   : > { %v3358_v62 = vshll.u32 %v7007_v37, 16  ;;  %v8843_v47 = vadd.f32 %v2784_v44, %v8736_v53  ;;  %v3362_v0 = vshrl.u32 %v7007_v37, 16 }
 0x2cb   : > { %v2843_v33 = vpop.f32.mrf.mxu3 }
 0x2cc   : > { %v3360_v21 = vrot.slane %v3358_v62, 1  ;;  %v2844_v51 = vadd.f32 %v2843_v33, %v8691_v26 }
 0x2cd   : > { %v2934_v52 = vpop.f32.mrf.mxu0 }
 0x2ce   : > { %v7392_v40 = vpop.eup %7391  ;;  %v3361_v14 = vsel %vm1613_vm1, %v3356_v12, %v3360_v21  ;;  %v2933_v10 = vadd.f32 %v2932_v43, %v2844_v51  ;;  %v3364_v2 = vor.u32 %v3362_v0, %v3360_v21 }
 0x2cf   : > { %v7081_v41 = vpack.c.bf16 %v7392_v40, %v7390_v8  ;;  %3712 = vmatmul.bf16.gmra.mxu2 %v3361_v14 }
 0x2d0   : > { %7393 = vtanh.f32 %v2933_v10 }
 0x2d1   : > { %7133 = vst [vmem:[#allocation3 + $0x30] sm:$0xff] %v7081_v41   ;;  %v2786_v30 = vpop.f32.mrf.mxu2 }
 0x2d2   : > { %v8848_v11 = vadd.f32 %v2786_v30, %v8764_v39 }
 0x2d3   : > { %v2845_v24 = vpop.f32.mrf.mxu3 }
 0x2d4   : > { %v2846_v53 = vadd.f32 %v2845_v24, %v8701_v17 }
 0x2d5   : > { %v2937_v61 = vpop.f32.mrf.mxu0 }
 0x2d6   : > { %v2935_v60 = vadd.f32 %v2934_v52, %v2846_v53  ;;  %v7394_v39 = vpop.eup %7393 }
 0x2d8   : > { %7395 = vtanh.f32 %v2935_v60  ;;  %v6992_v32 = vld [vmem:[#allocation3 + $0x30] sm:$0xff] }
 0x2d9   : > { %v7008_v16 = vld [vmem:[#allocation3 + $0x30] sm:$0xff]  ;;  %3633 = vmatmul.bf16.gmra.mxu1 %v6992_v32  ;;  %v2789_v26 = vpop.f32.mrf.mxu2 }
 0x2da   : > { %v3366_v13 = vshll.u32 %v7008_v16, 16  ;;  %v8852_v22 = vadd.f32 %v2789_v26, %v8778_v27  ;;  %v3370_v1 = vshrl.u32 %v7008_v16, 16 }
 0x2db   : > { %v2848_v54 = vpop.f32.mrf.mxu3 }
 0x2dc   : > { %v3368_v5 = vrot.slane %v3366_v13, 1  ;;  %v2849_v7 = vadd.f32 %v2848_v54, %v8712_v57 }
 0x2dd   : > { %v2939_v48 = vpop.f32.mrf.mxu0 }
 0x2de   : > { %v7396_v49 = vpop.eup %7395  ;;  %v3369_v17 = vsel %vm1613_vm1, %v3364_v2, %v3368_v5  ;;  %v2938_v63 = vadd.f32 %v2937_v61, %v2849_v7  ;;  %v3372_v3 = vor.u32 %v3370_v1, %v3368_v5  ;;  %v3829_v1 = vld [vmem:[%s9972_s3 + $0x40] sm:$0xff] }
 0x2df   : > { %v7086_v9 = vpack.c.bf16 %v7396_v49, %v7394_v39  ;;  %3717 = vmatmul.bf16.gmra.mxu2 %v3369_v17 }
 0x2e0   : > { %7397 = vtanh.f32 %v2938_v63 }
 0x2e1   : > { %7134 = vst [vmem:[#allocation3 + $0x38] sm:$0xff] %v7086_v9   ;;  %v2791_v20 = vpop.f32.mrf.mxu2 }
 0x2e2   : > { %v8857_v34 = vadd.f32 %v2791_v20, %v8793_v46 }
 0x2e3   : > { %v2850_v4 = vpop.f32.mrf.mxu3 }
 0x2e4   : > { %v2851_v27 = vadd.f32 %v2850_v4, %v8726_v29 }
 0x2e5   : > { %v2942_v23 = vpop.f32.mrf.mxu0 }
 0x2e6   : > { %v2940_v42 = vadd.f32 %v2939_v48, %v2851_v27  ;;  %v7398_v46 = vpop.eup %7397 }
 0x2e8   : > { %7399 = vtanh.f32 %v2940_v42  ;;  %v6993_v6 = vld [vmem:[#allocation3 + $0x38] sm:$0xff] }
 0x2e9   : > { %v7009_v58 = vld [vmem:[#allocation3 + $0x38] sm:$0xff]  ;;  %3638 = vmatmul.bf16.gmra.mxu1 %v6993_v6  ;;  %v2794_v57 = vpop.f32.mrf.mxu2 }
 0x2ea   : > { %v3374_v36 = vshll.u32 %v7009_v58, 16  ;;  %v8861_v56 = vadd.f32 %v2794_v57, %v8804_v45  ;;  %v3378_v10 = vshrl.u32 %v7009_v58, 16  ;;  %v3828_v58 = vld [vmem:[%s9972_s3 + $0x38] sm:$0xff] }
 0x2eb   : > { %v2853_v43 = vpop.f32.mrf.mxu3 }
 0x2ec   : > { %v3376_v59 = vrot.slane %v3374_v36, 1  ;;  %v2854_v44 = vadd.f32 %v2853_v43, %v8741_v31  ;;  %v8887_v36 = vld [vmem:[%s9973_s4 + $0x2] ss:$0 sm:$0xff]  ;;  %v3854_v43 = vunpack.c.h.b16 %v3828_v58 }
 0x2ed   : > { %v2944_v38 = vpop.f32.mrf.mxu0 }
 0x2ee   : > { %v7400_v37 = vpop.eup %7399  ;;  %v3377_v29 = vsel %vm1613_vm1, %v3372_v3, %v3376_v59  ;;  %v2943_v33 = vadd.f32 %v2942_v23, %v2854_v44  ;;  %v3380_v24 = vor.u32 %v3378_v10, %v3376_v59  ;;  %v3853_v3 = vunpack.c.l.b16 %v3828_v58 }
 0x2ef   : > { %v7091_v62 = vpack.c.bf16 %v7400_v37, %v7398_v46  ;;  %3722 = vmatmul.bf16.gmra.mxu2 %v3377_v29 }
 0x2f0   : > { %7401 = vtanh.f32 %v2943_v33  ;;  %v3856_v33 = vunpack.c.h.b16 %v3829_v1 }
 0x2f1   : > { %7135 = vst [vmem:[#allocation3 + $0x40] sm:$0xff] %v7091_v62   ;;  %v2796_v12 = vpop.f32.mrf.mxu2  ;;  %v3865_v62 = vpack.c.b16 %v3853_v3, %v3853_v3 }
 0x2f2   : > { %v8866_v8 = vadd.f32 %v2796_v12, %v8819_v55 }
 0x2f3   : > { %v2855_v21 = vpop.f32.mrf.mxu3 }
 0x2f4   : > { %v2856_v45 = vadd.f32 %v2855_v21, %v8767_v28 }
 0x2f5   : > { %v2947_v52 = vpop.f32.mrf.mxu0 }
 0x2f6   : > { %v2945_v40 = vadd.f32 %v2944_v38, %v2856_v45  ;;  %v3604_v14 = vpop.f32.mrf.mxu1  ;;  %v7402_v60 = vpop.eup %7401  ;;  %v3866_v38 = vpack.c.b16 %v3854_v43, %v3854_v43 }
 0x2f7   : > { %v3605_v44 = vadd.f32 %v3604_v14, %v8887_v36 }
 0x2f8   : > { %7403 = vtanh.f32 %v2945_v40  ;;  %v6994_v41 = vld [vmem:[#allocation3 + $0x40] sm:$0xff]  ;;  %v3935_v45 = vsel %vm3924_vm2, %v3866_v38, 0 }
 0x2f9   : > { %v7010_v51 = vld [vmem:[#allocation3 + $0x40] sm:$0xff]  ;;  %3643 = vmatmul.bf16.gmra.mxu1 %v6994_v41  ;;  %4216 = vmatpush.bf16.msra.mxu2 %v3935_v45 }
 0x2fa   : > { %v3382_v31 = vshll.u32 %v7010_v51, 16  ;;  %v3386_v17 = vshrl.u32 %v7010_v51, 16 }
 0x2fb   : > { %v2858_v30 = vpop.f32.mrf.mxu3 }
 0x2fc   : > { %v3384_v53 = vrot.slane %v3382_v31, 1  ;;  %v2859_v28 = vadd.f32 %v2858_v30, %v8783_v15 }
 0x2fd   : > { %v2949_v32 = vpop.f32.mrf.mxu0 }
 0x2fe   : > { %v7404_v61 = vpop.eup %7403  ;;  %v3385_v55 = vsel %vm1613_vm1, %v3380_v24, %v3384_v53  ;;  %v3606_v0 = vpop.f32.mrf.mxu1  ;;  %v2948_v13 = vadd.f32 %v2947_v52, %v2859_v28  ;;  %v3388_v15 = vor.u32 %v3386_v17, %v3384_v53  ;;  %v3932_v52 = vsel %vm3924_vm2, %v3865_v62, 0 }
 0x2ff   : > { %v7096_v16 = vpack.c.bf16 %v7404_v61, %v7402_v60  ;;  %3727 = vmatmul.bf16.gmra.mxu2 %v3385_v55  ;;  %4127 = vmatpush.bf16.msra.mxu1 %v3932_v52  ;;  %v3607_v14 = vadd.f32 %v3606_v0, %v8887_v36 }
 0x300   : > { %7405 = vtanh.f32 %v2948_v13 }
 0x301   : > { %7136 = vst [vmem:[#allocation3 + $0x48] sm:$0xff] %v7096_v16  }
 0x303   : > { %v2860_v26 = vpop.f32.mrf.mxu3 }
 0x304   : > { %v2861_v54 = vadd.f32 %v2860_v26, %v8797_v25 }
 0x305   : > { %v2952_v5 = vpop.f32.mrf.mxu0 }
 0x306   : > { %v2950_v2 = vadd.f32 %v2949_v32, %v2861_v54  ;;  %v8872_v39 = vpop.f32.mrf.mxu1  ;;  %v7406_v20 = vpop.eup %7405 }
 0x308   : > { %7407 = vtanh.f32 %v2950_v2  ;;  %v6995_v49 = vld [vmem:[#allocation3 + $0x48] sm:$0xff] }
 0x309   : > { %v7011_v48 = vld [vmem:[#allocation3 + $0x48] sm:$0xff]  ;;  %3648 = vmatmul.bf16.gmra.mxu1 %v6995_v49 }
 0x30a   : > { %v3390_v9 = vshll.u32 %v7011_v48, 16  ;;  %v3394_v53 = vshrl.u32 %v7011_v48, 16 }
 0x30b   : > { %v2863_v7 = vpop.f32.mrf.mxu3 }
 0x30c   : > { %v3392_v63 = vrot.slane %v3390_v9, 1  ;;  %v2864_v23 = vadd.f32 %v2863_v7, %v8809_v35  ;;  %v3855_v35 = vunpack.c.l.b16 %v3829_v1 }
 0x30d   : > { %v2954_v27 = vpop.f32.mrf.mxu0 }
 0x30e   : > { %v7408_v4 = vpop.eup %7407  ;;  %v3393_v42 = vsel %vm1613_vm1, %v3388_v15, %v3392_v63  ;;  %v8876_v6 = vpop.f32.mrf.mxu1  ;;  %v2953_v59 = vadd.f32 %v2952_v5, %v2864_v23  ;;  %v3867_v29 = vpack.c.b16 %v3855_v35, %v3855_v35  ;;  %v3396_v55 = vor.u32 %v3394_v53, %v3392_v63 }
 0x30f   : > { %v7101_v25 = vpack.c.bf16 %v7408_v4, %v7406_v20  ;;  %3732 = vmatmul.bf16.gmra.mxu2 %v3393_v42  ;;  %v3610_v20 = vadd.f32 %v8872_v39, %v8887_v36 }
 0x310   : > { %v3938_v40 = vsel %vm3924_vm2, %v3867_v29, 0  ;;  %7409 = vtanh.f32 %v2953_v59 }
 0x311   : > { %7137 = vst [vmem:[#allocation3 + $0x50] sm:$0xff] %v7101_v25   ;;  %4305 = vmatpush.bf16.msra.mxu3 %v3938_v40 }
 0x312   : > { %v3693_v57 = vpop.f32.mrf.mxu2 }
 0x313   : > { %v2865_v46 = vpop.f32.mrf.mxu3  ;;  %v3694_v51 = vadd.f32 %v3693_v57, %v3605_v44 }
 0x314   : > { %v2866_v37 = vadd.f32 %v2865_v46, %v8823_v50  ;;  %v3868_v50 = vpack.c.b16 %v3856_v33, %v3856_v33 }
 0x315   : > { %v2957_v21 = vpop.f32.mrf.mxu0 }
 0x316   : > { %v2955_v12 = vadd.f32 %v2954_v27, %v2866_v37  ;;  %v8894_v41 = vpop.f32.mrf.mxu1  ;;  %v3941_v30 = vsel %vm3924_vm2, %v3868_v50, 0  ;;  %v7410_v28 = vpop.eup %7409 }
 0x317   : > { %4394 = vmatpush.bf16.msra.mxu0 %v3941_v30  ;;  %v3615_v50 = vadd.f32 %v8894_v41, %v8887_v36 }
 0x318   : > { %7411 = vtanh.f32 %v2955_v12  ;;  %v6996_v10 = vld [vmem:[#allocation3 + $0x50] sm:$0xff] }
 0x319   : > { %v7012_v31 = vld [vmem:[#allocation3 + $0x50] sm:$0xff]  ;;  %3653 = vmatmul.bf16.gmra.mxu1 %v6996_v10  ;;  %7413 = vtanh.f32 %v3694_v51 }
 0x31a   : > { %v3695_v24 = vpop.f32.mrf.mxu2  ;;  %v3398_v60 = vshll.u32 %v7012_v31, 16  ;;  %v3402_v58 = vshrl.u32 %v7012_v31, 16 }
 0x31b   : > { %v2868_v61 = vpop.f32.mrf.mxu3  ;;  %v3696_v32 = vadd.f32 %v3695_v24, %v3607_v14 }
 0x31c   : > { %v3400_v16 = vrot.slane %v3398_v60, 1  ;;  %v2869_v0 = vadd.f32 %v2868_v61, %v8830_v18 }
 0x31d   : > { %7415 = vtanh.f32 %v3696_v32  ;;  %v2959_v26 = vpop.f32.mrf.mxu0 }
 0x31e   : > { %v7412_v13 = vpop.eup %7411  ;;  %v3401_v54 = vsel %vm1613_vm1, %v3396_v55, %v3400_v16  ;;  %v3616_v5 = vpop.f32.mrf.mxu1  ;;  %v2958_v9 = vadd.f32 %v2957_v21, %v2869_v0  ;;  %v3404_v35 = vor.u32 %v3402_v58, %v3400_v16 }
 0x31f   : > { %v7106_v2 = vpack.c.bf16 %v7412_v13, %v7410_v28  ;;  %3737 = vmatmul.bf16.gmra.mxu2 %v3401_v54  ;;  %v7414_v49 = vpop.eup %7413 }
 0x320   : > { %7417 = vtanh.f32 %v2958_v9 }
 0x321   : > { %7138 = vst [vmem:[#allocation3 + $0x58] sm:$0xff] %v7106_v2  }
 0x322   : > { %v3698_v48 = vpop.f32.mrf.mxu2 }
 0x323   : > { %v7416_v17 = vpop.eup %7415  ;;  %v2870_v7 = vpop.f32.mrf.mxu3  ;;  %v3699_v42 = vadd.f32 %v3698_v48, %v3610_v20 }
 0x324   : > { %v8900_v15 = vpack.c.bf16 %v7416_v17, %v7414_v49  ;;  %v2871_v63 = vadd.f32 %v2870_v7, %v8837_v19  ;;  %v3612_v19 = vadd.f32 %v8876_v6, %v8887_v36 }
 0x325   : > { %v2962_v27 = vpop.f32.mrf.mxu0 }
 0x326   : > { %v2960_v4 = vadd.f32 %v2959_v26, %v2871_v63  ;;  %6674 = vmatmul.msk.bf16.vlgmr.msrb.gmra.mxu3 %vm3875_vm3, %v8900_v15  ;;  %6690 = vmatmul.msk.bf16.vlgmr.msrb.gmra.mxu0 %vm3875_vm3, %v8900_v15  ;;  %v8909_v18 = vpop.f32.mrf.mxu1  ;;  %v7418_v59 = vpop.eup %7417 }
 0x327   : > { %v3620_v20 = vadd.f32 %v8909_v18, %v8887_v36 }
 0x328   : > { %7419 = vtanh.f32 %v2960_v4  ;;  %v6997_v25 = vld [vmem:[#allocation3 + $0x58] sm:$0xff] }
 0x329   : > { %v7013_v23 = vld [vmem:[#allocation3 + $0x58] sm:$0xff]  ;;  %3658 = vmatmul.bf16.gmra.mxu1 %v6997_v25  ;;  %7421 = vtanh.f32 %v3699_v42 }
 0x32a   : > { %v3700_v39 = vpop.f32.mrf.mxu2  ;;  %v3406_v1 = vshll.u32 %v7013_v23, 16  ;;  %v3410_v41 = vshrl.u32 %v7013_v23, 16 }
 0x32b   : > { %v2873_v57 = vpop.f32.mrf.mxu3  ;;  %v3701_v43 = vadd.f32 %v3700_v39, %v3612_v19 }
 0x32c   : > { %v3408_v3 = vrot.slane %v3406_v1, 1  ;;  %v2874_v62 = vadd.f32 %v2873_v57, %v8843_v47 }
 0x32d   : > { %7423 = vtanh.f32 %v3701_v43  ;;  %v2964_v37 = vpop.f32.mrf.mxu0 }
 0x32e   : > { %v7420_v46 = vpop.eup %7419  ;;  %v3409_v38 = vsel %vm1613_vm1, %v3404_v35, %v3408_v3  ;;  %v3621_v44 = vpop.f32.mrf.mxu1  ;;  %v2963_v21 = vadd.f32 %v2962_v27, %v2874_v62  ;;  %v3412_v32 = vor.u32 %v3410_v41, %v3408_v3 }
 0x32f   : > { %v7111_v29 = vpack.c.bf16 %v7420_v46, %v7418_v59  ;;  %3742 = vmatmul.bf16.gmra.mxu2 %v3409_v38  ;;  %v7422_v6 = vpop.eup %7421  ;;  %v3622_v23 = vadd.f32 %v3621_v44, %v8887_v36 }
 0x330   : > { %7425 = vtanh.f32 %v2963_v21 }
 0x331   : > { %7139 = vst [vmem:[#allocation3 + $0x60] sm:$0xff] %v7111_v29  }
 0x332   : > { %v3703_v33 = vpop.f32.mrf.mxu2 }
 0x333   : > { %v7424_v12 = vpop.eup %7423  ;;  %v2875_v45 = vpop.f32.mrf.mxu3  ;;  %v3704_v31 = vadd.f32 %v3703_v33, %v3615_v50 }
 0x334   : > { %v8915_v40 = vpack.c.bf16 %v7424_v12, %v7422_v6  ;;  %v2876_v52 = vadd.f32 %v2875_v45, %v8848_v11  ;;  %v3617_v11 = vadd.f32 %v3616_v5, %v8887_v36 }
 0x335   : > { %v2967_v47 = vpop.f32.mrf.mxu0 }
 0x336   : > { %v2965_v51 = vadd.f32 %v2964_v37, %v2876_v52  ;;  %6675 = vmatmul.msk.bf16.gmra.mxu3 %vm3875_vm3, %v8915_v40  ;;  %6691 = vmatmul.msk.bf16.gmra.mxu0 %vm3875_vm3, %v8915_v40  ;;  %v8924_v10 = vpop.f32.mrf.mxu1  ;;  %v7426_v16 = vpop.eup %7425 }
 0x337   : > { %v3625_v52 = vadd.f32 %v8924_v10, %v8887_v36  ;;  %v7038_v10 = vld [vmem:[%s9972_s3 + $0x1c] sm:$0xf0] }
 0x338   : > { %7427 = vtanh.f32 %v2965_v51  ;;  %v6998_v14 = vld [vmem:[#allocation3 + $0x60] sm:$0xff] }
 0x339   : > { %v7014_v30 = vld [vmem:[#allocation3 + $0x60] sm:$0xff]  ;;  %3663 = vmatmul.bf16.gmra.mxu1 %v6998_v14  ;;  %7429 = vtanh.f32 %v3704_v31 }
 0x33a   : > { %v3705_v24 = vpop.f32.mrf.mxu2  ;;  %v3414_v53 = vshll.u32 %v7014_v30, 16  ;;  %v3418_v19 = vshrl.u32 %v7014_v30, 16 }
 0x33b   : > { %v2878_v60 = vpop.f32.mrf.mxu3  ;;  %v3706_v61 = vadd.f32 %v3705_v24, %v3617_v11 }
 0x33c   : > { %v3416_v55 = vrot.slane %v3414_v53, 1  ;;  %v2879_v54 = vadd.f32 %v2878_v60, %v8852_v22 }
 0x33d   : > { %7431 = vtanh.f32 %v3706_v61  ;;  %v2969_v0 = vpop.f32.mrf.mxu0 }
 0x33e   : > { %v7428_v28 = vpop.eup %7427  ;;  %v3417_v13 = vsel %vm1613_vm1, %v3412_v32, %v3416_v55  ;;  %v3626_v2 = vpop.f32.mrf.mxu1  ;;  %v2968_v17 = vadd.f32 %v2967_v47, %v2879_v54  ;;  %v3420_v57 = vor.u32 %v3418_v19, %v3416_v55 }
 0x33f   : > { %v7116_v26 = vpack.c.bf16 %v7428_v28, %v7426_v16  ;;  %3747 = vmatmul.bf16.gmra.mxu2 %v3417_v13  ;;  %v7430_v5 = vpop.eup %7429  ;;  %v3627_v14 = vadd.f32 %v3626_v2, %v8887_v36 }
 0x340   : > { %7433 = vtanh.f32 %v2968_v17 }
 0x341   : > { %7140 = vst [vmem:[#allocation3 + $0x68] sm:$0xff] %v7116_v26  }
 0x342   : > { %v3708_v49 = vpop.f32.mrf.mxu2 }
 0x343   : > { %v7432_v48 = vpop.eup %7431  ;;  %v2880_v9 = vpop.f32.mrf.mxu3  ;;  %v3709_v27 = vadd.f32 %v3708_v49, %v3620_v20 }
 0x344   : > { %v8929_v7 = vpack.c.bf16 %v7432_v48, %v7430_v5  ;;  %v2881_v63 = vadd.f32 %v2880_v9, %v8857_v34 }
 0x345   : > { %v2972_v39 = vpop.f32.mrf.mxu0 }
 0x346   : > { %v2970_v4 = vadd.f32 %v2969_v0, %v2881_v63  ;;  %6676 = vmatmul.msk.bf16.gmra.mxu3 %vm3875_vm3, %v8929_v7  ;;  %6692 = vmatmul.msk.bf16.gmra.mxu0 %vm3875_vm3, %v8929_v7  ;;  %v8938_v22 = vpop.f32.mrf.mxu1  ;;  %v7434_v35 = vpop.eup %7433 }
 0x347   : > { %v3630_v5 = vadd.f32 %v8938_v22, %v8887_v36 }
 0x348   : > { %7435 = vtanh.f32 %v2970_v4  ;;  %v6999_v42 = vld [vmem:[#allocation3 + $0x68] sm:$0xff] }
 0x349   : > { %v7015_v25 = vld [vmem:[#allocation3 + $0x68] sm:$0xff]  ;;  %3668 = vmatmul.bf16.gmra.mxu1 %v6999_v42  ;;  %7437 = vtanh.f32 %v3709_v27 }
 0x34a   : > { %v3710_v34 = vpop.f32.mrf.mxu2  ;;  %v3422_v18 = vshll.u32 %v7015_v25, 16  ;;  %v3426_v11 = vshrl.u32 %v7015_v25, 16  ;;  %v3138_v25 = vld [vmem:[#allocation3 + $0x80] sm:$0x1] }
 0x34b   : > { %v2883_v58 = vpop.f32.mrf.mxu3  ;;  %v3711_v1 = vadd.f32 %v3710_v34, %v3622_v23  ;;  %v3300_v19 = vunpack.c.l.b16 %v3138_v25 }
 0x34c   : > { %v3424_v43 = vrot.slane %v3422_v18, 1  ;;  %v2884_v37 = vadd.f32 %v2883_v58, %v8861_v56  ;;  %v7035_v18 = vld [vmem:[%s9972_s3 + $0xc] sm:$0xf] }
 0x34d   : > { %7439 = vtanh.f32 %v3711_v1  ;;  %v2974_v45 = vpop.f32.mrf.mxu0 }
 0x34e   : > { %v7436_v3 = vpop.eup %7435  ;;  %v3425_v59 = vsel %vm1613_vm1, %v3420_v57, %v3424_v43  ;;  %v3631_v38 = vpop.f32.mrf.mxu1  ;;  %v2973_v6 = vadd.f32 %v2972_v39, %v2884_v37  ;;  %v3428_v60 = vor.u32 %v3426_v11, %v3424_v43  ;;  %v6662_v39 = vld [vmem:[%s9972_s3 + $0x20] sm:$0xf0] }
 0x34f   : > { %v7121_v46 = vpack.c.bf16 %v7436_v3, %v7434_v35  ;;  %3752 = vmatmul.bf16.gmra.mxu2 %v3425_v59  ;;  %v7438_v29 = vpop.eup %7437  ;;  %v3632_v63 = vadd.f32 %v3631_v38, %v8887_v36  ;;  %v6665_v1 = vor.u32 %v7035_v18, %v6662_v39  ;;  %v3317_v35 = vpack.c.b16 %v3300_v19, %v3300_v19 }
 0x350   : > { %7441 = vtanh.f32 %v2973_v6 }
 0x351   : > { %7141 = vst [vmem:[#allocation3 + $0x70] sm:$0xff] %v7121_v46   ;;  %4217 = vmatpush.bf16.msra.mxu2 %v6665_v1  ;;  %v3446_v37 = vshll.u32 %v3317_v35, 16 }
 0x352   : > { %v3713_v62 = vpop.f32.mrf.mxu2 }
 0x353   : > { %v7440_v44 = vpop.eup %7439  ;;  %v2885_v33 = vpop.f32.mrf.mxu3  ;;  %v3714_v51 = vadd.f32 %v3713_v62, %v3625_v52 }
 0x354   : > { %v8943_v12 = vpack.c.bf16 %v7440_v44, %v7438_v29  ;;  %v2886_v21 = vadd.f32 %v2885_v33, %v8866_v8  ;;  %v6660_v8 = vld [vmem:[%s9972_s3 + $0x8] sm:$0xf] }
 0x355   : > { %v6661_v41 = vor.u32 %v7038_v10, %v6660_v8  ;;  %v7039_v10 = vld [vmem:[%s9972_s3 + $0x24] sm:$0xf0] }
 0x356   : > { %v2975_v50 = vadd.f32 %v2974_v45, %v2886_v21  ;;  %6677 = vmatmul.msk.bf16.gmra.mxu3 %vm3875_vm3, %v8943_v12  ;;  %6693 = vmatmul.msk.bf16.gmra.mxu0 %vm3875_vm3, %v8943_v12  ;;  %v3634_v56 = vpop.f32.mrf.mxu1  ;;  %v7442_v32 = vpop.eup %7441  ;;  %v3448_v21 = vrot.slane %v3446_v37, 1 }
 0x357   : > { %4128 = vmatpush.bf16.msra.mxu1 %v6661_v41  ;;  %v3635_v46 = vadd.f32 %v3634_v56, %v8887_v36 }
 0x358   : > { %7443 = vtanh.f32 %v2975_v50  ;;  %v7000_v47 = vld [vmem:[#allocation3 + $0x70] sm:$0xff] }
 0x359   : > { %v7016_v31 = vld [vmem:[#allocation3 + $0x70] sm:$0xff]  ;;  %3673 = vmatmul.bf16.gmra.mxu1 %v7000_v47  ;;  %7445 = vtanh.f32 %v3714_v51 }
 0x35a   : > { %v3715_v30 = vpop.f32.mrf.mxu2  ;;  %v3430_v24 = vshll.u32 %v7016_v31, 16  ;;  %v3434_v4 = vshrl.u32 %v7016_v31, 16 }
 0x35b   : > { %v3716_v53 = vadd.f32 %v3715_v30, %v3627_v14  ;;  %v6668_v14 = vld [vmem:[%s9972_s3 + $0x10] sm:$0xf] }
 0x35c   : > { %v3432_v61 = vrot.slane %v3430_v24, 1  ;;  %v6669_v11 = vor.u32 %v7039_v10, %v6668_v14 }
 0x35d   : > { %7447 = vtanh.f32 %v3716_v53 }
 0x35e   : > { %v7444_v55 = vpop.eup %7443  ;;  %v3433_v16 = vsel %vm1613_vm1, %v3428_v60, %v3432_v61  ;;  %v3636_v13 = vpop.f32.mrf.mxu1  ;;  %v3436_v22 = vor.u32 %v3434_v4, %v3432_v61  ;;  %4306 = vmatpush.bf16.msra.mxu3 %v6669_v11 }
 0x35f   : > { %v7126_v28 = vpack.c.bf16 %v7444_v55, %v7442_v32  ;;  %3757 = vmatmul.bf16.gmra.mxu2 %v3433_v16  ;;  %v7446_v26 = vpop.eup %7445  ;;  %v3637_v44 = vadd.f32 %v3636_v13, %v8887_v36  ;;  %v7036_v13 = vld [vmem:[%s9972_s3 + $0x14] sm:$0xf] }
 0x361   : > { %7142 = vst [vmem:[#allocation3 + $0x78] sm:$0xff] %v7126_v28  }
 0x362   : > { %v3718_v54 = vpop.f32.mrf.mxu2 }
 0x363   : > { %v7448_v2 = vpop.eup %7447  ;;  %v3719_v48 = vadd.f32 %v3718_v54, %v3630_v5 }
 0x364   : > { %v8960_v0 = vpack.c.bf16 %v7448_v2, %v7446_v26  ;;  %v6670_v26 = vld [vmem:[%s9972_s3 + $0x28] sm:$0xf0] }
 0x365   : > { %7449 = vtanh.f32 %v3719_v48  ;;  %v6673_v54 = vor.u32 %v7036_v13, %v6670_v26 }
 0x366   : > { %6678 = vmatmul.msk.bf16.gmra.mxu3 %vm3875_vm3, %v8960_v0  ;;  %6694 = vmatmul.msk.bf16.gmra.mxu0 %vm3875_vm3, %v8960_v0  ;;  %v3639_v49 = vpop.f32.mrf.mxu1 }
 0x367   : > { %v3640_v8 = vadd.f32 %v3639_v49, %v8887_v36  ;;  %4395 = vmatpush.bf16.msra.mxu0 %v6673_v54 }
 0x368   : > { %v7001_v17 = vld [vmem:[#allocation3 + $0x78] sm:$0xff] }
 0x369   : > { %v7017_v9 = vld [vmem:[#allocation3 + $0x78] sm:$0xff]  ;;  %3678 = vmatmul.bf16.gmra.mxu1 %v7001_v17 }
 0x36a   : > { %v3720_v20 = vpop.f32.mrf.mxu2  ;;  %v3438_v27 = vshll.u32 %v7017_v9, 16  ;;  %v3442_v62 = vshrl.u32 %v7017_v9, 16 }
 0x36b   : > { %v3721_v42 = vadd.f32 %v3720_v20, %v3632_v63  ;;  %v7450_v57 = vpop.eup %7449  ;;  %v9975_v20 = vlaneseq }
 0x36c   : > { %v3440_v23 = vrot.slane %v3438_v27, 1 }
 0x36d   : > { %7451 = vtanh.f32 %v3721_v42 }
 0x36e   : > { %v3441_v34 = vsel %vm1613_vm1, %v3436_v22, %v3440_v23  ;;  %v3641_v58 = vpop.f32.mrf.mxu1  ;;  %v3444_v33 = vor.u32 %v3442_v62, %v3440_v23  ;;  %v9024_v22 = vshrl.u32 %v9975_v20, 7 }
 0x36f   : > { %3762 = vmatmul.bf16.gmra.mxu2 %v3441_v34  ;;  %v3642_v41 = vadd.f32 %v3641_v58, %v8887_v36 }
 0x370   : > { %v3449_v52 = vsel %vm1613_vm1, %v3444_v33, %v3448_v21  ;;  %vm4544_vm4 = vcmp.eq.s32.totalorder %v9024_v22, 1  ;;  %vm4479_vm5 = vcmp.eq.s32.totalorder %v9024_v22, 0  ;;  %vm4609_vm6 = vcmp.eq.s32.totalorder %v9024_v22, 2 }
 0x371   : > { %vm4674_vm7 = vcmp.eq.s32.totalorder %v9024_v22, 3  ;;  %vm4739_vm8 = vcmp.eq.s32.totalorder %v9024_v22, 4  ;;  %vm4804_vm9 = vcmp.eq.s32.totalorder %v9024_v22, 5  ;;  %vm5416_vm1 = vcmask 130048  }
 0x372   : > { %v3723_v43 = vpop.f32.mrf.mxu2 }
 0x373   : > { %v7452_v3 = vpop.eup %7451  ;;  %v3724_v29 = vadd.f32 %v3723_v43, %v3635_v46 }
 0x374   : > { %v8976_v59 = vpack.c.bf16 %v7452_v3, %v7450_v57 }
 0x375   : > { %7453 = vtanh.f32 %v3724_v29 }
 0x376   : > { %6679 = vmatmul.msk.bf16.gmra.mxu3 %vm3875_vm3, %v8976_v59  ;;  %6695 = vmatmul.msk.bf16.gmra.mxu0 %vm3875_vm3, %v8976_v59  ;;  %v3644_v38 = vpop.f32.mrf.mxu1 }
 0x377   : > { %v3645_v2 = vadd.f32 %v3644_v38, %v8887_v36 }
 0x379   : > { %6706 = vmatmul.msk.bf16.vlgmr.msra.gmra.mxu1 %vm3875_vm3, %v8900_v15 }
 0x37a   : > { %v3725_v6 = vpop.f32.mrf.mxu2 }
 0x37b   : > { %v3726_v45 = vadd.f32 %v3725_v6, %v3637_v44  ;;  %v7454_v56 = vpop.eup %7453 }
 0x37d   : > { %7455 = vtanh.f32 %v3726_v45 }
 0x37e   : > { %v3646_v50 = vpop.f32.mrf.mxu1 }
 0x37f   : > { %3767 = vmatmul.bf16.gmra.mxu2 %v3449_v52  ;;  %v3647_v48 = vadd.f32 %v3646_v50, %v8887_v36 }
 0x382   : > { %v3728_v51 = vpop.f32.mrf.mxu2 }
 0x383   : > { %v7456_v47 = vpop.eup %7455  ;;  %v3729_v24 = vadd.f32 %v3728_v51, %v3640_v8 }
 0x384   : > { %v8987_v31 = vpack.c.bf16 %v7456_v47, %v7454_v56 }
 0x385   : > { %7457 = vtanh.f32 %v3729_v24 }
 0x386   : > { %6680 = vmatmul.msk.bf16.gmra.mxu3 %vm3875_vm3, %v8987_v31  ;;  %6696 = vmatmul.msk.bf16.gmra.mxu0 %vm3875_vm3, %v8987_v31  ;;  %v3649_v30 = vpop.f32.mrf.mxu1 }
 0x387   : > { %v3650_v34 = vadd.f32 %v3649_v30, %v8887_v36 }
 0x389   : > { %6707 = vmatmul.msk.bf16.gmra.mxu1 %vm3875_vm3, %v8915_v40 }
 0x38a   : > { %v3730_v53 = vpop.f32.mrf.mxu2 }
 0x38b   : > { %v3731_v60 = vadd.f32 %v3730_v53, %v3642_v41  ;;  %v7458_v32 = vpop.eup %7457 }
 0x38d   : > { %7459 = vtanh.f32 %v3731_v60 }
 0x38e   : > { %v3651_v61 = vpop.f32.mrf.mxu1 }
 0x38f   : > { %6722 = vmatmul.msk.bf16.vlgmr.msra.gmra.mxu2 %vm3875_vm3, %v8900_v15  ;;  %v3652_v39 = vadd.f32 %v3651_v61, %v8887_v36 }
 0x392   : > { %v3733_v55 = vpop.f32.mrf.mxu2 }
 0x393   : > { %v7460_v16 = vpop.eup %7459  ;;  %v3734_v49 = vadd.f32 %v3733_v55, %v3645_v2 }
 0x394   : > { %v9005_v28 = vpack.c.bf16 %v7460_v16, %v7458_v32 }
 0x395   : > { %7461 = vtanh.f32 %v3734_v49 }
 0x396   : > { %6681 = vmatmul.msk.bf16.gmra.mxu3 %vm3875_vm3, %v9005_v28  ;;  %6697 = vmatmul.msk.bf16.gmra.mxu0 %vm3875_vm3, %v9005_v28  ;;  %v3654_v5 = vpop.f32.mrf.mxu1 }
 0x397   : > { %v3655_v50 = vadd.f32 %v3654_v5, %v8887_v36 }
 0x399   : > { %6708 = vmatmul.msk.bf16.gmra.mxu1 %vm3875_vm3, %v8929_v7 }
 0x39a   : > { %v3735_v17 = vpop.f32.mrf.mxu2 }
 0x39b   : > { %v3736_v9 = vadd.f32 %v3735_v17, %v3647_v48  ;;  %v7462_v4 = vpop.eup %7461 }
 0x39d   : > { %7463 = vtanh.f32 %v3736_v9 }
 0x39e   : > { %v3656_v63 = vpop.f32.mrf.mxu1 }
 0x39f   : > { %6723 = vmatmul.msk.bf16.gmra.mxu2 %vm3875_vm3, %v8915_v40  ;;  %v3657_v47 = vadd.f32 %v3656_v63, %v8887_v36 }
 0x3a2   : > { %v3738_v27 = vpop.f32.mrf.mxu2 }
 0x3a3   : > { %v7464_v42 = vpop.eup %7463  ;;  %v4041_v25 = vpop.f32.mrf.mxu0  ;;  %v3739_v18 = vadd.f32 %v3738_v27, %v3650_v34 }
 0x3a4   : > { %v9026_v23 = vpack.c.bf16 %v7464_v42, %v7462_v4  ;;  %v4545_v1 = vsel %vm4544_vm4, %v4041_v25, 0.0 }
 0x3a5   : > { %7465 = vtanh.f32 %v3739_v18 }
 0x3a6   : > { %6682 = vmatmul.msk.bf16.gmra.mxu3 %vm3875_vm3, %v9026_v23  ;;  %6698 = vmatmul.msk.bf16.gmra.mxu0 %vm3875_vm3, %v9026_v23  ;;  %v3659_v19 = vpop.f32.mrf.mxu1 }
 0x3a7   : > { %v3660_v5 = vadd.f32 %v3659_v19, %v8887_v36 }
 0x3a9   : > { %v3952_v58 = vpop.f32.mrf.mxu3  ;;  %6709 = vmatmul.msk.bf16.gmra.mxu1 %vm3875_vm3, %v8943_v12 }
 0x3aa   : > { %v4480_v57 = vsel %vm4479_vm5, %v3952_v58, 0.0  ;;  %v3740_v43 = vpop.f32.mrf.mxu2 }
 0x3ab   : > { %v9042_v35 = vadd.f32 %v4545_v1, %v4480_v57  ;;  %v3741_v3 = vadd.f32 %v3740_v43, %v3652_v39  ;;  %v4043_v46 = vpop.f32.mrf.mxu0  ;;  %v7466_v29 = vpop.eup %7465 }
 0x3ac   : > { %v4546_v62 = vsel %vm4544_vm4, %v4043_v46, 0.0 }
 0x3ad   : > { %7467 = vtanh.f32 %v3741_v3 }
 0x3ae   : > { %v3661_v37 = vpop.f32.mrf.mxu1 }
 0x3af   : > { %6724 = vmatmul.msk.bf16.gmra.mxu2 %vm3875_vm3, %v8929_v7  ;;  %v3662_v17 = vadd.f32 %v3661_v37, %v8887_v36 }
 0x3b1   : > { %v3954_v38 = vpop.f32.mrf.mxu3 }
 0x3b2   : > { %v4481_v44 = vsel %vm4479_vm5, %v3954_v38, 0.0  ;;  %v3743_v6 = vpop.f32.mrf.mxu2 }
 0x3b3   : > { %v7468_v33 = vpop.eup %7467  ;;  %v9050_v21 = vadd.f32 %v4546_v62, %v4481_v44  ;;  %v4046_v45 = vpop.f32.mrf.mxu0  ;;  %v3744_v51 = vadd.f32 %v3743_v6, %v3655_v50 }
 0x3b4   : > { %v9052_v52 = vpack.c.bf16 %v7468_v33, %v7466_v29  ;;  %v4547_v14 = vsel %vm4544_vm4, %v4046_v45, 0.0 }
 0x3b5   : > { %7469 = vtanh.f32 %v3744_v51 }
 0x3b6   : > { %6683 = vmatmul.msk.bf16.gmra.mxu3 %vm3875_vm3, %v9052_v52  ;;  %6699 = vmatmul.msk.bf16.gmra.mxu0 %vm3875_vm3, %v9052_v52  ;;  %v3664_v56 = vpop.f32.mrf.mxu1 }
 0x3b7   : > { %v3665_v38 = vadd.f32 %v3664_v56, %v8887_v36 }
 0x3b9   : > { %v3957_v8 = vpop.f32.mrf.mxu3  ;;  %6710 = vmatmul.msk.bf16.gmra.mxu1 %vm3875_vm3, %v8960_v0 }
 0x3ba   : > { %v4482_v10 = vsel %vm4479_vm5, %v3957_v8, 0.0  ;;  %v3745_v30 = vpop.f32.mrf.mxu2 }
 0x3bb   : > { %v9066_v11 = vadd.f32 %v4547_v14, %v4482_v10  ;;  %v3746_v24 = vadd.f32 %v3745_v30, %v3657_v47  ;;  %v4048_v41 = vpop.f32.mrf.mxu0  ;;  %v7470_v61 = vpop.eup %7469 }
 0x3bc   : > { %v4548_v32 = vsel %vm4544_vm4, %v4048_v41, 0.0 }
 0x3bd   : > { %7471 = vtanh.f32 %v3746_v24 }
 0x3be   : > { %v3666_v53 = vpop.f32.mrf.mxu1 }
 0x3bf   : > { %6725 = vmatmul.msk.bf16.gmra.mxu2 %vm3875_vm3, %v8943_v12  ;;  %v3667_v44 = vadd.f32 %v3666_v53, %v8887_v36 }
 0x3c1   : > { %v3959_v60 = vpop.f32.mrf.mxu3 }
 0x3c2   : > { %v4483_v55 = vsel %vm4479_vm5, %v3959_v60, 0.0  ;;  %v3748_v16 = vpop.f32.mrf.mxu2 }
 0x3c3   : > { %v7472_v13 = vpop.eup %7471  ;;  %v9074_v26 = vadd.f32 %v4548_v32, %v4483_v55  ;;  %v4051_v54 = vpop.f32.mrf.mxu0  ;;  %v3749_v48 = vadd.f32 %v3748_v16, %v3660_v5 }
 0x3c4   : > { %v9076_v2 = vpack.c.bf16 %v7472_v13, %v7470_v61  ;;  %v4549_v63 = vsel %vm4544_vm4, %v4051_v54, 0.0 }
 0x3c5   : > { %7473 = vtanh.f32 %v3749_v48 }
 0x3c6   : > { %6684 = vmatmul.msk.bf16.gmra.mxu3 %vm3875_vm3, %v9076_v2  ;;  %6700 = vmatmul.msk.bf16.gmra.mxu0 %vm3875_vm3, %v9076_v2  ;;  %v3669_v49 = vpop.f32.mrf.mxu1 }
 0x3c7   : > { %v3670_v55 = vadd.f32 %v3669_v49, %v8887_v36 }
 0x3c9   : > { %v3962_v9 = vpop.f32.mrf.mxu3  ;;  %6711 = vmatmul.msk.bf16.gmra.mxu1 %vm3875_vm3, %v8976_v59 }
 0x3ca   : > { %v4484_v4 = vsel %vm4479_vm5, %v3962_v9, 0.0  ;;  %v3750_v27 = vpop.f32.mrf.mxu2 }
 0x3cb   : > { %v9090_v42 = vadd.f32 %v4549_v63, %v4484_v4  ;;  %v3751_v25 = vadd.f32 %v3750_v27, %v3662_v17  ;;  %v4053_v34 = vpop.f32.mrf.mxu0  ;;  %v7474_v39 = vpop.eup %7473 }
 0x3cc   : > { %v4550_v58 = vsel %vm4544_vm4, %v4053_v34, 0.0 }
 0x3cd   : > { %7475 = vtanh.f32 %v3751_v25 }
 0x3ce   : > { %v3671_v19 = vpop.f32.mrf.mxu1 }
 0x3cf   : > { %6726 = vmatmul.msk.bf16.gmra.mxu2 %vm3875_vm3, %v8960_v0  ;;  %v3672_v54 = vadd.f32 %v3671_v19, %v8887_v36 }
 0x3d1   : > { %v3964_v18 = vpop.f32.mrf.mxu3 }
 0x3d2   : > { %v4485_v1 = vsel %vm4479_vm5, %v3964_v18, 0.0  ;;  %v3753_v57 = vpop.f32.mrf.mxu2 }
 0x3d3   : > { %v7476_v43 = vpop.eup %7475  ;;  %v9098_v3 = vadd.f32 %v4550_v58, %v4485_v1  ;;  %v4056_v46 = vpop.f32.mrf.mxu0  ;;  %v3754_v62 = vadd.f32 %v3753_v57, %v3665_v38 }
 0x3d4   : > { %v9100_v37 = vpack.c.bf16 %v7476_v43, %v7474_v39  ;;  %v4551_v33 = vsel %vm4544_vm4, %v4056_v46, 0.0 }
 0x3d5   : > { %7477 = vtanh.f32 %v3754_v62 }
 0x3d6   : > { %6685 = vmatmul.msk.bf16.gmra.mxu3 %vm3875_vm3, %v9100_v37  ;;  %6701 = vmatmul.msk.bf16.gmra.mxu0 %vm3875_vm3, %v9100_v37  ;;  %v3674_v29 = vpop.f32.mrf.mxu1 }
 0x3d7   : > { %v3675_v46 = vadd.f32 %v3674_v29, %v8887_v36 }
 0x3d9   : > { %v3967_v6 = vpop.f32.mrf.mxu3  ;;  %6712 = vmatmul.msk.bf16.gmra.mxu1 %vm3875_vm3, %v8987_v31 }
 0x3da   : > { %v4486_v45 = vsel %vm4479_vm5, %v3967_v6, 0.0  ;;  %v3755_v50 = vpop.f32.mrf.mxu2 }
 0x3db   : > { %v9114_v56 = vadd.f32 %v4551_v33, %v4486_v45  ;;  %v3756_v51 = vadd.f32 %v3755_v50, %v3667_v44  ;;  %v4058_v47 = vpop.f32.mrf.mxu0  ;;  %v7478_v10 = vpop.eup %7477 }
 0x3dc   : > { %v4552_v30 = vsel %vm4544_vm4, %v4058_v47, 0.0 }
 0x3dd   : > { %7479 = vtanh.f32 %v3756_v51 }
 0x3de   : > { %v3676_v8 = vpop.f32.mrf.mxu1 }
 0x3df   : > { %6727 = vmatmul.msk.bf16.gmra.mxu2 %vm3875_vm3, %v8976_v59  ;;  %v3677_v6 = vadd.f32 %v3676_v8, %v8887_v36 }
 0x3e1   : > { %v3969_v14 = vpop.f32.mrf.mxu3 }
 0x3e2   : > { %v4487_v24 = vsel %vm4479_vm5, %v3969_v14, 0.0  ;;  %v3758_v41 = vpop.f32.mrf.mxu2 }
 0x3e3   : > { %v7480_v53 = vpop.eup %7479  ;;  %v9122_v60 = vadd.f32 %v4552_v30, %v4487_v24  ;;  %v4061_v61 = vpop.f32.mrf.mxu0  ;;  %v3759_v13 = vadd.f32 %v3758_v41, %v3670_v55 }
 0x3e4   : > { %v9124_v32 = vpack.c.bf16 %v7480_v53, %v7478_v10  ;;  %v4553_v48 = vsel %vm4544_vm4, %v4061_v61, 0.0 }
 0x3e5   : > { %7481 = vtanh.f32 %v3759_v13 }
 0x3e6   : > { %6686 = vmatmul.msk.bf16.gmra.mxu3 %vm3875_vm3, %v9124_v32  ;;  %6702 = vmatmul.msk.bf16.gmra.mxu0 %vm3875_vm3, %v9124_v32  ;;  %v3679_v16 = vpop.f32.mrf.mxu1 }
 0x3e9   : > { %v3972_v5 = vpop.f32.mrf.mxu3  ;;  %6713 = vmatmul.msk.bf16.gmra.mxu1 %vm3875_vm3, %v9005_v28 }
 0x3ea   : > { %v4488_v17 = vsel %vm4479_vm5, %v3972_v5, 0.0  ;;  %v3760_v9 = vpop.f32.mrf.mxu2 }
 0x3eb   : > { %v9138_v49 = vadd.f32 %v4553_v48, %v4488_v17  ;;  %v3761_v63 = vadd.f32 %v3760_v9, %v3672_v54  ;;  %v4063_v4 = vpop.f32.mrf.mxu0  ;;  %v7482_v34 = vpop.eup %7481  ;;  %v3680_v17 = vadd.f32 %v3679_v16, %v8887_v36 }
 0x3ec   : > { %v4554_v19 = vsel %vm4544_vm4, %v4063_v4, 0.0 }
 0x3ed   : > { %7483 = vtanh.f32 %v3761_v63 }
 0x3ee   : > { %v3681_v27 = vpop.f32.mrf.mxu1 }
 0x3ef   : > { %6728 = vmatmul.msk.bf16.gmra.mxu2 %vm3875_vm3, %v8987_v31  ;;  %v3682_v4 = vadd.f32 %v3681_v27, %v8887_v36 }
 0x3f1   : > { %v3974_v25 = vpop.f32.mrf.mxu3 }
 0x3f2   : > { %v4489_v18 = vsel %vm4479_vm5, %v3974_v25, 0.0  ;;  %v3763_v39 = vpop.f32.mrf.mxu2 }
 0x3f3   : > { %v7484_v58 = vpop.eup %7483  ;;  %v9146_v1 = vadd.f32 %v4554_v19, %v4489_v18  ;;  %v4066_v57 = vpop.f32.mrf.mxu0  ;;  %v3764_v62 = vadd.f32 %v3763_v39, %v3675_v46 }
 0x3f4   : > { %v9148_v43 = vpack.c.bf16 %v7484_v58, %v7482_v34  ;;  %v4555_v50 = vsel %vm4544_vm4, %v4066_v57, 0.0 }
 0x3f5   : > { %7485 = vtanh.f32 %v3764_v62 }
 0x3f6   : > { %6687 = vmatmul.msk.bf16.gmra.mxu3 %vm3875_vm3, %v9148_v43  ;;  %6703 = vmatmul.msk.bf16.gmra.mxu0 %vm3875_vm3, %v9148_v43  ;;  %v4130_v38 = vpop.f32.mrf.mxu1 }
 0x3f7   : > { %v4610_v44 = vsel %vm4609_vm6, %v4130_v38, 0.0 }
 0x3f8   : > { %v4642_v33 = vadd.f32 %v4610_v44, %v9042_v35 }
 0x3f9   : > { %v3977_v45 = vpop.f32.mrf.mxu3  ;;  %6714 = vmatmul.msk.bf16.gmra.mxu1 %vm3875_vm3, %v9026_v23 }
 0x3fa   : > { %v4490_v29 = vsel %vm4479_vm5, %v3977_v45, 0.0  ;;  %v3765_v51 = vpop.f32.mrf.mxu2 }
 0x3fb   : > { %v9166_v47 = vadd.f32 %v4555_v50, %v4490_v29  ;;  %v3766_v14 = vadd.f32 %v3765_v51, %v3677_v6  ;;  %v4068_v10 = vpop.f32.mrf.mxu0  ;;  %v7486_v41 = vpop.eup %7485 }
 0x3fc   : > { %v4556_v53 = vsel %vm4544_vm4, %v4068_v10, 0.0 }
 0x3fd   : > { %7487 = vtanh.f32 %v3766_v14 }
 0x3fe   : > { %v4132_v8 = vpop.f32.mrf.mxu1 }
 0x3ff   : > { %6729 = vmatmul.msk.bf16.gmra.mxu2 %vm3875_vm3, %v9005_v28  ;;  %v4611_v35 = vsel %vm4609_vm6, %v4132_v8, 0.0 }
 0x400   : > { %v4643_v30 = vadd.f32 %v4611_v35, %v9050_v21 }
 0x401   : > { %v3979_v24 = vpop.f32.mrf.mxu3 }
 0x402   : > { %v4491_v61 = vsel %vm4479_vm5, %v3979_v24, 0.0  ;;  %v3768_v55 = vpop.f32.mrf.mxu2 }
 0x403   : > { %v7488_v13 = vpop.eup %7487  ;;  %v9177_v54 = vadd.f32 %v4556_v53, %v4491_v61  ;;  %v4071_v5 = vpop.f32.mrf.mxu0  ;;  %v3769_v9 = vadd.f32 %v3768_v55, %v3680_v17 }
 0x404   : > { %v9179_v48 = vpack.c.bf16 %v7488_v13, %v7486_v41  ;;  %v4557_v19 = vsel %vm4544_vm4, %v4071_v5, 0.0 }
 0x405   : > { %7489 = vtanh.f32 %v3769_v9 }
 0x406   : > { %6688 = vmatmul.msk.bf16.gmra.mxu3 %vm3875_vm3, %v9179_v48  ;;  %6704 = vmatmul.msk.bf16.gmra.mxu0 %vm3875_vm3, %v9179_v48  ;;  %v4135_v21 = vpop.f32.mrf.mxu1 }
 0x407   : > { %v4612_v63 = vsel %vm4609_vm6, %v4135_v21, 0.0 }
 0x408   : > { %v4644_v25 = vadd.f32 %v4612_v63, %v9066_v11 }
 0x409   : > { %v3982_v34 = vpop.f32.mrf.mxu3  ;;  %6715 = vmatmul.msk.bf16.gmra.mxu1 %vm3875_vm3, %v9052_v52 }
 0x40a   : > { %v4492_v16 = vsel %vm4479_vm5, %v3982_v34, 0.0  ;;  %v3770_v18 = vpop.f32.mrf.mxu2 }
 0x40b   : > { %v9196_v39 = vadd.f32 %v4557_v19, %v4492_v16  ;;  %v3771_v58 = vadd.f32 %v3770_v18, %v3682_v4  ;;  %v4073_v57 = vpop.f32.mrf.mxu0  ;;  %v7490_v38 = vpop.eup %7489 }
 0x40c   : > { %v4558_v62 = vsel %vm4544_vm4, %v4073_v57, 0.0 }
 0x40d   : > { %7491 = vtanh.f32 %v3771_v58 }
 0x40e   : > { %v4137_v36 = vpop.f32.mrf.mxu1 }
 0x40f   : > { %6730 = vmatmul.msk.bf16.gmra.mxu2 %vm3875_vm3, %v9026_v23  ;;  %v4613_v11 = vsel %vm4609_vm6, %v4137_v36, 0.0 }
 0x410   : > { %v4645_v27 = vadd.f32 %v4613_v11, %v9074_v26 }
 0x411   : > { %v3984_v46 = vpop.f32.mrf.mxu3 }
 0x412   : > { %v4493_v44 = vsel %vm4479_vm5, %v3984_v46, 0.0  ;;  %v4219_v6 = vpop.f32.mrf.mxu2 }
 0x413   : > { %v7492_v45 = vpop.eup %7491  ;;  %v9208_v50 = vadd.f32 %v4558_v62, %v4493_v44  ;;  %v4675_v29 = vsel %vm4674_vm7, %v4219_v6, 0.0  ;;  %v4076_v51 = vpop.f32.mrf.mxu0 }
 0x414   : > { %v9212_v14 = vpack.c.bf16 %v7492_v45, %v7490_v38  ;;  %v9214_v10 = vadd.f32 %v4675_v29, %v4642_v33  ;;  %v4559_v41 = vsel %vm4544_vm4, %v4076_v51, 0.0 }
 0x416   : > { %6689 = vmatmul.msk.bf16.gmra.mxu3 %vm3875_vm3, %v9212_v14  ;;  %6705 = vmatmul.msk.bf16.gmra.mxu0 %vm3875_vm3, %v9212_v14  ;;  %v4140_v26 = vpop.f32.mrf.mxu1 }
 0x417   : > { %v4614_v8 = vsel %vm4609_vm6, %v4140_v26, 0.0 }
 0x418   : > { %v4646_v35 = vadd.f32 %v4614_v8, %v9090_v42 }
 0x419   : > { %v3987_v24 = vpop.f32.mrf.mxu3  ;;  %6716 = vmatmul.msk.bf16.gmra.mxu1 %vm3875_vm3, %v9076_v2 }
 0x41a   : > { %v4494_v33 = vsel %vm4479_vm5, %v3987_v24, 0.0  ;;  %v4221_v53 = vpop.f32.mrf.mxu2 }
 0x41b   : > { %v9229_v61 = vadd.f32 %v4559_v41, %v4494_v33  ;;  %v4676_v55 = vsel %vm4674_vm7, %v4221_v53, 0.0  ;;  %v4078_v13 = vpop.f32.mrf.mxu0 }
 0x41c   : > { %v9233_v5 = vadd.f32 %v4676_v55, %v4643_v30  ;;  %v4560_v63 = vsel %vm4544_vm4, %v4078_v13, 0.0 }
 0x41e   : > { %v4142_v42 = vpop.f32.mrf.mxu1 }
 0x41f   : > { %6731 = vmatmul.msk.bf16.gmra.mxu2 %vm3875_vm3, %v9052_v52  ;;  %v4615_v17 = vsel %vm4609_vm6, %v4142_v42, 0.0 }
 0x420   : > { %v4647_v21 = vadd.f32 %v4615_v17, %v9098_v3 }
 0x421   : > { %v3989_v9 = vpop.f32.mrf.mxu3 }
 0x422   : > { %v4495_v4 = vsel %vm4479_vm5, %v3989_v9, 0.0  ;;  %v4224_v34 = vpop.f32.mrf.mxu2 }
 0x423   : > { %v9244_v19 = vadd.f32 %v4560_v63, %v4495_v4  ;;  %v4677_v30 = vsel %vm4674_vm7, %v4224_v34, 0.0  ;;  %v4081_v16 = vpop.f32.mrf.mxu0 }
 0x424   : > { %v9248_v18 = vadd.f32 %v4677_v30, %v4644_v25  ;;  %v4561_v11 = vsel %vm4544_vm4, %v4081_v16, 0.0 }
 0x426   : > { %6738 = vmatmul.msk.bf16.vlgmr.msra.gmra.mxu3 %vm3875_vm3, %v8900_v15  ;;  %6754 = vmatmul.msk.bf16.vlgmr.msra.gmra.mxu0 %vm3875_vm3, %v8900_v15  ;;  %v4145_v3 = vpop.f32.mrf.mxu1 }
 0x427   : > { %v4616_v58 = vsel %vm4609_vm6, %v4145_v3, 0.0 }
 0x428   : > { %v4648_v57 = vadd.f32 %v4616_v58, %v9114_v56 }
 0x429   : > { %v3992_v36 = vpop.f32.mrf.mxu3  ;;  %6717 = vmatmul.msk.bf16.gmra.mxu1 %vm3875_vm3, %v9100_v37 }
 0x42a   : > { %v4496_v25 = vsel %vm4479_vm5, %v3992_v36, 0.0  ;;  %v4226_v46 = vpop.f32.mrf.mxu2 }
 0x42b   : > { %v9263_v38 = vadd.f32 %v4561_v11, %v4496_v25  ;;  %v4678_v15 = vsel %vm4674_vm7, %v4226_v46, 0.0  ;;  %v4083_v62 = vpop.f32.mrf.mxu0 }
 0x42c   : > { %v9267_v44 = vadd.f32 %v4678_v15, %v4645_v27  ;;  %v4562_v51 = vsel %vm4544_vm4, %v4083_v62, 0.0 }
 0x42e   : > { %v4147_v56 = vpop.f32.mrf.mxu1 }
 0x42f   : > { %6732 = vmatmul.msk.bf16.gmra.mxu2 %vm3875_vm3, %v9076_v2  ;;  %v4617_v6 = vsel %vm4609_vm6, %v4147_v56, 0.0 }
 0x430   : > { %v4649_v45 = vadd.f32 %v4617_v6, %v9122_v60 }
 0x431   : > { %v3994_v29 = vpop.f32.mrf.mxu3 }
 0x432   : > { %v4497_v26 = vsel %vm4479_vm5, %v3994_v29, 0.0  ;;  %v4229_v8 = vpop.f32.mrf.mxu2 }
 0x433   : > { %v9278_v24 = vadd.f32 %v4562_v51, %v4497_v26  ;;  %v4679_v27 = vsel %vm4674_vm7, %v4229_v8, 0.0  ;;  %v4086_v41 = vpop.f32.mrf.mxu0 }
 0x434   : > { %v9282_v33 = vadd.f32 %v4679_v27, %v4646_v35  ;;  %v4563_v55 = vsel %vm4544_vm4, %v4086_v41, 0.0 }
 0x436   : > { %6739 = vmatmul.msk.bf16.gmra.mxu3 %vm3875_vm3, %v8915_v40  ;;  %6755 = vmatmul.msk.bf16.gmra.mxu0 %vm3875_vm3, %v8915_v40  ;;  %v9288_v60 = vpop.f32.mrf.mxu1 }
 0x439   : > { %v3997_v53 = vpop.f32.mrf.mxu3  ;;  %6718 = vmatmul.msk.bf16.gmra.mxu1 %vm3875_vm3, %v9124_v32 }
 0x43a   : > { %v4498_v13 = vsel %vm4479_vm5, %v3997_v53, 0.0  ;;  %v4231_v35 = vpop.f32.mrf.mxu2 }
 0x43b   : > { %v9296_v42 = vadd.f32 %v4563_v55, %v4498_v13  ;;  %v4680_v17 = vsel %vm4674_vm7, %v4231_v35, 0.0  ;;  %v4088_v9 = vpop.f32.mrf.mxu0 }
 0x43c   : > { %v9300_v40 = vadd.f32 %v4680_v17, %v4647_v21  ;;  %v4564_v34 = vsel %vm4544_vm4, %v4088_v9, 0.0 }
 0x43e   : > { %v9302_v63 = vpop.f32.mrf.mxu1 }
 0x43f   : > { %6733 = vmatmul.msk.bf16.gmra.mxu2 %vm3875_vm3, %v9100_v37 }
 0x441   : > { %v3999_v4 = vpop.f32.mrf.mxu3 }
 0x442   : > { %v4499_v30 = vsel %vm4479_vm5, %v3999_v4, 0.0  ;;  %v4234_v16 = vpop.f32.mrf.mxu2 }
 0x443   : > { %v9310_v3 = vadd.f32 %v4564_v34, %v4499_v30  ;;  %v4681_v58 = vsel %vm4674_vm7, %v4234_v16, 0.0  ;;  %v4091_v21 = vpop.f32.mrf.mxu0 }
 0x444   : > { %v9314_v36 = vadd.f32 %v4681_v58, %v4648_v57  ;;  %v4565_v46 = vsel %vm4544_vm4, %v4091_v21, 0.0 }
 0x446   : > { %6740 = vmatmul.msk.bf16.gmra.mxu3 %vm3875_vm3, %v8929_v7  ;;  %6756 = vmatmul.msk.bf16.gmra.mxu0 %vm3875_vm3, %v8929_v7  ;;  %v9320_v11 = vpop.f32.mrf.mxu1 }
 0x449   : > { %v4002_v25 = vpop.f32.mrf.mxu3  ;;  %6719 = vmatmul.msk.bf16.gmra.mxu1 %vm3875_vm3, %v9148_v43 }
 0x44a   : > { %v4500_v15 = vsel %vm4479_vm5, %v4002_v25, 0.0  ;;  %v4236_v57 = vpop.f32.mrf.mxu2 }
 0x44b   : > { %v9328_v62 = vadd.f32 %v4565_v46, %v4500_v15  ;;  %v4682_v56 = vsel %vm4674_vm7, %v4236_v57, 0.0  ;;  %v4093_v6 = vpop.f32.mrf.mxu0 }
 0x44c   : > { %v9332_v7 = vadd.f32 %v4682_v56, %v4649_v45  ;;  %v4566_v26 = vsel %vm4544_vm4, %v4093_v6, 0.0 }
 0x44e   : > { %v9334_v29 = vpop.f32.mrf.mxu1 }
 0x44f   : > { %6734 = vmatmul.msk.bf16.gmra.mxu2 %vm3875_vm3, %v9124_v32 }
 0x451   : > { %v4004_v51 = vpop.f32.mrf.mxu3 }
 0x452   : > { %v4501_v8 = vsel %vm4479_vm5, %v4004_v51, 0.0  ;;  %v9342_v27 = vpop.f32.mrf.mxu2 }
 0x453   : > { %v9344_v41 = vadd.f32 %v4566_v26, %v4501_v8  ;;  %v4096_v53 = vpop.f32.mrf.mxu0 }
 0x454   : > { %v4567_v13 = vsel %vm4544_vm4, %v4096_v53, 0.0 }
 0x456   : > { %6741 = vmatmul.msk.bf16.gmra.mxu3 %vm3875_vm3, %v8943_v12  ;;  %6757 = vmatmul.msk.bf16.gmra.mxu0 %vm3875_vm3, %v8943_v12  ;;  %v9350_v45 = vpop.f32.mrf.mxu1 }
 0x459   : > { %v4007_v55 = vpop.f32.mrf.mxu3  ;;  %6720 = vmatmul.msk.bf16.gmra.mxu1 %vm3875_vm3, %v9179_v48 }
 0x45a   : > { %v4502_v35 = vsel %vm4479_vm5, %v4007_v55, 0.0  ;;  %v9358_v17 = vpop.f32.mrf.mxu2 }
 0x45b   : > { %v9360_v9 = vadd.f32 %v4567_v13, %v4502_v35  ;;  %v4098_v4 = vpop.f32.mrf.mxu0 }
 0x45c   : > { %v4568_v30 = vsel %vm4544_vm4, %v4098_v4, 0.0 }
 0x45e   : > { %v9362_v34 = vpop.f32.mrf.mxu1 }
 0x45f   : > { %6735 = vmatmul.msk.bf16.gmra.mxu2 %vm3875_vm3, %v9148_v43 }
 0x461   : > { %v4009_v12 = vpop.f32.mrf.mxu3 }
 0x462   : > { %v4503_v16 = vsel %vm4479_vm5, %v4009_v12, 0.0  ;;  %v9370_v58 = vpop.f32.mrf.mxu2 }
 0x463   : > { %v9372_v21 = vadd.f32 %v4568_v30, %v4503_v16  ;;  %v4101_v25 = vpop.f32.mrf.mxu0 }
 0x464   : > { %v4569_v57 = vsel %vm4544_vm4, %v4101_v25, 0.0 }
 0x466   : > { %6742 = vmatmul.msk.bf16.gmra.mxu3 %vm3875_vm3, %v8960_v0  ;;  %6758 = vmatmul.msk.bf16.gmra.mxu0 %vm3875_vm3, %v8960_v0  ;;  %v9378_v46 = vpop.f32.mrf.mxu1 }
 0x469   : > { %v4012_v15 = vpop.f32.mrf.mxu3  ;;  %6721 = vmatmul.msk.bf16.gmra.mxu1 %vm3875_vm3, %v9212_v14 }
 0x46a   : > { %v4504_v56 = vsel %vm4479_vm5, %v4012_v15, 0.0  ;;  %v9386_v6 = vpop.f32.mrf.mxu2 }
 0x46b   : > { %v9388_v51 = vadd.f32 %v4569_v57, %v4504_v56  ;;  %v4103_v26 = vpop.f32.mrf.mxu0 }
 0x46c   : > { %v4570_v53 = vsel %vm4544_vm4, %v4103_v26, 0.0 }
 0x46d   : > { %9976 = vst [vmem:[#allocation4_spill] sm:$0xff] %v9388_v51 }
 0x46e   : > { %v9390_v8 = vpop.f32.mrf.mxu1 }
 0x46f   : > { %6736 = vmatmul.msk.bf16.gmra.mxu2 %vm3875_vm3, %v9179_v48 }
 0x471   : > { %v4014_v0 = vpop.f32.mrf.mxu3 }
 0x472   : > { %v4505_v55 = vsel %vm4479_vm5, %v4014_v0, 0.0  ;;  %v9398_v13 = vpop.f32.mrf.mxu2 }
 0x473   : > { %v9400_v35 = vadd.f32 %v4570_v53, %v4505_v55  ;;  %v4106_v4 = vpop.f32.mrf.mxu0 }
 0x474   : > { %v4571_v15 = vsel %vm4544_vm4, %v4106_v4, 0.0 }
 0x475   : > { %9977 = vst [vmem:[#allocation5_spill] sm:$0xff] %v9400_v35 }
 0x476   : > { %6743 = vmatmul.msk.bf16.gmra.mxu3 %vm3875_vm3, %v8976_v59  ;;  %6759 = vmatmul.msk.bf16.gmra.mxu0 %vm3875_vm3, %v8976_v59  ;;  %v4170_v12 = vpop.f32.mrf.mxu1 }
 0x477   : > { %v4626_v30 = vsel %vm4609_vm6, %v4170_v12, 0.0 }
 0x478   : > { %v4658_v16 = vadd.f32 %v4626_v30, %v9263_v38 }
 0x479   : > { %v4017_v25 = vpop.f32.mrf.mxu3 }
 0x47a   : > { %v4506_v57 = vsel %vm4479_vm5, %v4017_v25, 0.0  ;;  %v9413_v56 = vpop.f32.mrf.mxu2 }
 0x47b   : > { %v9415_v26 = vadd.f32 %v4571_v15, %v4506_v57  ;;  %v4108_v0 = vpop.f32.mrf.mxu0 }
 0x47c   : > { %v4572_v4 = vsel %vm4544_vm4, %v4108_v0, 0.0 }
 0x47d   : > { %9978 = vst [vmem:[#allocation6_spill] sm:$0xff] %v9415_v26 }
 0x47e   : > { %v4172_v53 = vpop.f32.mrf.mxu1 }
 0x47f   : > { %6737 = vmatmul.msk.bf16.gmra.mxu2 %vm3875_vm3, %v9212_v14  ;;  %v4627_v59 = vsel %vm4609_vm6, %v4172_v53, 0.0 }
 0x480   : > { %v4659_v38 = vadd.f32 %v4627_v59, %v9278_v24 }
 0x481   : > { %v4019_v55 = vpop.f32.mrf.mxu3 }
 0x482   : > { %v4507_v12 = vsel %vm4479_vm5, %v4019_v55, 0.0  ;;  %v9426_v30 = vpop.f32.mrf.mxu2 }
 0x483   : > { %v9428_v25 = vadd.f32 %v4572_v4, %v4507_v12  ;;  %v4111_v15 = vpop.f32.mrf.mxu0 }
 0x484   : > { %v4573_v59 = vsel %vm4544_vm4, %v4111_v15, 0.0 }
 0x485   : > { %9979 = vst [vmem:[#allocation7_spill] sm:$0xff] %v9428_v25 }
 0x486   : > { %6744 = vmatmul.msk.bf16.gmra.mxu3 %vm3875_vm3, %v8987_v31  ;;  %6760 = vmatmul.msk.bf16.gmra.mxu0 %vm3875_vm3, %v8987_v31  ;;  %v4175_v57 = vpop.f32.mrf.mxu1 }
 0x487   : > { %v4628_v24 = vsel %vm4609_vm6, %v4175_v57, 0.0 }
 0x488   : > { %v4660_v0 = vadd.f32 %v4628_v24, %v9296_v42 }
 0x489   : > { %v4022_v53 = vpop.f32.mrf.mxu3 }
 0x48a   : > { %v4508_v55 = vsel %vm4479_vm5, %v4022_v53, 0.0  ;;  %v9441_v4 = vpop.f32.mrf.mxu2 }
 0x48b   : > { %v9443_v12 = vadd.f32 %v4573_v59, %v4508_v55  ;;  %v4113_v20 = vpop.f32.mrf.mxu0 }
 0x48c   : > { %v4574_v42 = vsel %vm4544_vm4, %v4113_v20, 0.0 }
 0x48d   : > { %9980 = vst [vmem:[#allocation8_spill] sm:$0xff] %v9443_v12 }
 0x48e   : > { %v4177_v25 = vpop.f32.mrf.mxu1 }
 0x48f   : > { %v4629_v31 = vsel %vm4609_vm6, %v4177_v25, 0.0 }
 0x490   : > { %v4661_v57 = vadd.f32 %v4629_v31, %v9310_v3 }
 0x491   : > { %v4024_v26 = vpop.f32.mrf.mxu3 }
 0x492   : > { %v4509_v15 = vsel %vm4479_vm5, %v4024_v26, 0.0  ;;  %v4259_v24 = vpop.f32.mrf.mxu2 }
 0x493   : > { %v9452_v53 = vadd.f32 %v4574_v42, %v4509_v15  ;;  %v4691_v59 = vsel %vm4674_vm7, %v4259_v24, 0.0  ;;  %v4116_v55 = vpop.f32.mrf.mxu0 }
 0x494   : > { %v9456_v12 = vadd.f32 %v4691_v59, %v4658_v16  ;;  %v4575_v31 = vsel %vm4544_vm4, %v4116_v55, 0.0  ;;  %v7047_v55 = vld [vmem:[%s9971_s2 + $0x238] sm:$0xff] }
 0x495   : > { %9981 = vst [vmem:[#allocation9_spill] sm:$0xff] %v9452_v53  ;;  %5386 = vmatpush.bf16.msrb.mxu1 %v7047_v55 }
 0x496   : > { %6745 = vmatmul.msk.bf16.gmra.mxu3 %vm3875_vm3, %v9005_v28  ;;  %6761 = vmatmul.msk.bf16.gmra.mxu0 %vm3875_vm3, %v9005_v28  ;;  %v4180_v3 = vpop.f32.mrf.mxu1 }
 0x497   : > { %v4630_v20 = vsel %vm4609_vm6, %v4180_v3, 0.0 }
 0x498   : > { %v4662_v26 = vadd.f32 %v4630_v20, %v9328_v62 }
 0x499   : > { %v4027_v25 = vpop.f32.mrf.mxu3 }
 0x49a   : > { %v4510_v16 = vsel %vm4479_vm5, %v4027_v25, 0.0  ;;  %v4261_v42 = vpop.f32.mrf.mxu2 }
 0x49b   : > { %v9469_v15 = vadd.f32 %v4575_v31, %v4510_v16  ;;  %v4692_v24 = vsel %vm4674_vm7, %v4261_v42, 0.0  ;;  %v4118_v28 = vpop.f32.mrf.mxu0 }
 0x49c   : > { %v9473_v59 = vadd.f32 %v4692_v24, %v4659_v38  ;;  %v4576_v25 = vsel %vm4544_vm4, %v4118_v28, 0.0 }
 0x49d   : > { %9982 = vst [vmem:[#allocation10_spill] sm:$0xff] %v9469_v15 }
 0x49e   : > { %v4182_v53 = vpop.f32.mrf.mxu1 }
 0x49f   : > { %v4631_v62 = vsel %vm4609_vm6, %v4182_v53, 0.0 }
 0x4a0   : > { %v4663_v3 = vadd.f32 %v4631_v62, %v9344_v41 }
 0x4a1   : > { %v4029_v20 = vpop.f32.mrf.mxu3 }
 0x4a2   : > { %v4511_v31 = vsel %vm4479_vm5, %v4029_v20, 0.0  ;;  %v4264_v16 = vpop.f32.mrf.mxu2 }
 0x4a3   : > { %v9485_v38 = vadd.f32 %v4576_v25, %v4511_v31  ;;  %v4693_v42 = vsel %vm4674_vm7, %v4264_v16, 0.0  ;;  %v4397_v53 = vpop.f32.mrf.mxu0 }
 0x4a4   : > { %v9489_v41 = vadd.f32 %v4693_v42, %v4660_v0  ;;  %v4805_v16 = vsel %vm4804_vm9, %v4397_v53, 0.0 }
 0x4a5   : > { %9983 = vst [vmem:[#allocation11_spill] sm:$0xff] %v9485_v38 }
 0x4a6   : > { %9984 = vst [vmem:[#allocation12_spill] sm:$0xff] %v9489_v41  ;;  %6746 = vmatmul.msk.bf16.gmra.mxu3 %vm3875_vm3, %v9026_v23  ;;  %6762 = vmatmul.msk.bf16.gmra.mxu0 %vm3875_vm3, %v9026_v23  ;;  %v4185_v24 = vpop.f32.mrf.mxu1 }
 0x4a7   : > { %v4632_v28 = vsel %vm4609_vm6, %v4185_v24, 0.0 }
 0x4a8   : > { %v4664_v62 = vadd.f32 %v4632_v28, %v9360_v9 }
 0x4a9   : > { %v4308_v20 = vpop.f32.mrf.mxu3 }
 0x4aa   : > { %v4740_v0 = vsel %vm4739_vm8, %v4308_v20, 0.0  ;;  %v4266_v55 = vpop.f32.mrf.mxu2 }
 0x4ab   : > { %v4772_v25 = vadd.f32 %v4740_v0, %v9214_v10  ;;  %v4694_v23 = vsel %vm4674_vm7, %v4266_v55, 0.0  ;;  %v4399_v31 = vpop.f32.mrf.mxu0 }
 0x4ac   : > { %v9507_v42 = vadd.f32 %v4694_v23, %v4661_v57  ;;  %v4806_v23 = vsel %vm4804_vm9, %v4399_v31, 0.0 }
 0x4ad   : > { %v4837_v24 = vadd.f32 %v4805_v16, %v4772_v25 }
 0x4ae   : > { %9985 = vst [vmem:[#allocation13_spill] sm:$0xff] %v9507_v42  ;;  %v4187_v15 = vpop.f32.mrf.mxu1 }
 0x4af   : > { %v4869_v38 = vrot.slane %v4837_v24, 4  ;;  %v4633_v9 = vsel %vm4609_vm6, %v4187_v15, 0.0 }
 0x4b0   : > { %v9512_v20 = vadd.f32 %v4633_v9, %v9372_v21 }
 0x4b1   : > { %v4870_v28 = vadd.f32 %v4869_v38, %v4837_v24  ;;  %v4310_v10 = vpop.f32.mrf.mxu3 }
 0x4b2   : > { %v4741_v0 = vsel %vm4739_vm8, %v4310_v10, 0.0  ;;  %v4269_v55 = vpop.f32.mrf.mxu2 }
 0x4b3   : > { %v4871_v35 = vrot.slane %v4870_v28, 2  ;;  %v4773_v53 = vadd.f32 %v4741_v0, %v9233_v5  ;;  %v4695_v57 = vsel %vm4674_vm7, %v4269_v55, 0.0  ;;  %v4402_v25 = vpop.f32.mrf.mxu0 }
 0x4b4   : > { %v9521_v15 = vadd.f32 %v4695_v57, %v4662_v26 }
 0x4b5   : > { %v4872_v38 = vadd.f32 %v4871_v35, %v4870_v28  ;;  %v4838_v21 = vadd.f32 %v4806_v23, %v4773_v53  ;;  %v9532_v35 = vld [vmem:[%s9973_s4 + $0x3] ss:$0 sm:$0xff]  ;;  %v4807_v53 = vsel %vm4804_vm9, %v4402_v25, 0.0 }
 0x4b6   : > { %9986 = vst [vmem:[#allocation14_spill] sm:$0xff] %v9521_v15  ;;  %6747 = vmatmul.msk.bf16.gmra.mxu3 %vm3875_vm3, %v9052_v52  ;;  %6763 = vmatmul.msk.bf16.gmra.mxu0 %vm3875_vm3, %v9052_v52 }
 0x4b7   : > { %v4873_v16 = vrot.slane %v4872_v38, 1  ;;  %v4875_v24 = vrot.slane %v4838_v21, 4 }
 0x4b9   : > { %v4876_v5 = vadd.f32 %v4875_v24, %v4838_v21  ;;  %v4313_v9 = vpop.f32.mrf.mxu3  ;;  %v4874_v10 = vadd.f32 %v4873_v16, %v4872_v38 }
 0x4ba   : > { %v4742_v0 = vsel %vm4739_vm8, %v4313_v9, 0.0  ;;  %v4271_v55 = vpop.f32.mrf.mxu2 }
 0x4bb   : > { %v4877_v26 = vrot.slane %v4876_v5, 2  ;;  %v4774_v31 = vadd.f32 %v4742_v0, %v9248_v18  ;;  %v4696_v52 = vsel %vm4674_vm7, %v4271_v55, 0.0  ;;  %v4404_v28 = vpop.f32.mrf.mxu0  ;;  %v5062_v21 = vadd.f32 %v9532_v35, %v4874_v10 }
 0x4bc   : > { %v9539_v57 = vadd.f32 %v4696_v52, %v4663_v3  ;;  %v4808_v10 = vsel %vm4804_vm9, %v4404_v28, 0.0 }
 0x4bd   : > { %v4878_v23 = vadd.f32 %v4877_v26, %v4876_v5  ;;  %v4839_v38 = vadd.f32 %v4807_v53, %v4774_v31  ;;  %v5126_v42 = vmax.f32 %v5062_v21, 0.0 }
 0x4bf   : > { %v4879_v16 = vrot.slane %v4878_v23, 1  ;;  %v4881_v24 = vrot.slane %v4839_v38, 4 }
 0x4c1   : > { %v4880_v9 = vadd.f32 %v4879_v16, %v4878_v23  ;;  %v4882_v51 = vadd.f32 %v4881_v24, %v4839_v38  ;;  %v4315_v15 = vpop.f32.mrf.mxu3 }
 0x4c2   : > { %v4743_v18 = vsel %vm4739_vm8, %v4315_v15, 0.0  ;;  %v4274_v0 = vpop.f32.mrf.mxu2  ;;  %v5158_v15 = vpack.c.bf16 %v5126_v42, %v5126_v42 }
 0x4c3   : > { %v5063_v55 = vadd.f32 %v9532_v35, %v4880_v9  ;;  %v4883_v41 = vrot.slane %v4882_v51, 2  ;;  %v4775_v3 = vadd.f32 %v4743_v18, %v9267_v44  ;;  %v4697_v25 = vsel %vm4674_vm7, %v4274_v0, 0.0  ;;  %v4407_v5 = vpop.f32.mrf.mxu0  ;;  %v7046_v44 = vld [vmem:[%s9971_s2 + $0x230] sm:$0xff] }
 0x4c4   : > { %v9550_v26 = vadd.f32 %v4697_v25, %v4664_v62  ;;  %5387 = vmatpush.bf16.msrb.mxu1 %v7046_v44  ;;  %v5239_v42 = vunpack.c.l.b16 %v5158_v15 }
 0x4c5   : > { %7493 = vtanh.f32 %v5063_v55  ;;  %v5127_v31 = vmax.f32 %v5063_v55, 0.0  ;;  %v4884_v52 = vadd.f32 %v4883_v41, %v4882_v51  ;;  %v4840_v53 = vadd.f32 %v4808_v10, %v4775_v3 }
 0x4c6   : > { %6748 = vmatmul.msk.bf16.gmra.mxu3 %vm3875_vm3, %v9076_v2  ;;  %6764 = vmatmul.msk.bf16.gmra.mxu0 %vm3875_vm3, %v9076_v2  ;;  %7495 = vtanh.f32 %v5062_v21  ;;  %v4809_v10 = vsel %vm4804_vm9, %v4407_v5, 0.0 }
 0x4c7   : > { %v5159_v23 = vpack.c.bf16 %v5127_v31, %v5127_v31  ;;  %v4885_v28 = vrot.slane %v4884_v52, 1  ;;  %v4887_v62 = vrot.slane %v4840_v53, 4 }
 0x4c9   : > { %v5240_v38 = vunpack.c.l.b16 %v5159_v23  ;;  %v4886_v16 = vadd.f32 %v4885_v28, %v4884_v52  ;;  %v4888_v51 = vadd.f32 %v4887_v62, %v4840_v53  ;;  %v4318_v41 = vpop.f32.mrf.mxu3 }
 0x4ca   : > { %v4744_v24 = vsel %vm4739_vm8, %v4318_v41, 0.0  ;;  %v4276_v9 = vpop.f32.mrf.mxu2 }
 0x4cb   : > { %v7494_v2 = vpop.eup %7493  ;;  %v5271_v18 = vrot.slane %v5240_v38, 7  ;;  %v5064_v0 = vadd.f32 %v9532_v35, %v4886_v16  ;;  %v4889_v55 = vrot.slane %v4888_v51, 2  ;;  %v4776_v21 = vadd.f32 %v4744_v24, %v9282_v33  ;;  %v4409_v3 = vpop.f32.mrf.mxu0 }
 0x4cc   : > { %v5565_v25 = vrot.slane %v7494_v2, 7  ;;  %v4698_v31 = vsel %vm4674_vm7, %v4276_v9, 0.0  ;;  %v7496_v52 = vpop.eup %7495 }
 0x4cd   : > { %v5273_v53 = vsel %vm5272_vm10, %v5271_v18, %v5239_v42  ;;  %7497 = vtanh.f32 %v5064_v0  ;;  %v5128_v15 = vmax.f32 %v5064_v0, 0.0  ;;  %v4890_v44 = vadd.f32 %v4889_v55, %v4888_v51 }
 0x4ce   : > { %v4841_v23 = vadd.f32 %v4809_v10, %v4776_v21  ;;  %v9569_v28 = vadd.f32 %v4698_v31, %v9512_v20  ;;  %v5566_v33 = vsel %vm5272_vm10, %v5565_v25, %v7496_v52  ;;  %v4810_v25 = vsel %vm4804_vm9, %v4409_v3, 0.0 }
 0x4cf   : > { %v5160_v62 = vpack.c.bf16 %v5128_v15, %v5128_v15  ;;  %v4891_v38 = vrot.slane %v4890_v44, 1 }
 0x4d0   : > { %v4893_v16 = vrot.slane %v4841_v23, 4 }
 0x4d1   : > { %v5241_v41 = vunpack.c.l.b16 %v5160_v62  ;;  %v4892_v5 = vadd.f32 %v4891_v38, %v4890_v44  ;;  %v4320_v24 = vpop.f32.mrf.mxu3 }
 0x4d2   : > { %v4894_v9 = vadd.f32 %v4893_v16, %v4841_v23  ;;  %v4745_v42 = vsel %vm4739_vm8, %v4320_v24, 0.0 }
 0x4d3   : > { %v7498_v2 = vpop.eup %7497  ;;  %v5274_v18 = vrot.slane %v5241_v41, 6  ;;  %v5065_v51 = vadd.f32 %v9532_v35, %v4892_v5  ;;  %v4777_v20 = vadd.f32 %v4745_v42, %v9300_v40  ;;  %v4412_v0 = vpop.f32.mrf.mxu0 }
 0x4d4   : > { %v5567_v55 = vrot.slane %v7498_v2, 6  ;;  %v4895_v21 = vrot.slane %v4894_v9, 2 }
 0x4d5   : > { %v5276_v10 = vsel %vm5275_vm11, %v5274_v18, %v5273_v53  ;;  %7499 = vtanh.f32 %v5065_v51  ;;  %v5129_v31 = vmax.f32 %v5065_v51, 0.0  ;;  %v4842_v52 = vadd.f32 %v4810_v25, %v4777_v20 }
 0x4d6   : > { %v4896_v15 = vadd.f32 %v4895_v21, %v4894_v9  ;;  %6749 = vmatmul.msk.bf16.gmra.mxu3 %vm3875_vm3, %v9100_v37  ;;  %6765 = vmatmul.msk.bf16.gmra.mxu0 %vm3875_vm3, %v9100_v37  ;;  %v5568_v40 = vsel %vm5275_vm11, %v5567_v55, %v5566_v33  ;;  %v4811_v18 = vsel %vm4804_vm9, %v4412_v0, 0.0 }
 0x4d7   : > { %v5161_v44 = vpack.c.bf16 %v5129_v31, %v5129_v31  ;;  %v4899_v23 = vrot.slane %v4842_v52, 4 }
 0x4d8   : > { %v4897_v62 = vrot.slane %v4896_v15, 1 }
 0x4d9   : > { %v5242_v38 = vunpack.c.l.b16 %v5161_v44  ;;  %v4900_v16 = vadd.f32 %v4899_v23, %v4842_v52  ;;  %v4323_v3 = vpop.f32.mrf.mxu3 }
 0x4da   : > { %v4898_v53 = vadd.f32 %v4897_v62, %v4896_v15  ;;  %v4746_v41 = vsel %vm4739_vm8, %v4323_v3, 0.0  ;;  %v7045_v62 = vld [vmem:[%s9971_s2 + $0x228] sm:$0xff] }
 0x4db   : > { %v7500_v5 = vpop.eup %7499  ;;  %v5277_v24 = vrot.slane %v5242_v38, 5  ;;  %v4901_v9 = vrot.slane %v4900_v16, 2  ;;  %v4778_v42 = vadd.f32 %v4746_v41, %v9314_v36  ;;  %v4414_v2 = vpop.f32.mrf.mxu0  ;;  %5388 = vmatpush.bf16.msrb.mxu1 %v7045_v62  ;;  %v4618_v41 = vsel %vm4609_vm6, %v9288_v60, 0.0 }
 0x4dc   : > { %v5569_v37 = vrot.slane %v7500_v5, 5  ;;  %v5066_v33 = vadd.f32 %v9532_v35, %v4898_v53 }
 0x4dd   : > { %v5279_v51 = vsel %vm5278_vm12, %v5277_v24, %v5276_v10  ;;  %v4902_v20 = vadd.f32 %v4901_v9, %v4900_v16  ;;  %v4843_v55 = vadd.f32 %v4811_v18, %v4778_v42  ;;  %v4812_v24 = vsel %vm4804_vm9, %v4414_v2, 0.0 }
 0x4de   : > { %7501 = vtanh.f32 %v5066_v33  ;;  %v5130_v21 = vmax.f32 %v5066_v33, 0.0  ;;  %v5570_v25 = vsel %vm5278_vm12, %v5569_v37, %v5568_v40  ;;  %v4683_v33 = vsel %vm4674_vm7, %v9342_v27, 0.0 }
 0x4df   : > { %v4903_v31 = vrot.slane %v4902_v20, 1  ;;  %v4905_v52 = vrot.slane %v4843_v55, 4  ;;  %v4650_v18 = vadd.f32 %v4618_v41, %v9138_v49  ;;  %v4684_v41 = vsel %vm4674_vm7, %v9358_v17, 0.0 }
 0x4e0   : > { %v5162_v15 = vpack.c.bf16 %v5130_v21, %v5130_v21 }
 0x4e1   : > { %v4904_v44 = vadd.f32 %v4903_v31, %v4902_v20  ;;  %v4906_v36 = vadd.f32 %v4905_v52, %v4843_v55  ;;  %v4325_v23 = vpop.f32.mrf.mxu3  ;;  %v4715_v31 = vadd.f32 %v4683_v33, %v4650_v18 }
 0x4e2   : > { %v5243_v38 = vunpack.c.l.b16 %v5162_v15  ;;  %v4747_v0 = vsel %vm4739_vm8, %v4325_v23, 0.0 }
 0x4e3   : > { %v5067_v10 = vadd.f32 %v9532_v35, %v4904_v44  ;;  %v4907_v16 = vrot.slane %v4906_v36, 2  ;;  %v4779_v40 = vadd.f32 %v4747_v0, %v9332_v7  ;;  %v4417_v3 = vpop.f32.mrf.mxu0 }
 0x4e4   : > { %v7502_v53 = vpop.eup %7501  ;;  %v5280_v5 = vrot.slane %v5243_v38, 4  ;;  %v4813_v0 = vsel %vm4804_vm9, %v4417_v3, 0.0 }
 0x4e5   : > { %v5131_v9 = vmax.f32 %v5067_v10, 0.0  ;;  %v4908_v42 = vadd.f32 %v4907_v16, %v4906_v36  ;;  %v4844_v37 = vadd.f32 %v4812_v24, %v4779_v40  ;;  %7503 = vtanh.f32 %v5067_v10 }
 0x4e6   : > { %v5282_v7 = vsel %vm5281_vm13, %v5280_v5, %v5279_v51  ;;  %6750 = vmatmul.msk.bf16.gmra.mxu3 %vm3875_vm3, %v9124_v32  ;;  %6766 = vmatmul.msk.bf16.gmra.mxu0 %vm3875_vm3, %v9124_v32  ;;  %v5571_v60 = vrot.slane %v7502_v53, 4 }
 0x4e7   : > { %v5163_v2 = vpack.c.bf16 %v5131_v9, %v5131_v9  ;;  %v4909_v20 = vrot.slane %v4908_v42, 1  ;;  %v4911_v55 = vrot.slane %v4844_v37, 4 }
 0x4e8   : > { %v5572_v21 = vsel %vm5281_vm13, %v5571_v60, %v5570_v25  ;;  %v4619_v25 = vsel %vm4609_vm6, %v9302_v63, 0.0 }
 0x4e9   : > { %v5244_v52 = vunpack.c.l.b16 %v5163_v2  ;;  %v4910_v15 = vadd.f32 %v4909_v20, %v4908_v42  ;;  %v4912_v27 = vadd.f32 %v4911_v55, %v4844_v37  ;;  %v4328_v44 = vpop.f32.mrf.mxu3  ;;  %v4651_v9 = vadd.f32 %v4619_v25, %v9146_v1 }
 0x4ea   : > { %v4748_v51 = vsel %vm4739_vm8, %v4328_v44, 0.0  ;;  %v4620_v1 = vsel %vm4609_vm6, %v9320_v11, 0.0 }
 0x4eb   : > { %v7504_v36 = vpop.eup %7503  ;;  %v5283_v23 = vrot.slane %v5244_v52, 3  ;;  %v5068_v32 = vadd.f32 %v9532_v35, %v4910_v15  ;;  %v4913_v62 = vrot.slane %v4912_v27, 2  ;;  %v4780_v49 = vadd.f32 %v4748_v51, %v4715_v31  ;;  %v4419_v38 = vpop.f32.mrf.mxu0 }
 0x4ec   : > { %v5573_v10 = vrot.slane %v7504_v36, 3  ;;  %v4716_v33 = vadd.f32 %v4684_v41, %v4651_v9  ;;  %v4814_v15 = vsel %vm4804_vm9, %v4419_v38, 0.0  ;;  %v4685_v36 = vsel %vm4674_vm7, %v9370_v58, 0.0 }
 0x4ed   : > { %v5132_v16 = vmax.f32 %v5068_v32, 0.0  ;;  %v4914_v40 = vadd.f32 %v4913_v62, %v4912_v27  ;;  %v4845_v53 = vadd.f32 %v4813_v0, %v4780_v49  ;;  %v5285_v5 = vsel %vm5284_vm14, %v5283_v23, %v5282_v7 }
 0x4ee   : > { %7505 = vtanh.f32 %v5068_v32  ;;  %v5574_v24 = vsel %vm5284_vm14, %v5573_v10, %v5572_v21  ;;  %v4652_v32 = vadd.f32 %v4620_v1, %v9166_v47  ;;  %v4621_v47 = vsel %vm4609_vm6, %v9334_v29, 0.0 }
 0x4ef   : > { %v5164_v42 = vpack.c.bf16 %v5132_v16, %v5132_v16  ;;  %v4915_v63 = vrot.slane %v4914_v40, 1  ;;  %v4917_v37 = vrot.slane %v4845_v53, 4  ;;  %v4622_v1 = vsel %vm4609_vm6, %v9350_v45, 0.0  ;;  %v7044_v45 = vld [vmem:[%s9971_s2 + $0x220] sm:$0xff] }
 0x4f0   : > { %v4717_v0 = vadd.f32 %v4685_v36, %v4652_v32  ;;  %v4654_v32 = vadd.f32 %v4622_v1, %v9196_v39  ;;  %5389 = vmatpush.bf16.msrb.mxu1 %v7044_v45 }
 0x4f1   : > { %v5245_v3 = vunpack.c.l.b16 %v5164_v42  ;;  %v4916_v60 = vadd.f32 %v4915_v63, %v4914_v40  ;;  %v4918_v18 = vadd.f32 %v4917_v37, %v4845_v53  ;;  %v4330_v2 = vpop.f32.mrf.mxu3 }
 0x4f2   : > { %v4749_v20 = vsel %vm4739_vm8, %v4330_v2, 0.0  ;;  %v4653_v2 = vadd.f32 %v4621_v47, %v9177_v54  ;;  %v4623_v47 = vsel %vm4609_vm6, %v9362_v34, 0.0 }
 0x4f3   : > { %v5286_v17 = vrot.slane %v5245_v3, 2  ;;  %v5069_v7 = vadd.f32 %v9532_v35, %v4916_v60  ;;  %v4919_v55 = vrot.slane %v4918_v18, 2  ;;  %v4781_v31 = vadd.f32 %v4749_v20, %v4716_v33  ;;  %v4422_v21 = vpop.f32.mrf.mxu0 }
 0x4f4   : > { %v7506_v52 = vpop.eup %7505  ;;  %v4686_v33 = vsel %vm4674_vm7, %v9386_v6, 0.0 }
 0x4f5   : > { %v5133_v27 = vmax.f32 %v5069_v7, 0.0  ;;  %v4920_v44 = vadd.f32 %v4919_v55, %v4918_v18  ;;  %v4846_v51 = vadd.f32 %v4814_v15, %v4781_v31  ;;  %v5288_v23 = vsel %vm5287_vm15, %v5286_v17, %v5285_v5 }
 0x4f6   : > { %6751 = vmatmul.msk.bf16.gmra.mxu3 %vm3875_vm3, %v9148_v43  ;;  %6767 = vmatmul.msk.bf16.gmra.mxu0 %vm3875_vm3, %v9148_v43  ;;  %7507 = vtanh.f32 %v5069_v7  ;;  %v5575_v11 = vrot.slane %v7506_v52, 2  ;;  %v4718_v7 = vadd.f32 %v4686_v33, %v4653_v2  ;;  %v4688_v2 = vsel %vm4674_vm7, %v9413_v56, 0.0 }
 0x4f7   : > { %v5165_v62 = vpack.c.bf16 %v5133_v27, %v5133_v27  ;;  %v4921_v49 = vrot.slane %v4920_v44, 1  ;;  %v4923_v38 = vrot.slane %v4846_v51, 4 }
 0x4f8   : > { %v5576_v25 = vsel %vm5287_vm15, %v5575_v11, %v5574_v24  ;;  %v4815_v24 = vsel %vm4804_vm9, %v4422_v21, 0.0 }
 0x4f9   : > { %v5246_v10 = vunpack.c.l.b16 %v5165_v62  ;;  %v4924_v58 = vadd.f32 %v4923_v38, %v4846_v51  ;;  %v4333_v16 = vpop.f32.mrf.mxu3  ;;  %v4922_v40 = vadd.f32 %v4921_v49, %v4920_v44  ;;  %v4687_v62 = vsel %vm4674_vm7, %v9398_v13, 0.0 }
 0x4fa   : > { %v4750_v53 = vsel %vm4739_vm8, %v4333_v16, 0.0  ;;  %v4719_v39 = vadd.f32 %v4687_v62, %v4654_v32  ;;  %v7043_v62 = vld [vmem:[%s9971_s2 + $0x218] sm:$0xff] }
 0x4fb   : > { %v5289_v43 = vrot.slane %v5246_v10, 1  ;;  %v4925_v41 = vrot.slane %v4924_v58, 2  ;;  %v4782_v5 = vadd.f32 %v4750_v53, %v4717_v0  ;;  %v4424_v9 = vpop.f32.mrf.mxu0  ;;  %v5070_v3 = vadd.f32 %v9532_v35, %v4922_v40  ;;  %5390 = vmatpush.bf16.msrb.mxu1 %v7043_v62 }
 0x4fc   : > { %v7508_v42 = vpop.eup %7507  ;;  %v4816_v51 = vsel %vm4804_vm9, %v4424_v9, 0.0 }
 0x4fd   : > { %v4926_v63 = vadd.f32 %v4925_v41, %v4924_v58  ;;  %v4847_v37 = vadd.f32 %v4815_v24, %v4782_v5  ;;  %v9658_v60 = vsel %vm5290_vm0, %v5289_v43, %v5288_v23  ;;  %v5577_v18 = vrot.slane %v7508_v42, 1 }
 0x4fe   : > { %v5134_v52 = vmax.f32 %v5070_v3, 0.0 }
 0x4ff   : > { %v4927_v20 = vrot.slane %v4926_v63, 1  ;;  %v4929_v17 = vrot.slane %v4847_v37, 4  ;;  %v9662_v29 = vsel %vm5290_vm0, %v5577_v18, %v5576_v25 }
 0x500   : > { %v5166_v49 = vpack.c.bf16 %v5134_v52, %v5134_v52 }
 0x501   : > { %v4928_v55 = vadd.f32 %v4927_v20, %v4926_v63  ;;  %v4930_v31 = vadd.f32 %v4929_v17, %v4847_v37  ;;  %v4335_v21 = vpop.f32.mrf.mxu3 }
 0x502   : > { %v4751_v6 = vsel %vm4739_vm8, %v4335_v21, 0.0  ;;  %v5247_v40 = vunpack.c.l.b16 %v5166_v49 }
 0x503   : > { %v5071_v15 = vadd.f32 %v9532_v35, %v4928_v55  ;;  %v4931_v54 = vrot.slane %v4930_v31, 2  ;;  %v4783_v27 = vadd.f32 %v4751_v6, %v4718_v7  ;;  %v4427_v44 = vpop.f32.mrf.mxu0  ;;  %v4655_v7 = vadd.f32 %v4623_v47, %v9208_v50 }
 0x504   : > { %v4817_v63 = vsel %vm4804_vm9, %v4427_v44, 0.0  ;;  %v4624_v50 = vsel %vm4609_vm6, %v9378_v46, 0.0  ;;  %v4625_v47 = vsel %vm4609_vm6, %v9390_v8, 0.0 }
 0x505   : > { %7509 = vtanh.f32 %v5071_v15  ;;  %v5135_v36 = vmax.f32 %v5071_v15, 0.0  ;;  %v4932_v23 = vadd.f32 %v4931_v54, %v4930_v31  ;;  %v4848_v11 = vadd.f32 %v4816_v51, %v4783_v27 }
 0x506   : > { %6752 = vmatmul.msk.bf16.gmra.mxu3 %vm3875_vm3, %v9179_v48  ;;  %6768 = vmatmul.msk.bf16.gmra.mxu0 %vm3875_vm3, %v9179_v48  ;;  %7511 = vtanh.f32 %v5070_v3  ;;  %v4720_v21 = vadd.f32 %v4688_v2, %v4655_v7  ;;  %v4657_v7 = vadd.f32 %v4625_v47, %v9244_v19 }
 0x507   : > { %v5167_v38 = vpack.c.bf16 %v5135_v36, %v5135_v36  ;;  %v4933_v25 = vrot.slane %v4932_v23, 1  ;;  %v4935_v0 = vrot.slane %v4848_v11, 4 }
 0x509   : > { %v5248_v10 = vunpack.c.l.b16 %v5167_v38  ;;  %v4934_v58 = vadd.f32 %v4933_v25, %v4932_v23  ;;  %v4936_v13 = vadd.f32 %v4935_v0, %v4848_v11  ;;  %v4338_v16 = vpop.f32.mrf.mxu3  ;;  %v4689_v25 = vsel %vm4674_vm7, %v9426_v30, 0.0 }
 0x50a   : > { %v4752_v53 = vsel %vm4739_vm8, %v4338_v16, 0.0  ;;  %v7042_v16 = vld [vmem:[%s9971_s2 + $0x210] sm:$0xff] }
 0x50b   : > { %v7510_v43 = vpop.eup %7509  ;;  %v5292_v48 = vrot.slane %v5248_v10, 7  ;;  %v5072_v41 = vadd.f32 %v9532_v35, %v4934_v58  ;;  %v4937_v5 = vrot.slane %v4936_v13, 2  ;;  %v4784_v9 = vadd.f32 %v4752_v53, %v4719_v39  ;;  %v4429_v42 = vpop.f32.mrf.mxu0  ;;  %5391 = vmatpush.bf16.msrb.mxu1 %v7042_v16 }
 0x50c   : > { %v5579_v24 = vrot.slane %v7510_v43, 7  ;;  %v7512_v37 = vpop.eup %7511  ;;  %v4818_v32 = vsel %vm4804_vm9, %v4429_v42, 0.0  ;;  %v4656_v39 = vadd.f32 %v4624_v50, %v9229_v61 }
 0x50d   : > { %v5293_v33 = vsel %vm5272_vm10, %v5292_v48, %v5247_v40  ;;  %7513 = vtanh.f32 %v5072_v41  ;;  %v5136_v3 = vmax.f32 %v5072_v41, 0.0  ;;  %v4938_v18 = vadd.f32 %v4937_v5, %v4936_v13 }
 0x50e   : > { %v4849_v20 = vadd.f32 %v4817_v63, %v4784_v9  ;;  %v5580_v17 = vsel %vm5272_vm10, %v5579_v24, %v7512_v37  ;;  %v4721_v30 = vadd.f32 %v4689_v25, %v4656_v39 }
 0x50f   : > { %v5168_v34 = vpack.c.bf16 %v5136_v3, %v5136_v3  ;;  %v4939_v55 = vrot.slane %v4938_v18, 1 }
 0x510   : > { %v4941_v31 = vrot.slane %v4849_v20, 4 }
 0x511   : > { %v5249_v52 = vunpack.c.l.b16 %v5168_v34  ;;  %v4940_v6 = vadd.f32 %v4939_v55, %v4938_v18  ;;  %v4340_v1 = vpop.f32.mrf.mxu3 }
 0x512   : > { %v4942_v15 = vadd.f32 %v4941_v31, %v4849_v20  ;;  %v4753_v54 = vsel %vm4739_vm8, %v4340_v1, 0.0  ;;  %v4690_v20 = vsel %vm4674_vm7, %v9441_v4, 0.0 }
 0x513   : > { %v7514_v27 = vpop.eup %7513  ;;  %v5294_v44 = vrot.slane %v5249_v52, 6  ;;  %v5073_v56 = vadd.f32 %v9532_v35, %v4940_v6  ;;  %v4785_v51 = vadd.f32 %v4753_v54, %v4720_v21  ;;  %v4432_v36 = vpop.f32.mrf.mxu0  ;;  %v7040_v21 = vld [vmem:[%s9971_s2 + $0x200] sm:$0xff]  ;;  %v4722_v52 = vadd.f32 %v4690_v20, %v4657_v7 }
 0x514   : > { %v5581_v23 = vrot.slane %v7514_v27, 6  ;;  %v4943_v11 = vrot.slane %v4942_v15, 2  ;;  %v4819_v37 = vsel %vm4804_vm9, %v4432_v36, 0.0 }
 0x515   : > { %v5295_v49 = vsel %vm5275_vm11, %v5294_v44, %v5293_v33  ;;  %7515 = vtanh.f32 %v5073_v56  ;;  %v5137_v45 = vmax.f32 %v5073_v56, 0.0  ;;  %v4850_v38 = vadd.f32 %v4818_v32, %v4785_v51  ;;  %v7041_v33 = vld [vmem:[%s9971_s2 + $0x208] sm:$0xff] }
 0x516   : > { %v4944_v0 = vadd.f32 %v4943_v11, %v4942_v15  ;;  %6753 = vmatmul.msk.bf16.gmra.mxu3 %vm3875_vm3, %v9212_v14  ;;  %6769 = vmatmul.msk.bf16.gmra.mxu0 %vm3875_vm3, %v9212_v14  ;;  %v5582_v46 = vsel %vm5275_vm11, %v5581_v23, %v5580_v17 }
 0x517   : > { %v5169_v10 = vpack.c.bf16 %v5137_v45, %v5137_v45  ;;  %v4947_v58 = vrot.slane %v4850_v38, 4  ;;  %5392 = vmatpush.bf16.msrb.mxu1 %v7041_v33 }
 0x518   : > { %v4945_v13 = vrot.slane %v4944_v0, 1 }
 0x519   : > { %v5250_v40 = vunpack.c.l.b16 %v5169_v10  ;;  %v4948_v53 = vadd.f32 %v4947_v58, %v4850_v38  ;;  %v4343_v43 = vpop.f32.mrf.mxu3 }
 0x51a   : > { %v4946_v48 = vadd.f32 %v4945_v13, %v4944_v0  ;;  %v4754_v14 = vsel %vm4739_vm8, %v4343_v43, 0.0 }
 0x51b   : > { %v7516_v41 = vpop.eup %7515  ;;  %v5296_v5 = vrot.slane %v5250_v40, 5  ;;  %v4949_v9 = vrot.slane %v4948_v53, 2  ;;  %v4786_v61 = vadd.f32 %v4754_v14, %v4721_v30  ;;  %v4434_v42 = vpop.f32.mrf.mxu0  ;;  %5393 = vmatpush.bf16.msrb.mxu1 %v7040_v21 }
 0x51c   : > { %v5583_v24 = vrot.slane %v7516_v41, 5  ;;  %v5074_v63 = vadd.f32 %v9532_v35, %v4946_v48  ;;  %v4820_v50 = vsel %vm4804_vm9, %v4434_v42, 0.0 }
 0x51d   : > { %v5297_v3 = vsel %vm5278_vm12, %v5296_v5, %v5295_v49  ;;  %v4950_v18 = vadd.f32 %v4949_v9, %v4948_v53  ;;  %v4851_v2 = vadd.f32 %v4819_v37, %v4786_v61 }
 0x51e   : > { %7517 = vtanh.f32 %v5074_v63  ;;  %v5138_v8 = vmax.f32 %v5074_v63, 0.0  ;;  %v5584_v17 = vsel %vm5278_vm12, %v5583_v24, %v5582_v46 }
 0x51f   : > { %v4951_v34 = vrot.slane %v4950_v18, 1  ;;  %v4953_v55 = vrot.slane %v4851_v2, 4 }
 0x520   : > { %v5170_v31 = vpack.c.bf16 %v5138_v8, %v5138_v8 }
 0x521   : > { %v4952_v6 = vadd.f32 %v4951_v34, %v4950_v18  ;;  %v4954_v1 = vadd.f32 %v4953_v55, %v4851_v2  ;;  %v4345_v15 = vpop.f32.mrf.mxu3 }
 0x522   : > { %v5251_v54 = vunpack.c.l.b16 %v5170_v31  ;;  %v4755_v4 = vsel %vm4739_vm8, %v4345_v15, 0.0 }
 0x523   : > { %v5075_v27 = vadd.f32 %v9532_v35, %v4952_v6  ;;  %v4955_v44 = vrot.slane %v4954_v1, 2  ;;  %v4787_v19 = vadd.f32 %v4755_v4, %v4722_v52  ;;  %v4437_v56 = vpop.f32.mrf.mxu0 }
 0x524   : > { %v7518_v51 = vpop.eup %7517  ;;  %v5298_v36 = vrot.slane %v5251_v54, 4  ;;  %v4821_v14 = vsel %vm4804_vm9, %v4437_v56, 0.0 }
 0x525   : > { %7519 = vtanh.f32 %v5075_v27  ;;  %v5139_v23 = vmax.f32 %v5075_v27, 0.0  ;;  %v4956_v11 = vadd.f32 %v4955_v44, %v4954_v1  ;;  %v4852_v32 = vadd.f32 %v4820_v50, %v4787_v19 }
 0x526   : > { %v5299_v62 = vsel %vm5281_vm13, %v5298_v36, %v5297_v3  ;;  %v5585_v49 = vrot.slane %v7518_v51, 4 }
 0x527   : > { %v5171_v45 = vpack.c.bf16 %v5139_v23, %v5139_v23  ;;  %v4957_v38 = vrot.slane %v4956_v11, 1  ;;  %v4959_v25 = vrot.slane %v4852_v32, 4  ;;  %v9987_v23 = vld [vmem:[#allocation12_spill] sm:$0xff] }
 0x528   : > { %v5586_v0 = vsel %vm5281_vm13, %v5585_v49, %v5584_v17 }
 0x529   : > { %v5252_v46 = vunpack.c.l.b16 %v5171_v45  ;;  %v4958_v39 = vadd.f32 %v4957_v38, %v4956_v11  ;;  %v4960_v10 = vadd.f32 %v4959_v25, %v4852_v32  ;;  %v4348_v58 = vpop.f32.mrf.mxu3 }
 0x52a   : > { %v4756_v13 = vsel %vm4739_vm8, %v4348_v58, 0.0 }
 0x52b   : > { %v7520_v16 = vpop.eup %7519  ;;  %v5300_v30 = vrot.slane %v5252_v46, 3  ;;  %v5076_v40 = vadd.f32 %v9532_v35, %v4958_v39  ;;  %v4961_v53 = vrot.slane %v4960_v10, 2  ;;  %v4788_v43 = vadd.f32 %v4756_v13, %v9456_v12  ;;  %v4439_v48 = vpop.f32.mrf.mxu0 }
 0x52c   : > { %v5587_v41 = vrot.slane %v7520_v16, 3  ;;  %v4822_v31 = vsel %vm4804_vm9, %v4439_v48, 0.0 }
 0x52d   : > { %v5140_v5 = vmax.f32 %v5076_v40, 0.0  ;;  %v4962_v9 = vadd.f32 %v4961_v53, %v4960_v10  ;;  %v4853_v61 = vadd.f32 %v4821_v14, %v4788_v43  ;;  %v5301_v42 = vsel %vm5284_vm14, %v5300_v30, %v5299_v62 }
 0x52e   : > { %7521 = vtanh.f32 %v5076_v40  ;;  %v5588_v47 = vsel %vm5284_vm14, %v5587_v41, %v5586_v0  ;;  %v9988_v41 = vld [vmem:[#allocation13_spill] sm:$0xff] }
 0x52f   : > { %v5172_v24 = vpack.c.bf16 %v5140_v5, %v5140_v5  ;;  %v4963_v63 = vrot.slane %v4962_v9, 1  ;;  %v4965_v37 = vrot.slane %v4853_v61, 4 }
 0x531   : > { %v5253_v33 = vunpack.c.l.b16 %v5172_v24  ;;  %v4964_v3 = vadd.f32 %v4963_v63, %v4962_v9  ;;  %v4966_v18 = vadd.f32 %v4965_v37, %v4853_v61  ;;  %v4350_v12 = vpop.f32.mrf.mxu3 }
 0x532   : > { %v4757_v2 = vsel %vm4739_vm8, %v4350_v12, 0.0 }
 0x533   : > { %v5302_v20 = vrot.slane %v5253_v33, 2  ;;  %v5077_v8 = vadd.f32 %v9532_v35, %v4964_v3  ;;  %v4967_v17 = vrot.slane %v4966_v18, 2  ;;  %v4789_v7 = vadd.f32 %v4757_v2, %v9473_v59  ;;  %v4442_v34 = vpop.f32.mrf.mxu0 }
 0x534   : > { %v7522_v55 = vpop.eup %7521  ;;  %v4823_v45 = vsel %vm4804_vm9, %v4442_v34, 0.0 }
 0x535   : > { %v5141_v21 = vmax.f32 %v5077_v8, 0.0  ;;  %v4968_v52 = vadd.f32 %v4967_v17, %v4966_v18  ;;  %v4854_v6 = vadd.f32 %v4822_v31, %v4789_v7  ;;  %v5303_v1 = vsel %vm5287_vm15, %v5302_v20, %v5301_v42  ;;  %v9989_v31 = vld [vmem:[#allocation14_spill] sm:$0xff] }
 0x536   : > { %v5589_v15 = vrot.slane %v7522_v55, 2  ;;  %7523 = vtanh.f32 %v5077_v8 }
 0x537   : > { %v5173_v54 = vpack.c.bf16 %v5141_v21, %v5141_v21  ;;  %v4971_v4 = vrot.slane %v4854_v6, 4  ;;  %v4969_v27 = vrot.slane %v4968_v52, 1 }
 0x538   : > { %v5590_v44 = vsel %vm5287_vm15, %v5589_v15, %v5588_v47 }
 0x539   : > { %v5254_v19 = vunpack.c.l.b16 %v5173_v54  ;;  %v4972_v56 = vadd.f32 %v4971_v4, %v4854_v6  ;;  %v4353_v59 = vpop.f32.mrf.mxu3  ;;  %v4970_v49 = vadd.f32 %v4969_v27, %v4968_v52 }
 0x53a   : > { %v4758_v51 = vsel %vm4739_vm8, %v4353_v59, 0.0 }
 0x53b   : > { %v5304_v36 = vrot.slane %v5254_v19, 1  ;;  %v4973_v50 = vrot.slane %v4972_v56, 2  ;;  %v4790_v11 = vadd.f32 %v4758_v51, %v9987_v23  ;;  %v4444_v32 = vpop.f32.mrf.mxu0  ;;  %v5078_v13 = vadd.f32 %v9532_v35, %v4970_v49 }
 0x53c   : > { %v7524_v62 = vpop.eup %7523 }
 0x53d   : > { %v4974_v38 = vadd.f32 %v4973_v50, %v4972_v56  ;;  %v4855_v25 = vadd.f32 %v4823_v45, %v4790_v11  ;;  %v5305_v0 = vsel %vm5290_vm0, %v5304_v36, %v5303_v1  ;;  %v5591_v46 = vrot.slane %v7524_v62, 1  ;;  %v4190_v45 = vpop.f32.mrf.mxu1 }
 0x53e   : > { %v5334_v58 = vpack.c.b16 %v5305_v0, %v9658_v60  ;;  %v5142_v61 = vmax.f32 %v5078_v13, 0.0  ;;  %v4824_v60 = vsel %vm4804_vm9, %v4444_v32, 0.0 }
 0x53f   : > { %v4975_v39 = vrot.slane %v4974_v38, 1  ;;  %v4977_v10 = vrot.slane %v4855_v25, 4  ;;  %v9773_v16 = vsel %vm5290_vm0, %v5591_v46, %v5590_v44 }
 0x540   : > { %5394 = vmatmul.bf16.vlgmr.msrb.gmra.mxu1 %v5334_v58  ;;  %v5174_v3 = vpack.c.bf16 %v5142_v61, %v5142_v61 }
 0x541   : > { %v4976_v30 = vadd.f32 %v4975_v39, %v4974_v38  ;;  %v4978_v40 = vadd.f32 %v4977_v10, %v4855_v25  ;;  %v4355_v53 = vpop.f32.mrf.mxu3 }
 0x542   : > { %v4759_v43 = vsel %vm4739_vm8, %v4355_v53, 0.0  ;;  %v5255_v6 = vunpack.c.l.b16 %v5174_v3 }
 0x543   : > { %v5079_v48 = vadd.f32 %v9532_v35, %v4976_v30  ;;  %v4979_v14 = vrot.slane %v4978_v40, 2  ;;  %v4791_v5 = vadd.f32 %v4759_v43, %v9988_v41  ;;  %v4447_v9 = vpop.f32.mrf.mxu0 }
 0x544   : > { %v4825_v15 = vsel %vm4804_vm9, %v4447_v9, 0.0 }
 0x545   : > { %7525 = vtanh.f32 %v5079_v48  ;;  %v5143_v42 = vmax.f32 %v5079_v48, 0.0  ;;  %v4980_v47 = vadd.f32 %v4979_v14, %v4978_v40  ;;  %v4856_v24 = vadd.f32 %v4824_v60, %v4791_v5 }
 0x546   : > { %7527 = vtanh.f32 %v5078_v13  ;;  %v4279_v13 = vpop.f32.mrf.mxu2 }
 0x547   : > { %v5175_v63 = vpack.c.bf16 %v5143_v42, %v5143_v42  ;;  %v4981_v37 = vrot.slane %v4980_v47, 1  ;;  %v4983_v33 = vrot.slane %v4856_v24, 4 }
 0x549   : > { %v5256_v18 = vunpack.c.l.b16 %v5175_v63  ;;  %v4982_v12 = vadd.f32 %v4981_v37, %v4980_v47  ;;  %v4984_v2 = vadd.f32 %v4983_v33, %v4856_v24  ;;  %v4358_v20 = vpop.f32.mrf.mxu3 }
 0x54a   : > { %v4760_v8 = vsel %vm4739_vm8, %v4358_v20, 0.0 }
 0x54b   : > { %v7526_v17 = vpop.eup %7525  ;;  %v5306_v7 = vrot.slane %v5256_v18, 7  ;;  %v5080_v34 = vadd.f32 %v9532_v35, %v4982_v12  ;;  %v4985_v55 = vrot.slane %v4984_v2, 2  ;;  %v4792_v21 = vadd.f32 %v4760_v8, %v9989_v31  ;;  %v4449_v52 = vpop.f32.mrf.mxu0 }
 0x54c   : > { %v5593_v1 = vrot.slane %v7526_v17, 7  ;;  %v7528_v54 = vpop.eup %7527  ;;  %v4826_v58 = vsel %vm4804_vm9, %v4449_v52, 0.0 }
 0x54d   : > { %7529 = vtanh.f32 %v5080_v34  ;;  %v5144_v4 = vmax.f32 %v5080_v34, 0.0  ;;  %v4986_v27 = vadd.f32 %v4985_v55, %v4984_v2  ;;  %v4857_v44 = vadd.f32 %v4825_v15, %v4792_v21  ;;  %v4192_v2 = vpop.f32.mrf.mxu1 }
 0x54e   : > { %v5307_v19 = vsel %vm5272_vm10, %v5306_v7, %v5255_v6  ;;  %v5594_v56 = vsel %vm5272_vm10, %v5593_v1, %v7528_v54  ;;  %v4281_v55 = vpop.f32.mrf.mxu2 }
 0x54f   : > { %v5176_v59 = vpack.c.bf16 %v5144_v4, %v5144_v4  ;;  %v4987_v51 = vrot.slane %v4986_v27, 1  ;;  %v4989_v36 = vrot.slane %v4857_v44, 4 }
 0x551   : > { %v5257_v50 = vunpack.c.l.b16 %v5176_v59  ;;  %v4988_v23 = vadd.f32 %v4987_v51, %v4986_v27  ;;  %v4990_v11 = vadd.f32 %v4989_v36, %v4857_v44  ;;  %v4360_v32 = vpop.f32.mrf.mxu3  ;;  %v9810_v27 = vld [vmem:[%s9973_s4 + $0x3] ss:$0 sm:$0xff]  ;;  %v4634_v51 = vsel %vm4609_vm6, %v4190_v45, 0.0 }
 0x552   : > { %v4761_v62 = vsel %vm4739_vm8, %v4360_v32, 0.0 }
 0x553   : > { %v7530_v49 = vpop.eup %7529  ;;  %v5308_v38 = vrot.slane %v5257_v50, 6  ;;  %v5081_v25 = vadd.f32 %v9532_v35, %v4988_v23  ;;  %v4991_v0 = vrot.slane %v4990_v11, 2  ;;  %v4793_v46 = vadd.f32 %v4761_v62, %v9539_v57  ;;  %v4452_v39 = vpop.f32.mrf.mxu0 }
 0x554   : > { %v5595_v10 = vrot.slane %v7530_v49, 6  ;;  %v4827_v12 = vsel %vm4804_vm9, %v4452_v39, 0.0  ;;  %v4699_v62 = vsel %vm4674_vm7, %v4279_v13, 0.0 }
 0x555   : > { %7531 = vtanh.f32 %v5081_v25  ;;  %v5145_v30 = vmax.f32 %v5081_v25, 0.0  ;;  %v4992_v40 = vadd.f32 %v4991_v0, %v4990_v11  ;;  %v4858_v53 = vadd.f32 %v4826_v58, %v4793_v46  ;;  %v4195_v0 = vpop.f32.mrf.mxu1 }
 0x556   : > { %v5309_v43 = vsel %vm5275_vm11, %v5308_v38, %v5307_v19  ;;  %v5596_v48 = vsel %vm5275_vm11, %v5595_v10, %v5594_v56  ;;  %v4284_v58 = vpop.f32.mrf.mxu2 }
 0x557   : > { %v5177_v14 = vpack.c.bf16 %v5145_v30, %v5145_v30  ;;  %v4993_v41 = vrot.slane %v4992_v40, 1  ;;  %v4995_v5 = vrot.slane %v4858_v53, 4 }
 0x559   : > { %v5258_v9 = vunpack.c.l.b16 %v5177_v14  ;;  %v4994_v61 = vadd.f32 %v4993_v41, %v4992_v40  ;;  %v4996_v57 = vadd.f32 %v4995_v5, %v4858_v53  ;;  %v4363_v60 = vpop.f32.mrf.mxu3 }
 0x55a   : > { %v4762_v42 = vsel %vm4739_vm8, %v4363_v60, 0.0 }
 0x55b   : > { %v7532_v47 = vpop.eup %7531  ;;  %v5310_v24 = vrot.slane %v5258_v9, 5  ;;  %v5082_v63 = vadd.f32 %v9532_v35, %v4994_v61  ;;  %v4997_v37 = vrot.slane %v4996_v57, 2  ;;  %v4794_v33 = vadd.f32 %v4762_v42, %v9550_v26  ;;  %v4454_v3 = vpop.f32.mrf.mxu0 }
 0x55c   : > { %v5597_v18 = vrot.slane %v7532_v47, 5  ;;  %v4828_v36 = vsel %vm4804_vm9, %v4454_v3, 0.0 }
 0x55d   : > { %7533 = vtanh.f32 %v5082_v63  ;;  %v5146_v20 = vmax.f32 %v5082_v63, 0.0  ;;  %v4998_v8 = vadd.f32 %v4997_v37, %v4996_v57  ;;  %v4859_v17 = vadd.f32 %v4827_v12, %v4794_v33 }
 0x55e   : > { %v5311_v7 = vsel %vm5278_vm12, %v5310_v24, %v5309_v43  ;;  %v5598_v34 = vsel %vm5278_vm12, %v5597_v18, %v5596_v48  ;;  %v4635_v57 = vsel %vm4609_vm6, %v4192_v2, 0.0  ;;  %v4700_v33 = vsel %vm4674_vm7, %v4281_v55, 0.0  ;;  %v9991_v18 = vld [vmem:[#allocation5_spill] sm:$0xff] }
 0x55f   : > { %v5178_v31 = vpack.c.bf16 %v5146_v20, %v5146_v20  ;;  %v4999_v35 = vrot.slane %v4998_v8, 1  ;;  %v5001_v21 = vrot.slane %v4859_v17, 4  ;;  %v4667_v12 = vadd.f32 %v4635_v57, %v9991_v18 }
 0x561   : > { %v5259_v52 = vunpack.c.l.b16 %v5178_v31  ;;  %v5000_v26 = vadd.f32 %v4999_v35, %v4998_v8  ;;  %v5002_v6 = vadd.f32 %v5001_v21, %v4859_v17  ;;  %v4365_v1 = vpop.f32.mrf.mxu3  ;;  %v4197_v17 = vpop.f32.mrf.mxu1 }
 0x562   : > { %v4763_v15 = vsel %vm4739_vm8, %v4365_v1, 0.0 }
 0x563   : > { %v7534_v54 = vpop.eup %7533  ;;  %v5312_v4 = vrot.slane %v5259_v52, 4  ;;  %v5083_v44 = vadd.f32 %v9810_v27, %v5000_v26  ;;  %v5003_v19 = vrot.slane %v5002_v6, 2  ;;  %v4795_v56 = vadd.f32 %v4763_v15, %v9569_v28  ;;  %v4457_v59 = vpop.f32.mrf.mxu0  ;;  %v9990_v28 = vld [vmem:[#allocation4_spill] sm:$0xff] }
 0x564   : > { %v5599_v50 = vrot.slane %v7534_v54, 4  ;;  %v4666_v25 = vadd.f32 %v4634_v51, %v9990_v28  ;;  %v4829_v60 = vsel %vm4804_vm9, %v4457_v59, 0.0  ;;  %v4286_v26 = vpop.f32.mrf.mxu2 }
 0x565   : > { %7535 = vtanh.f32 %v5083_v44  ;;  %v5147_v23 = vmax.f32 %v5083_v44, 0.0  ;;  %v5004_v11 = vadd.f32 %v5003_v19, %v5002_v6  ;;  %v4860_v32 = vadd.f32 %v4828_v36, %v4795_v56 }
 0x566   : > { %v5313_v49 = vsel %vm5281_vm13, %v5312_v4, %v5311_v7  ;;  %v5600_v38 = vsel %vm5281_vm13, %v5599_v50, %v5598_v34  ;;  %v4731_v10 = vadd.f32 %v4699_v62, %v4666_v25  ;;  %v4732_v7 = vadd.f32 %v4700_v33, %v4667_v12 }
 0x567   : > { %v5179_v46 = vpack.c.bf16 %v5147_v23, %v5147_v23  ;;  %v5005_v45 = vrot.slane %v5004_v11, 1  ;;  %v5007_v39 = vrot.slane %v4860_v32, 4  ;;  %v4636_v44 = vsel %vm4609_vm6, %v4195_v0, 0.0 }
 0x568   : > { %v4701_v50 = vsel %vm4674_vm7, %v4284_v58, 0.0 }
 0x569   : > { %v5006_v30 = vadd.f32 %v5005_v45, %v5004_v11  ;;  %v5008_v40 = vadd.f32 %v5007_v39, %v4860_v32  ;;  %v4368_v53 = vpop.f32.mrf.mxu3  ;;  %v5260_v43 = vunpack.c.l.b16 %v5179_v46  ;;  %v9992_v11 = vld [vmem:[#allocation6_spill] sm:$0xff] }
 0x56a   : > { %v4764_v48 = vsel %vm4739_vm8, %v4368_v53, 0.0  ;;  %v4668_v32 = vadd.f32 %v4636_v44, %v9992_v11 }
 0x56b   : > { %v7536_v13 = vpop.eup %7535  ;;  %v5084_v14 = vadd.f32 %v9810_v27, %v5006_v30  ;;  %v5009_v41 = vrot.slane %v5008_v40, 2  ;;  %v4796_v5 = vadd.f32 %v4764_v48, %v4731_v10  ;;  %v4459_v9 = vpop.f32.mrf.mxu0  ;;  %v5314_v61 = vrot.slane %v5260_v43, 3 }
 0x56c   : > { %v5601_v42 = vrot.slane %v7536_v13, 3  ;;  %v4830_v19 = vsel %vm4804_vm9, %v4459_v9, 0.0  ;;  %v4733_v25 = vadd.f32 %v4701_v50, %v4668_v32  ;;  %v4200_v10 = vpop.f32.mrf.mxu1  ;;  %v4637_v48 = vsel %vm4609_vm6, %v4197_v17, 0.0 }
 0x56d   : > { %v5010_v47 = vadd.f32 %v5009_v41, %v5008_v40  ;;  %v4861_v24 = vadd.f32 %v4829_v60, %v4796_v5  ;;  %v5148_v63 = vmax.f32 %v5084_v14, 0.0  ;;  %v5315_v37 = vsel %vm5284_vm14, %v5314_v61, %v5313_v49  ;;  %v4289_v41 = vpop.f32.mrf.mxu2 }
 0x56e   : > { %7537 = vtanh.f32 %v5084_v14  ;;  %v5602_v3 = vsel %vm5284_vm14, %v5601_v42, %v5600_v38  ;;  %v4702_v61 = vsel %vm4674_vm7, %v4286_v26, 0.0  ;;  %v9993_v42 = vld [vmem:[#allocation7_spill] sm:$0xff] }
 0x56f   : > { %v5011_v20 = vrot.slane %v5010_v47, 1  ;;  %v5013_v8 = vrot.slane %v4861_v24, 4  ;;  %v5180_v2 = vpack.c.bf16 %v5148_v63, %v5148_v63 }
 0x571   : > { %v5012_v34 = vadd.f32 %v5011_v20, %v5010_v47  ;;  %v5014_v31 = vadd.f32 %v5013_v8, %v4861_v24  ;;  %v4370_v35 = vpop.f32.mrf.mxu3  ;;  %v5261_v21 = vunpack.c.l.b16 %v5180_v2  ;;  %v4669_v47 = vadd.f32 %v4637_v48, %v9993_v42 }
 0x572   : > { %v4765_v52 = vsel %vm4739_vm8, %v4370_v35, 0.0  ;;  %v4638_v2 = vsel %vm4609_vm6, %v4200_v10, 0.0 }
 0x573   : > { %v5085_v55 = vadd.f32 %v9810_v27, %v5012_v34  ;;  %v5015_v6 = vrot.slane %v5014_v31, 2  ;;  %v4797_v1 = vadd.f32 %v4765_v52, %v4732_v7  ;;  %v4462_v15 = vpop.f32.mrf.mxu0  ;;  %v5316_v54 = vrot.slane %v5261_v21, 2 }
 0x574   : > { %v7538_v4 = vpop.eup %7537  ;;  %v4831_v14 = vsel %vm4804_vm9, %v4462_v15, 0.0  ;;  %v4202_v52 = vpop.f32.mrf.mxu1 }
 0x575   : > { %v5016_v56 = vadd.f32 %v5015_v6, %v5014_v31  ;;  %v4862_v59 = vadd.f32 %v4830_v19, %v4797_v1  ;;  %v5149_v51 = vmax.f32 %v5085_v55, 0.0  ;;  %v5317_v36 = vsel %vm5287_vm15, %v5316_v54, %v5315_v37  ;;  %v9994_v1 = vld [vmem:[#allocation8_spill] sm:$0xff] }
 0x576   : > { %7539 = vtanh.f32 %v5085_v55  ;;  %v5603_v23 = vrot.slane %v7538_v4, 2  ;;  %v4670_v15 = vadd.f32 %v4638_v2, %v9994_v1  ;;  %v4703_v54 = vsel %vm4674_vm7, %v4289_v41, 0.0  ;;  %v4291_v4 = vpop.f32.mrf.mxu2  ;;  %v9996_v1 = vld [vmem:[#allocation10_spill] sm:$0xff] }
 0x577   : > { %v5019_v62 = vrot.slane %v4862_v59, 4  ;;  %v5181_v49 = vpack.c.bf16 %v5149_v51, %v5149_v51  ;;  %v5017_v38 = vrot.slane %v5016_v56, 1 }
 0x578   : > { %v5604_v28 = vsel %vm5287_vm15, %v5603_v23, %v5602_v3  ;;  %v4734_v3 = vadd.f32 %v4702_v61, %v4669_v47  ;;  %v4735_v51 = vadd.f32 %v4703_v54, %v4670_v15 }
 0x579   : > { %v5020_v0 = vadd.f32 %v5019_v62, %v4862_v59  ;;  %v4373_v46 = vpop.f32.mrf.mxu3  ;;  %v5262_v45 = vunpack.c.l.b16 %v5181_v49  ;;  %v5018_v13 = vadd.f32 %v5017_v38, %v5016_v56 }
 0x57a   : > { %v4766_v39 = vsel %vm4739_vm8, %v4373_v46, 0.0 }
 0x57b   : > { %v5021_v30 = vrot.slane %v5020_v0, 2  ;;  %v4798_v40 = vadd.f32 %v4766_v39, %v4733_v25  ;;  %v4464_v58 = vpop.f32.mrf.mxu0  ;;  %v5318_v53 = vrot.slane %v5262_v45, 1  ;;  %v5086_v37 = vadd.f32 %v9810_v27, %v5018_v13 }
 0x57c   : > { %v7540_v43 = vpop.eup %7539  ;;  %v4832_v21 = vsel %vm4804_vm9, %v4464_v58, 0.0 }
 0x57d   : > { %v5022_v5 = vadd.f32 %v5021_v30, %v5020_v0  ;;  %v4863_v9 = vadd.f32 %v4831_v14, %v4798_v40  ;;  %v9856_v57 = vsel %vm5290_vm0, %v5318_v53, %v5317_v36  ;;  %v5605_v60 = vrot.slane %v7540_v43, 1  ;;  %v9995_v14 = vld [vmem:[#allocation9_spill] sm:$0xff] }
 0x57e   : > { %v5150_v35 = vmax.f32 %v5086_v37, 0.0  ;;  %v4639_v0 = vsel %vm4609_vm6, %v4202_v52, 0.0  ;;  %v4704_v43 = vsel %vm4674_vm7, %v4291_v4, 0.0  ;;  %v4294_v47 = vpop.f32.mrf.mxu2 }
 0x57f   : > { %v5023_v24 = vrot.slane %v5022_v5, 1  ;;  %v5025_v63 = vrot.slane %v4863_v9, 4  ;;  %v9861_v33 = vsel %vm5290_vm0, %v5605_v60, %v5604_v28  ;;  %v4671_v41 = vadd.f32 %v4639_v0, %v9995_v14 }
 0x580   : > { %v5182_v59 = vpack.c.bf16 %v5150_v35, %v5150_v35 }
 0x581   : > { %v5024_v18 = vadd.f32 %v5023_v24, %v5022_v5  ;;  %v5026_v12 = vadd.f32 %v5025_v63, %v4863_v9  ;;  %v4375_v20 = vpop.f32.mrf.mxu3  ;;  %v4205_v5 = vpop.f32.mrf.mxu1  ;;  %v4736_v42 = vadd.f32 %v4704_v43, %v4671_v41  ;;  %v9997_v43 = vld [vmem:[#allocation11_spill] sm:$0xff] }
 0x582   : > { %v4767_v8 = vsel %vm4739_vm8, %v4375_v20, 0.0  ;;  %v5263_v46 = vunpack.c.l.b16 %v5182_v59 }
 0x583   : > { %v5087_v17 = vadd.f32 %v9810_v27, %v5024_v18  ;;  %v5027_v7 = vrot.slane %v5026_v12, 2  ;;  %v4799_v34 = vadd.f32 %v4767_v8, %v4734_v3  ;;  %v4467_v31 = vpop.f32.mrf.mxu0 }
 0x584   : > { %v4833_v39 = vsel %vm4804_vm9, %v4467_v31, 0.0 }
 0x585   : > { %7541 = vtanh.f32 %v5087_v17  ;;  %v5151_v26 = vmax.f32 %v5087_v17, 0.0  ;;  %v5028_v55 = vadd.f32 %v5027_v7, %v5026_v12  ;;  %v4864_v6 = vadd.f32 %v4832_v21, %v4799_v34 }
 0x586   : > { %7543 = vtanh.f32 %v5086_v37  ;;  %v4640_v7 = vsel %vm4609_vm6, %v4205_v5, 0.0 }
 0x587   : > { %v5183_v44 = vpack.c.bf16 %v5151_v26, %v5151_v26  ;;  %v5029_v19 = vrot.slane %v5028_v55, 1  ;;  %v5031_v56 = vrot.slane %v4864_v6, 4  ;;  %v4705_v26 = vsel %vm4674_vm7, %v4294_v47, 0.0 }
 0x588   : > { %v4672_v15 = vadd.f32 %v4640_v7, %v9996_v1 }
 0x589   : > { %v5264_v36 = vunpack.c.l.b16 %v5183_v44  ;;  %v5030_v50 = vadd.f32 %v5029_v19, %v5028_v55  ;;  %v5032_v23 = vadd.f32 %v5031_v56, %v4864_v6  ;;  %v4378_v11 = vpop.f32.mrf.mxu3  ;;  %v4207_v56 = vpop.f32.mrf.mxu1 }
 0x58a   : > { %v4768_v32 = vsel %vm4739_vm8, %v4378_v11, 0.0  ;;  %v4737_v59 = vadd.f32 %v4705_v26, %v4672_v15  ;;  %v4641_v0 = vsel %vm4609_vm6, %v4207_v56, 0.0 }
 0x58b   : > { %v7542_v62 = vpop.eup %7541  ;;  %v5320_v49 = vrot.slane %v5264_v36, 7  ;;  %v5088_v38 = vadd.f32 %v9810_v27, %v5030_v50  ;;  %v5033_v28 = vrot.slane %v5032_v23, 2  ;;  %v4800_v25 = vadd.f32 %v4768_v32, %v4735_v51  ;;  %v4469_v53 = vpop.f32.mrf.mxu0 }
 0x58c   : > { %v5607_v45 = vrot.slane %v7542_v62, 7  ;;  %v7544_v10 = vpop.eup %7543  ;;  %v4834_v31 = vsel %vm4804_vm9, %v4469_v53, 0.0  ;;  %v4296_v62 = vpop.f32.mrf.mxu2 }
 0x58d   : > { %7545 = vtanh.f32 %v5088_v38  ;;  %v5152_v30 = vmax.f32 %v5088_v38, 0.0  ;;  %v5034_v40 = vadd.f32 %v5033_v28, %v5032_v23  ;;  %v4865_v58 = vadd.f32 %v4833_v39, %v4800_v25 }
 0x58e   : > { %v5321_v48 = vsel %vm5272_vm10, %v5320_v49, %v5263_v46  ;;  %v5608_v13 = vsel %vm5272_vm10, %v5607_v45, %v7544_v10 }
 0x58f   : > { %v5184_v9 = vpack.c.bf16 %v5152_v30, %v5152_v30  ;;  %v5035_v61 = vrot.slane %v5034_v40, 1  ;;  %v5037_v60 = vrot.slane %v4865_v58, 4 }
 0x591   : > { %v5265_v24 = vunpack.c.l.b16 %v5184_v9  ;;  %v5036_v63 = vadd.f32 %v5035_v61, %v5034_v40  ;;  %v5038_v37 = vadd.f32 %v5037_v60, %v4865_v58  ;;  %v4380_v3 = vpop.f32.mrf.mxu3  ;;  %v4706_v40 = vsel %vm4674_vm7, %v4296_v62, 0.0 }
 0x592   : > { %v4769_v18 = vsel %vm4739_vm8, %v4380_v3, 0.0 }
 0x593   : > { %v7546_v12 = vpop.eup %7545  ;;  %v5322_v20 = vrot.slane %v5265_v24, 6  ;;  %v5089_v8 = vadd.f32 %v9810_v27, %v5036_v63  ;;  %v5039_v2 = vrot.slane %v5038_v37, 2  ;;  %v4801_v17 = vadd.f32 %v4769_v18, %v4736_v42  ;;  %v4472_v19 = vpop.f32.mrf.mxu0 }
 0x594   : > { %v5609_v34 = vrot.slane %v7546_v12, 6  ;;  %v4835_v45 = vsel %vm4804_vm9, %v4472_v19, 0.0 }
 0x595   : > { %7547 = vtanh.f32 %v5089_v8  ;;  %v5153_v35 = vmax.f32 %v5089_v8, 0.0  ;;  %v5040_v21 = vadd.f32 %v5039_v2, %v5038_v37  ;;  %v4866_v52 = vadd.f32 %v4834_v31, %v4801_v17 }
 0x596   : > { %v5323_v55 = vsel %vm5275_vm11, %v5322_v20, %v5321_v48  ;;  %v5610_v6 = vsel %vm5275_vm11, %v5609_v34, %v5608_v13  ;;  %v4673_v48 = vadd.f32 %v4641_v0, %v9997_v43 }
 0x597   : > { %v5185_v54 = vpack.c.bf16 %v5153_v35, %v5153_v35  ;;  %v5041_v4 = vrot.slane %v5040_v21, 1  ;;  %v5043_v44 = vrot.slane %v4866_v52, 4 }
 0x598   : > { %v4738_v5 = vadd.f32 %v4706_v40, %v4673_v48 }
 0x599   : > { %v5266_v51 = vunpack.c.l.b16 %v5185_v54  ;;  %v5042_v36 = vadd.f32 %v5041_v4, %v5040_v21  ;;  %v5044_v50 = vadd.f32 %v5043_v44, %v4866_v52  ;;  %v4383_v23 = vpop.f32.mrf.mxu3 }
 0x59a   : > { %v4770_v11 = vsel %vm4739_vm8, %v4383_v23, 0.0 }
 0x59b   : > { %v7548_v32 = vpop.eup %7547  ;;  %v5324_v49 = vrot.slane %v5266_v51, 5  ;;  %v5090_v38 = vadd.f32 %v9810_v27, %v5042_v36  ;;  %v5045_v28 = vrot.slane %v5044_v50, 2  ;;  %v4802_v25 = vadd.f32 %v4770_v11, %v4737_v59  ;;  %v4474_v42 = vpop.f32.mrf.mxu0 }
 0x59c   : > { %v5611_v46 = vrot.slane %v7548_v32, 5  ;;  %v4836_v20 = vsel %vm4804_vm9, %v4474_v42, 0.0 }
 0x59d   : > { %7549 = vtanh.f32 %v5090_v38  ;;  %v5154_v39 = vmax.f32 %v5090_v38, 0.0  ;;  %v5046_v10 = vadd.f32 %v5045_v28, %v5044_v50  ;;  %v4867_v30 = vadd.f32 %v4835_v45, %v4802_v25 }
 0x59e   : > { %v5325_v58 = vsel %vm5278_vm12, %v5324_v49, %v5323_v55  ;;  %v5612_v53 = vsel %vm5278_vm12, %v5611_v46, %v5610_v6  ;;  %v5409_v46 = vld [vmem:[%s9971_s2 + $0x240] sm:$0x1] }
 0x59f   : > { %v5186_v13 = vpack.c.bf16 %v5154_v39, %v5154_v39  ;;  %v5047_v14 = vrot.slane %v5046_v10, 1  ;;  %v5049_v41 = vrot.slane %v4867_v30, 4 }
 0x5a1   : > { %v5267_v9 = vunpack.c.l.b16 %v5186_v13  ;;  %v5048_v61 = vadd.f32 %v5047_v14, %v5046_v10  ;;  %v5050_v60 = vadd.f32 %v5049_v41, %v4867_v30  ;;  %v4385_v47 = vpop.f32.mrf.mxu3  ;;  %v5410_v30 = vunpack.c.l.bf16 %v5409_v46 }
 0x5a2   : > { %v4771_v24 = vsel %vm4739_vm8, %v4385_v47, 0.0 }
 0x5a3   : > { %v7550_v63 = vpop.eup %7549  ;;  %v5326_v37 = vrot.slane %v5267_v9, 4  ;;  %v5091_v3 = vadd.f32 %v9810_v27, %v5048_v61  ;;  %v5051_v18 = vrot.slane %v5050_v60, 2  ;;  %v4803_v12 = vadd.f32 %v4771_v24, %v4738_v5 }
 0x5a4   : > { %v5613_v8 = vrot.slane %v7550_v63, 4  ;;  %v5411_v14 = vperm.slane %v5410_v30, 0 }
 0x5a5   : > { %7551 = vtanh.f32 %v5091_v3  ;;  %v5155_v2 = vmax.f32 %v5091_v3, 0.0  ;;  %v5052_v17 = vadd.f32 %v5051_v18, %v5050_v60  ;;  %v4868_v7 = vadd.f32 %v4836_v20, %v4803_v12 }
 0x5a6   : > { %v5327_v34 = vsel %vm5281_vm13, %v5326_v37, %v5325_v58  ;;  %v5614_v31 = vsel %vm5281_vm13, %v5613_v8, %v5612_v53 }
 0x5a7   : > { %v5187_v35 = vpack.c.bf16 %v5155_v2, %v5155_v2  ;;  %v5053_v21 = vrot.slane %v5052_v17, 1  ;;  %v5055_v52 = vrot.slane %v4868_v7, 4 }
 0x5a9   : > { %v5054_v26 = vadd.f32 %v5053_v21, %v5052_v17  ;;  %v5056_v55 = vadd.f32 %v5055_v52, %v4868_v7  ;;  %v5268_v6 = vunpack.c.l.b16 %v5187_v35 }
 0x5ab   : > { %v7552_v1 = vpop.eup %7551  ;;  %v5092_v15 = vadd.f32 %v9810_v27, %v5054_v26  ;;  %v5057_v22 = vrot.slane %v5056_v55, 2  ;;  %v5328_v54 = vrot.slane %v5268_v6, 3 }
 0x5ac   : > { %v5615_v4 = vrot.slane %v7552_v1, 3 }
 0x5ad   : > { %v5058_v44 = vadd.f32 %v5057_v22, %v5056_v55  ;;  %v5156_v19 = vmax.f32 %v5092_v15, 0.0  ;;  %v5329_v56 = vsel %vm5284_vm14, %v5328_v54, %v5327_v34  ;;  %7553 = vtanh.f32 %v5092_v15 }
 0x5ae   : > { %v5616_v59 = vsel %vm5284_vm14, %v5615_v4, %v5614_v31 }
 0x5af   : > { %v5059_v51 = vrot.slane %v5058_v44, 1  ;;  %v5188_v36 = vpack.c.bf16 %v5156_v19, %v5156_v19 }
 0x5b1   : > { %v5060_v50 = vadd.f32 %v5059_v51, %v5058_v44  ;;  %v5269_v23 = vunpack.c.l.b16 %v5188_v36 }
 0x5b3   : > { %v7554_v11 = vpop.eup %7553  ;;  %v5093_v32 = vadd.f32 %v9810_v27, %v5060_v50  ;;  %v5330_v62 = vrot.slane %v5269_v23, 2  ;;  %v5206_v27 = vld [vmem:[%s9973_s4 + $0x4] ss:$0 sm:$0xff] }
 0x5b4   : > { %v5617_v49 = vrot.slane %v7554_v11, 2 }
 0x5b5   : > { %v5157_v38 = vmax.f32 %v5093_v32, 0.0  ;;  %v5331_v28 = vsel %vm5287_vm15, %v5330_v62, %v5329_v56  ;;  %7555 = vtanh.f32 %v5093_v32 }
 0x5b6   : > { %v5618_v25 = vsel %vm5287_vm15, %v5617_v49, %v5616_v59 }
 0x5b7   : > { %v5189_v0 = vpack.c.bf16 %v5157_v38, %v5157_v38 }
 0x5b9   : > { %v5270_v45 = vunpack.c.l.b16 %v5189_v0 }
 0x5bb   : > { %v7556_v39 = vpop.eup %7555  ;;  %v5332_v10 = vrot.slane %v5270_v45, 1  ;;  %v9998_v45 = vlaneseq }
 0x5bc   : > { %v5619_v40 = vrot.slane %v7556_v39, 1 }
 0x5bd   : > { %v5333_v58 = vsel %vm5290_vm0, %v5332_v10, %v5331_v28  ;;  %v5395_v53 = vpop.f32.mrf.mxu1  ;;  %v5511_v39 = vand.u32 127, %v9998_v45 }
 0x5be   : > { %v5335_v43 = vpack.c.b16 %v5333_v58, %v9856_v57  ;;  %v9931_v48 = vsel %vm5290_vm0, %v5619_v40, %v5618_v25  ;;  %v5396_v13 = vadd.f32 %v5395_v53, %v5206_v27  ;;  %v9938_v57 = vld [vmem:[%s9973_s4 + $0x5] ss:$0 sm:$0xff] }
 0x5bf   : > { %vm5512_vm10 = vcmp.eq.s32.totalorder %v5511_v39, 54 }
 0x5c0   : > { %5399 = vmatmul.bf16.gmra.mxu1 %v5335_v43  ;;  %v5405_v41 = vmax.f32 %v5396_v13, 0.0 }
 0x5c2   : > { %v5412_v5 = vmul.f32 %v5411_v14, %v5405_v41 }
 0x5c4   : > { %v5417_v9 = vsel %vm5416_vm1, %v5412_v5, 0.0 }
 0x5c5   : > { %v5397_v61 = vpop.f32.mrf.mxu1  ;;  %5418 = vadd.xlane.f32.xlu0 %v5417_v9 }
 0x5c6   : > { %v5398_v60 = vadd.f32 %v5397_v61, %v5206_v27 }
 0x5c8   : > { %v5406_v42 = vmax.f32 %v5398_v60, 0.0 }
 0x5ca   : > { %v5413_v47 = vmul.f32 %v5411_v14, %v5406_v42 }
 0x5cc   : > { %v5420_v24 = vsel %vm5416_vm1, %v5413_v47, 0.0 }
 0x5cd   : > { %5421 = vadd.xlane.f32.xlu0 %v5420_v24 }
 0x638   : > { %v5419_v63 = vpop.xlane.xlu0 %5418 }
 0x639   : > { %v5430_v37 = vadd.f32 %v9938_v57, %v5419_v63 }
 0x63b   : > { %v6802_v3 = vmul.f32 -1.442695, %v5430_v37 }
 0x63d   : > { %v5400_v18 = vpop.f32.mrf.mxu1  ;;  %7557 = vpow2.f32 %v6802_v3 }
 0x63e   : > { %v5401_v12 = vadd.f32 %v5400_v18, %v5206_v27 }
 0x640   : > { %v5407_v20 = vmax.f32 %v5401_v12, 0.0  ;;  %v5422_v8 = vpop.xlane.xlu0 %5421 }
 0x641   : > { %v5431_v2 = vadd.f32 %v9938_v57, %v5422_v8 }
 0x642   : > { %v5414_v17 = vmul.f32 %v5411_v14, %v5407_v20 }
 0x643   : > { %v7558_v7 = vpop.eup %7557  ;;  %v6803_v34 = vmul.f32 -1.442695, %v5431_v2 }
 0x644   : > { %v5423_v31 = vsel %vm5416_vm1, %v5414_v17, 0.0  ;;  %v5446_v35 = vadd.f32 1.0, %v7558_v7 }
 0x645   : > { %v5402_v21 = vpop.f32.mrf.mxu1  ;;  %5424 = vadd.xlane.f32.xlu1 %v5423_v31  ;;  %7559 = vpow2.f32 %v6803_v34 }
 0x646   : > { %v5403_v52 = vadd.f32 %v5402_v21, %v5206_v27  ;;  %7561 = vrcp.f32 %v5446_v35  ;;  %v5461_v44 = vand.u32 2147483648, %v5446_v35  ;;  %v5459_v56 = vand.u32 2147483647, %v5446_v35 }
 0x647   : > { %vm5455_vm3 = vweird.f32 %v5446_v35 }
 0x648   : > { %v5408_v26 = vmax.f32 %v5403_v52, 0.0  ;;  %v5462_v36 = vor.u32 1.1754944e-38, %v5461_v44  ;;  %vm5460_vm5 = vcmp.eq.f32.partialorder %v5459_v56, 8.507059e+37 }
 0x64a   : > { %v5415_v55 = vmul.f32 %v5411_v14, %v5408_v26 }
 0x64b   : > { %v7560_v6 = vpop.eup %7559 }
 0x64c   : > { %v5426_v1 = vsel %vm5416_vm1, %v5415_v55, 0.0  ;;  %v7562_v15 = vpop.eup %7561  ;;  %v5447_v22 = vadd.f32 1.0, %v7560_v6 }
 0x64d   : > { %5427 = vadd.xlane.f32.xlu1 %v5426_v1  ;;  %v5451_v54 = vmul.f32 %v7562_v15, %v5446_v35  ;;  %vm5456_vm2 = vweird.f32 %v7562_v15 }
 0x64e   : > { %7563 = vrcp.f32 %v5447_v22  ;;  %vm5457_vm4 = vmor %vm5455_vm3, %vm5456_vm2  ;;  %v5476_v62 = vand.u32 2147483648, %v5447_v22  ;;  %v5474_v38 = vand.u32 2147483647, %v5447_v22  ;;  %vm5470_vm7 = vweird.f32 %v5447_v22 }
 0x64f   : > { %v5452_v4 = vsub.f32 1.0, %v5451_v54 }
 0x650   : > { %v5477_v25 = vor.u32 1.1754944e-38, %v5476_v62  ;;  %vm5475_vm9 = vcmp.eq.f32.partialorder %v5474_v38, 8.507059e+37 }
 0x651   : > { %v5453_v19 = vmul.f32 %v7562_v15, %v5452_v4 }
 0x653   : > { %v5454_v59 = vadd.f32 %v7562_v15, %v5453_v19 }
 0x654   : > { %v7564_v51 = vpop.eup %7563 }
 0x655   : > { %v5458_v50 = vsel %vm5457_vm4, %v7562_v15, %v5454_v59  ;;  %v5466_v23 = vmul.f32 %v7564_v51, %v5447_v22  ;;  %vm5471_vm6 = vweird.f32 %v7564_v51 }
 0x656   : > { %v5463_v11 = vsel %vm5460_vm5, %v5462_v36, %v5458_v50  ;;  %vm5472_vm8 = vmor %vm5470_vm7, %vm5471_vm6 }
 0x657   : > { %5515 = vperm.xlu2 %7170, %v5463_v11   ;;  %v5467_v32 = vsub.f32 1.0, %v5466_v23 }
 0x659   : > { %v5468_v49 = vmul.f32 %v7564_v51, %v5467_v32 }
 0x65b   : > { %v5469_v28 = vadd.f32 %v7564_v51, %v5468_v49 }
 0x65d   : > { %v5473_v0 = vsel %vm5472_vm8, %v7564_v51, %v5469_v28 }
 0x65e   : > { %v5478_v46 = vsel %vm5475_vm9, %v5477_v25, %v5473_v0 }
 0x65f   : > { %5520 = vperm.xlu2 %7170, %v5478_v46  }
 0x6b1   : > { %v5516_v10 = vpop.permute.xlu2 %5515 }
 0x6b2   : > { %v5625_v30 = vsel %vm5512_vm10, %v5516_v10, %v9662_v29 }
 0x6b3   : > { %5629 = vst [vmem:[%s9950_s17] sm:$0xff] %v5625_v30 }
 0x6b8   : > { %v5425_v27 = vpop.xlane.xlu1 %5424 }
 0x6b9   : > { %v5432_v40 = vadd.f32 %v9938_v57, %v5425_v27  ;;  %v5521_v58 = vpop.permute.xlu2 %5520 }
 0x6ba   : > { %v5626_v43 = vsel %vm5512_vm10, %v5521_v58, %v9773_v16 }
 0x6bb   : > { %v6804_v53 = vmul.f32 -1.442695, %v5432_v40  ;;  %5630 = vst [vmem:[%s9950_s17 + $0x8] sm:$0xff] %v5626_v43 }
 0x6bd   : > { %7565 = vpow2.f32 %v6804_v53 }
 0x6c0   : > { %v5428_v13 = vpop.xlane.xlu1 %5427 }
 0x6c1   : > { %v5433_v14 = vadd.f32 %v9938_v57, %v5428_v13 }
 0x6c3   : > { %v7566_v41 = vpop.eup %7565  ;;  %v6805_v5 = vmul.f32 -1.442695, %v5433_v14 }
 0x6c4   : > { %v5448_v9 = vadd.f32 1.0, %v7566_v41 }
 0x6c5   : > { %7567 = vpow2.f32 %v6805_v5 }
 0x6c6   : > { %7569 = vrcp.f32 %v5448_v9  ;;  %v5491_v24 = vand.u32 2147483648, %v5448_v9  ;;  %v5489_v16 = vand.u32 2147483647, %v5448_v9  ;;  %vm5485_vm12 = vweird.f32 %v5448_v9 }
 0x6c8   : > { %v5492_v57 = vor.u32 1.1754944e-38, %v5491_v24  ;;  %vm5490_vm14 = vcmp.eq.f32.partialorder %v5489_v16, 8.507059e+37 }
 0x6cb   : > { %v7568_v29 = vpop.eup %7567 }
 0x6cc   : > { %v7570_v61 = vpop.eup %7569  ;;  %v5449_v60 = vadd.f32 1.0, %v7568_v29 }
 0x6cd   : > { %v5481_v42 = vmul.f32 %v7570_v61, %v5448_v9  ;;  %vm5486_vm11 = vweird.f32 %v7570_v61 }
 0x6ce   : > { %7571 = vrcp.f32 %v5449_v60  ;;  %vm5487_vm13 = vmor %vm5485_vm12, %vm5486_vm11  ;;  %v5506_v2 = vand.u32 2147483648, %v5449_v60  ;;  %v5504_v7 = vand.u32 2147483647, %v5449_v60  ;;  %vm5500_vm0 = vweird.f32 %v5449_v60 }
 0x6cf   : > { %v5482_v47 = vsub.f32 1.0, %v5481_v42 }
 0x6d0   : > { %v5507_v31 = vor.u32 1.1754944e-38, %v5506_v2  ;;  %vm5505_vm2 = vcmp.eq.f32.partialorder %v5504_v7, 8.507059e+37 }
 0x6d1   : > { %v5483_v63 = vmul.f32 %v7570_v61, %v5482_v47 }
 0x6d3   : > { %v5484_v37 = vadd.f32 %v7570_v61, %v5483_v63 }
 0x6d4   : > { %v7572_v3 = vpop.eup %7571 }
 0x6d5   : > { %v5488_v18 = vsel %vm5487_vm13, %v7570_v61, %v5484_v37  ;;  %v5496_v12 = vmul.f32 %v7572_v3, %v5449_v60  ;;  %vm5501_vm15 = vweird.f32 %v7572_v3 }
 0x6d6   : > { %v5493_v20 = vsel %vm5490_vm14, %v5492_v57, %v5488_v18  ;;  %vm5502_vm1 = vmor %vm5500_vm0, %vm5501_vm15 }
 0x6d7   : > { %5525 = vperm.xlu0 %7171, %v5493_v20   ;;  %v5497_v8 = vsub.f32 1.0, %v5496_v12 }
 0x6d9   : > { %v5498_v17 = vmul.f32 %v7572_v3, %v5497_v8 }
 0x6db   : > { %v5499_v34 = vadd.f32 %v7572_v3, %v5498_v17 }
 0x6dd   : > { %v5503_v35 = vsel %vm5502_vm1, %v7572_v3, %v5499_v34 }
 0x6de   : > { %v5508_v21 = vsel %vm5505_vm2, %v5507_v31, %v5503_v35 }
 0x6df   : > { %5530 = vperm.xlu1 %7172, %v5508_v21  }
 0x749   : > { %v5526_v52 = vpop.permute.xlu0 %5525 }
 0x74a   : > { %v5627_v26 = vsel %vm5512_vm10, %v5526_v52, %v9861_v33 }
 0x74b   : > { %5631 = vst [vmem:[%s9950_s17 + $0x10] sm:$0xff] %v5627_v26 }
 0x751   : > { %v5531_v55 = vpop.permute.xlu1 %5530 }
 0x752   : > { %v5628_v6 = vsel %vm5512_vm10, %v5531_v55, %v9931_v48 }
 0x753   : > { %5632 = vst [vmem:[%s9950_s17 + $0x18] sm:$0xff] %v5628_v6 }
 0x754 PF: > { %s15_s18 = sadd.s32 1, %s7581_s18  }
 0x755   : > { %p12_p5 = scmp.ge.s32.totalorder %s15_s18, 6  }
 0x757   :  { %14 = sbr.rel (!%p12_p5) target bundleno = 1 (0x1), region = 70 }

</bundles_post_ra>
